<compile_context>
chip_gen: v7x
topology: tpu7x:2x2x1
jax: 0.10.0
libtpu: 0.0.40
codegen_flags: <defaults>
</compile_context>

<pallas_src>
import jax
import jax.numpy as jnp
from jax import lax
from jax.experimental import pallas as pl
from jax.experimental.pallas import tpu as pltpu

LANE = 128
_SMALL_C_MAX = 8            # dispatch threshold for the VPU (no channel pad) path
_MXU_PATCH_BUDGET = 8 << 20   # target bytes for the im2row scratch (MXU path)
_VPU_BAND_BUDGET = 4 << 20    # target bytes for a band's working set (VPU path)


def _round_up(x, m):
    return (x + m - 1) // m * m


def _pick_tile_h(H, bytes_per_out_row, budget, tile_h):
    if tile_h is None:
        tile_h = max(8, budget // max(1, bytes_per_out_row))
    return int(max(1, min(int(tile_h), H, 256)))


# ---------------------------------------------------------------------------
# MXU path (C > _SMALL_C_MAX): lane-dense channels, one deep-K matmul per band.
# ---------------------------------------------------------------------------
def _conv_relu_mxu_kernel(x_ref, w_ref, o_ref, patch_ref):
    # x_ref:     (1, 1, TH+2, W+2, Cp) bf16   input band with 1-row/1-col halo
    # w_ref:     (9*Cp, Cp)            bf16   rows ordered (dy, dx, c_in)
    # o_ref:     (1, 1, TH,   W,   Cp)        conv + ReLU result
    # patch_ref: (TH*W, 9*Cp)          bf16   reused im2row scratch
    TH, W, Cp = o_ref.shape[2], o_ref.shape[3], o_ref.shape[4]
    x = x_ref[0, 0]                                        # (TH+2, W+2, Cp)
    # Build the im2row patch exactly once (bounded live range, single deep K).
    for dy in range(3):
        for dx in range(3):
            k = dy * 3 + dx
            patch_ref[:, k * Cp:(k + 1) * Cp] = (
                x[dy:dy + TH, dx:dx + W, :].reshape(TH * W, Cp))
    # One (TH*W, 9*Cp) @ (9*Cp, Cp) matmul, f32 accumulation (no zero-init acc).
    acc = jnp.dot(patch_ref[...], w_ref[...],
                  preferred_element_type=jnp.float32)
    o_ref[...] = jnp.maximum(acc, 0.0).reshape(1, 1, TH, W, Cp).astype(o_ref.dtype)


def _conv_relu_mxu(x_nchw, weight_oihw, tile_h, out_dtype):
    B, C, H, W = x_nchw.shape
    Cp = _round_up(C, LANE)

    tile_h = _pick_tile_h(H, W * 9 * Cp * 2, _MXU_PATCH_BUDGET, tile_h)
    Hp = _round_up(H, tile_h)
    n_tiles = Hp // tile_h

    # NCHW -> NHWC; one fused pad: spatial halo (+1 each side, plus bottom rows
    # up to Hp) and channel zero-pad to Cp; bf16 operands for the MXU.
    x_nhwc = jnp.transpose(x_nchw, (0, 2, 3, 1))
    x_pad = jnp.pad(
        x_nhwc, ((0, 0), (1, 1 + Hp - H), (1, 1), (0, Cp - C))
    ).astype(jnp.bfloat16)

    # Pre-split overlapping TILE_H+2 row bands (1-row halo each side).
    starts = jnp.arange(n_tiles) * tile_h
    row_idx = starts[:, None] + jnp.arange(tile_h + 2)[None, :]
    x_bands = x_pad[:, row_idx]              # (B, n_tiles, TILE_H+2, W+2, Cp)

    # OIHW -> (kh, kw, c_in, c_out), pad channels to Cp, flatten to (9*Cp, Cp)
    # with row order (dy, dx, c_in) matching the kernel's patch layout.
    w = jnp.transpose(weight_oihw, (2, 3, 1, 0))
    w = jnp.pad(w, ((0, 0), (0, 0), (0, Cp - C), (0, Cp - C)))
    w_flat = w.reshape(9 * Cp, Cp).astype(jnp.bfloat16)

    out_itemsize = jnp.dtype(out_dtype).itemsize
    in_blk = (tile_h + 2) * (W + 2) * Cp * 2
    out_blk = tile_h * W * Cp * out_itemsize
    w_bytes = 9 * Cp * Cp * 2
    patch_bytes = tile_h * W * 9 * Cp * 2
    acc_bytes = tile_h * W * Cp * 4
    vmem_est = (2 * in_blk + 2 * out_blk + 2 * w_bytes
                + patch_bytes + 2 * acc_bytes)
    vmem_limit = int(min(max(2 * vmem_est, 16 << 20), 48 << 20))

    flops = 2 * 9 * B * Hp * W * Cp * Cp
    bytes_accessed = (x_bands.size * 2 + w_flat.size * 2
                      + B * Hp * W * Cp * out_itemsize)
    cost = pl.CostEstimate(flops=int(flops), transcendentals=0,
                           bytes_accessed=int(bytes_accessed))

    out_tiles = pl.pallas_call(
        _conv_relu_mxu_kernel,
        out_shape=jax.ShapeDtypeStruct((B, n_tiles, tile_h, W, Cp), out_dtype),
        grid_spec=pltpu.PrefetchScalarGridSpec(
            num_scalar_prefetch=0,
            grid=(B, n_tiles),
            in_specs=[
                pl.BlockSpec((1, 1, tile_h + 2, W + 2, Cp),
                             lambda b, t: (b, t, 0, 0, 0)),
                # Grid-invariant weight block: constant index_map, not re-DMA'd.
                pl.BlockSpec((9 * Cp, Cp), lambda b, t: (0, 0)),
            ],
            out_specs=pl.BlockSpec((1, 1, tile_h, W, Cp),
                                   lambda b, t: (b, t, 0, 0, 0)),
            scratch_shapes=[pltpu.VMEM((tile_h * W, 9 * Cp), jnp.bfloat16)],
        ),
        compiler_params=pltpu.CompilerParams(
            dimension_semantics=("parallel", "parallel"),
            vmem_limit_bytes=vmem_limit),
        cost_estimate=cost,
    )(x_bands, w_flat)

    out_nhwc = out_tiles.reshape(B, Hp, W, Cp)[:, :H, :, :C]
    return jnp.transpose(out_nhwc, (0, 3, 1, 2))


# ---------------------------------------------------------------------------
# Small-C path (C <= _SMALL_C_MAX): VPU multiply-accumulates, no channel pad.
# ---------------------------------------------------------------------------
def _conv_relu_vpu_kernel(x_ref, w_ref, o_ref):
    # x_ref: (1, C, 1, TH+2, W+2)   input band (W on lanes), original dtype
    # w_ref: SMEM (C*C*9,) f32      flattened OIHW weights
    # o_ref: (1, C, 1, TH, W)
    C = o_ref.shape[1]
    TH, W = o_ref.shape[3], o_ref.shape[4]
    xs = [x_ref[0, ci, 0].astype(jnp.float32) for ci in range(C)]  # (TH+2, W+2)
    for co in range(C):
        acc = None                                     # no zero-init accumulator
        for ci in range(C):
            xc = xs[ci]
            for dy in range(3):
                for dx in range(3):
                    wv = w_ref[(co * C + ci) * 9 + dy * 3 + dx]
                    term = wv * xc[dy:dy + TH, dx:dx + W]
                    acc = term if acc is None else acc + term
        o_ref[0, co, 0] = jnp.maximum(acc, 0.0).astype(o_ref.dtype)


def _conv_relu_vpu(x_nchw, weight_oihw, tile_h, out_dtype):
    B, C, H, W = x_nchw.shape
    itemsize = jnp.dtype(x_nchw.dtype).itemsize

    bytes_per_out_row = C * (W + 2) * itemsize * 6
    tile_h = _pick_tile_h(H, bytes_per_out_row, _VPU_BAND_BUDGET, tile_h)
    Hp = _round_up(H, tile_h)
    n_tiles = Hp // tile_h

    # Spatial halo pad only (no channel padding, no layout change).
    x_pad = jnp.pad(x_nchw, ((0, 0), (0, 0), (1, 1 + Hp - H), (1, 1)))
    starts = jnp.arange(n_tiles) * tile_h
    row_idx = starts[:, None] + jnp.arange(tile_h + 2)[None, :]
    x_bands = x_pad[:, :, row_idx]           # (B, C, n_tiles, TILE_H+2, W+2)

    w_flat = weight_oihw.reshape(-1).astype(jnp.float32)   # (C*C*9,) in SMEM

    out_itemsize = jnp.dtype(out_dtype).itemsize
    in_blk = C * (tile_h + 2) * (W + 2) * itemsize
    out_blk = C * tile_h * W * out_itemsize
    vmem_est = 2 * in_blk + 2 * out_blk + 4 * C * tile_h * W * 4
    vmem_limit = int(min(max(2 * vmem_est, 16 << 20), 48 << 20))

    flops = 2 * 9 * B * Hp * W * C * C
    bytes_accessed = (x_bands.size * itemsize + w_flat.size * 4
                      + B * C * Hp * W * out_itemsize)
    cost = pl.CostEstimate(flops=int(flops), transcendentals=0,
                           bytes_accessed=int(bytes_accessed))

    out_tiles = pl.pallas_call(
        _conv_relu_vpu_kernel,
        out_shape=jax.ShapeDtypeStruct((B, C, n_tiles, tile_h, W), out_dtype),
        grid_spec=pltpu.PrefetchScalarGridSpec(
            num_scalar_prefetch=0,
            grid=(B, n_tiles),
            in_specs=[
                pl.BlockSpec((1, C, 1, tile_h + 2, W + 2),
                             lambda b, t: (b, 0, t, 0, 0)),
                pl.BlockSpec(memory_space=pltpu.MemorySpace.SMEM),
            ],
            out_specs=pl.BlockSpec((1, C, 1, tile_h, W),
                                   lambda b, t: (b, 0, t, 0, 0)),
        ),
        compiler_params=pltpu.CompilerParams(
            dimension_semantics=("parallel", "parallel"),
            vmem_limit_bytes=vmem_limit),
        cost_estimate=cost,
    )(x_bands, w_flat)

    return out_tiles.reshape(B, C, Hp, W)[:, :, :H, :]


# ---------------------------------------------------------------------------
# Public wrapper (PyTorch-compatible NCHW interface).
# ---------------------------------------------------------------------------
def conv_relu(x_nchw: jax.Array, weight_oihw: jax.Array, *,
              tile_h=None, out_dtype=None) -> jax.Array:
    """3x3 stride-1 pad-1 conv (no bias) + ReLU, matching nn.Conv2d semantics.

    x_nchw:      (B, C, H, W)
    weight_oihw: (C, C, 3, 3)  -- PyTorch OIHW layout
    out_dtype:   output dtype (default x.dtype); pass jnp.bfloat16 to halve
                 output HBM writeback when the consumer accepts bf16.
    """
    if out_dtype is None:
        out_dtype = x_nchw.dtype
    C = x_nchw.shape[1]
    if C <= _SMALL_C_MAX:
        return _conv_relu_vpu(x_nchw, weight_oihw, tile_h, out_dtype)
    return _conv_relu_mxu(x_nchw, weight_oihw, tile_h, out_dtype)


if __name__ == "__main__":
    key = jax.random.PRNGKey(0)

    def _ref(x, w):
        out = lax.conv_general_dilated(
            x, w, window_strides=(1, 1), padding=((1, 1), (1, 1)),
            dimension_numbers=("NCHW", "OIHW", "NCHW"))
        return jnp.maximum(out, 0.0)

    k1, k2, k3, k4 = jax.random.split(key, 4)

    # --- Test 1: module-sized shapes (C=4 -> small-C VPU path, f32, exact). ---
    B, C, H, W = 2, 4, 16, 16
    x = jax.random.normal(k1, (B, C, H, W), dtype=jnp.float32)
    weight = jax.random.normal(k2, (C, C, 3, 3), dtype=jnp.float32) * 0.1

    out = jax.block_until_ready(conv_relu(x, weight, tile_h=8))
    assert out.shape == (B, C, H, W)
    assert jnp.allclose(out, _ref(x, weight), atol=1e-4, rtol=1e-4)

    # --- Test 2: VDSR-sized channels (C=64 -> MXU path, bf16 operands). ---
    B2, C2, H2, W2 = 1, 64, 16, 16
    x2 = jax.random.normal(k3, (B2, C2, H2, W2), dtype=jnp.float32)
    w2 = jax.random.normal(k4, (C2, C2, 3, 3), dtype=jnp.float32) * 0.05

    out2 = jax.block_until_ready(conv_relu(x2, w2, tile_h=8))
    assert out2.shape == (B2, C2, H2, W2)
    # Loose vs exact-f32 reference (kernel uses bf16 operands)...
    assert jnp.allclose(out2, _ref(x2, w2), atol=5e-2, rtol=5e-2)
    # ...tight vs bf16-quantized-operand reference with f32 accumulation.
    x2q = x2.astype(jnp.bfloat16).astype(jnp.float32)
    w2q = w2.astype(jnp.bfloat16).astype(jnp.float32)
    assert jnp.allclose(out2, _ref(x2q, w2q), atol=2e-3, rtol=2e-3)

    print("KERNEL_OK")
</pallas_src>

<mosaic_0001>
module attributes {stable_mosaic.version = 11 : i64} {
  func.func @_conv_relu_vpu_kernel(%arg0: i32, %arg1: i32, %arg2: memref<1x4x1x10x18xf32, #tpu.memory_space<vmem>>, %arg3: memref<144xf32, #tpu.memory_space<smem>>, %arg4: memref<1x4x1x8x16xf32, #tpu.memory_space<vmem>>) attributes {dimension_semantics = [#tpu.dimension_semantics<parallel>, #tpu.dimension_semantics<parallel>], iteration_bounds = array<i64: 2, 2>, scalar_prefetch = 0 : i64, scratch_operands = 0 : i64, tpu.core_type = #tpu.core_type<tc>, window_params = [{transform_indices = @transform_0, window_bounds = array<i64: 1, 4, 1, 10, 18>}, {transform_indices = @transform_1, window_bounds = array<i64: 144>}, {transform_indices = @transform_2, window_bounds = array<i64: 1, 4, 1, 8, 16>}]} {
    %c0 = arith.constant 0 : index
    %c0_0 = arith.constant 0 : index
    %c0_1 = arith.constant 0 : index
    %c0_2 = arith.constant 0 : index
    %c0_3 = arith.constant 0 : index
    %0 = vector.load %arg2[%c0, %c0_0, %c0_1, %c0_2, %c0_3] : memref<1x4x1x10x18xf32, #tpu.memory_space<vmem>>, vector<1x1x1x10x18xf32>
    %1 = vector.shape_cast %0 : vector<1x1x1x10x18xf32> to vector<10x18xf32>
    %c0_4 = arith.constant 0 : index
    %c1 = arith.constant 1 : index
    %c0_5 = arith.constant 0 : index
    %c0_6 = arith.constant 0 : index
    %c0_7 = arith.constant 0 : index
    %2 = vector.load %arg2[%c0_4, %c1, %c0_5, %c0_6, %c0_7] : memref<1x4x1x10x18xf32, #tpu.memory_space<vmem>>, vector<1x1x1x10x18xf32>
    %3 = vector.shape_cast %2 : vector<1x1x1x10x18xf32> to vector<10x18xf32>
    %c0_8 = arith.constant 0 : index
    %c2 = arith.constant 2 : index
    %c0_9 = arith.constant 0 : index
    %c0_10 = arith.constant 0 : index
    %c0_11 = arith.constant 0 : index
    %4 = vector.load %arg2[%c0_8, %c2, %c0_9, %c0_10, %c0_11] : memref<1x4x1x10x18xf32, #tpu.memory_space<vmem>>, vector<1x1x1x10x18xf32>
    %5 = vector.shape_cast %4 : vector<1x1x1x10x18xf32> to vector<10x18xf32>
    %c0_12 = arith.constant 0 : index
    %c3 = arith.constant 3 : index
    %c0_13 = arith.constant 0 : index
    %c0_14 = arith.constant 0 : index
    %c0_15 = arith.constant 0 : index
    %6 = vector.load %arg2[%c0_12, %c3, %c0_13, %c0_14, %c0_15] : memref<1x4x1x10x18xf32, #tpu.memory_space<vmem>>, vector<1x1x1x10x18xf32>
    %7 = vector.shape_cast %6 : vector<1x1x1x10x18xf32> to vector<10x18xf32>
    %c0_16 = arith.constant 0 : index
    %8 = memref.load %arg3[%c0_16] : memref<144xf32, #tpu.memory_space<smem>>
    %9 = vector.extract_strided_slice %1 {offsets = [0, 0], sizes = [8, 16], strides = [1, 1]} : vector<10x18xf32> to vector<8x16xf32>
    %10 = vector.broadcast %8 : f32 to vector<8x16xf32>
    %11 = arith.mulf %10, %9 : vector<8x16xf32>
    %c1_17 = arith.constant 1 : index
    %12 = memref.load %arg3[%c1_17] : memref<144xf32, #tpu.memory_space<smem>>
    %13 = vector.extract_strided_slice %1 {offsets = [0, 1], sizes = [8, 16], strides = [1, 1]} : vector<10x18xf32> to vector<8x16xf32>
    %14 = vector.broadcast %12 : f32 to vector<8x16xf32>
    %15 = arith.mulf %14, %13 : vector<8x16xf32>
    %16 = arith.addf %11, %15 : vector<8x16xf32>
    %c2_18 = arith.constant 2 : index
    %17 = memref.load %arg3[%c2_18] : memref<144xf32, #tpu.memory_space<smem>>
    %18 = vector.extract_strided_slice %1 {offsets = [0, 2], sizes = [8, 16], strides = [1, 1]} : vector<10x18xf32> to vector<8x16xf32>
    %19 = vector.broadcast %17 : f32 to vector<8x16xf32>
    %20 = arith.mulf %19, %18 : vector<8x16xf32>
    %21 = arith.addf %16, %20 : vector<8x16xf32>
    %c3_19 = arith.constant 3 : index
    %22 = memref.load %arg3[%c3_19] : memref<144xf32, #tpu.memory_space<smem>>
    %23 = vector.extract_strided_slice %1 {offsets = [1, 0], sizes = [8, 16], strides = [1, 1]} : vector<10x18xf32> to vector<8x16xf32>
    %24 = vector.broadcast %22 : f32 to vector<8x16xf32>
    %25 = arith.mulf %24, %23 : vector<8x16xf32>
    %26 = arith.addf %21, %25 : vector<8x16xf32>
    %c4 = arith.constant 4 : index
    %27 = memref.load %arg3[%c4] : memref<144xf32, #tpu.memory_space<smem>>
    %28 = vector.extract_strided_slice %1 {offsets = [1, 1], sizes = [8, 16], strides = [1, 1]} : vector<10x18xf32> to vector<8x16xf32>
    %29 = vector.broadcast %27 : f32 to vector<8x16xf32>
    %30 = arith.mulf %29, %28 : vector<8x16xf32>
    %31 = arith.addf %26, %30 : vector<8x16xf32>
    %c5 = arith.constant 5 : index
    %32 = memref.load %arg3[%c5] : memref<144xf32, #tpu.memory_space<smem>>
    %33 = vector.extract_strided_slice %1 {offsets = [1, 2], sizes = [8, 16], strides = [1, 1]} : vector<10x18xf32> to vector<8x16xf32>
    %34 = vector.broadcast %32 : f32 to vector<8x16xf32>
    %35 = arith.mulf %34, %33 : vector<8x16xf32>
    %36 = arith.addf %31, %35 : vector<8x16xf32>
    %c6 = arith.constant 6 : index
    %37 = memref.load %arg3[%c6] : memref<144xf32, #tpu.memory_space<smem>>
    %38 = vector.extract_strided_slice %1 {offsets = [2, 0], sizes = [8, 16], strides = [1, 1]} : vector<10x18xf32> to vector<8x16xf32>
    %39 = vector.broadcast %37 : f32 to vector<8x16xf32>
    %40 = arith.mulf %39, %38 : vector<8x16xf32>
    %41 = arith.addf %36, %40 : vector<8x16xf32>
    %c7 = arith.constant 7 : index
    %42 = memref.load %arg3[%c7] : memref<144xf32, #tpu.memory_space<smem>>
    %43 = vector.extract_strided_slice %1 {offsets = [2, 1], sizes = [8, 16], strides = [1, 1]} : vector<10x18xf32> to vector<8x16xf32>
    %44 = vector.broadcast %42 : f32 to vector<8x16xf32>
    %45 = arith.mulf %44, %43 : vector<8x16xf32>
    %46 = arith.addf %41, %45 : vector<8x16xf32>
    %c8 = arith.constant 8 : index
    %47 = memref.load %arg3[%c8] : memref<144xf32, #tpu.memory_space<smem>>
    %48 = vector.extract_strided_slice %1 {offsets = [2, 2], sizes = [8, 16], strides = [1, 1]} : vector<10x18xf32> to vector<8x16xf32>
    %49 = vector.broadcast %47 : f32 to vector<8x16xf32>
    %50 = arith.mulf %49, %48 : vector<8x16xf32>
    %51 = arith.addf %46, %50 : vector<8x16xf32>
    %c9 = arith.constant 9 : index
    %52 = memref.load %arg3[%c9] : memref<144xf32, #tpu.memory_space<smem>>
    %53 = vector.extract_strided_slice %3 {offsets = [0, 0], sizes = [8, 16], strides = [1, 1]} : vector<10x18xf32> to vector<8x16xf32>
    %54 = vector.broadcast %52 : f32 to vector<8x16xf32>
    %55 = arith.mulf %54, %53 : vector<8x16xf32>
    %56 = arith.addf %51, %55 : vector<8x16xf32>
    %c10 = arith.constant 10 : index
    %57 = memref.load %arg3[%c10] : memref<144xf32, #tpu.memory_space<smem>>
    %58 = vector.extract_strided_slice %3 {offsets = [0, 1], sizes = [8, 16], strides = [1, 1]} : vector<10x18xf32> to vector<8x16xf32>
    %59 = vector.broadcast %57 : f32 to vector<8x16xf32>
    %60 = arith.mulf %59, %58 : vector<8x16xf32>
    %61 = arith.addf %56, %60 : vector<8x16xf32>
    %c11 = arith.constant 11 : index
    %62 = memref.load %arg3[%c11] : memref<144xf32, #tpu.memory_space<smem>>
    %63 = vector.extract_strided_slice %3 {offsets = [0, 2], sizes = [8, 16], strides = [1, 1]} : vector<10x18xf32> to vector<8x16xf32>
    %64 = vector.broadcast %62 : f32 to vector<8x16xf32>
    %65 = arith.mulf %64, %63 : vector<8x16xf32>
    %66 = arith.addf %61, %65 : vector<8x16xf32>
    %c12 = arith.constant 12 : index
    %67 = memref.load %arg3[%c12] : memref<144xf32, #tpu.memory_space<smem>>
    %68 = vector.extract_strided_slice %3 {offsets = [1, 0], sizes = [8, 16], strides = [1, 1]} : vector<10x18xf32> to vector<8x16xf32>
    %69 = vector.broadcast %67 : f32 to vector<8x16xf32>
    %70 = arith.mulf %69, %68 : vector<8x16xf32>
    %71 = arith.addf %66, %70 : vector<8x16xf32>
    %c13 = arith.constant 13 : index
    %72 = memref.load %arg3[%c13] : memref<144xf32, #tpu.memory_space<smem>>
    %73 = vector.extract_strided_slice %3 {offsets = [1, 1], sizes = [8, 16], strides = [1, 1]} : vector<10x18xf32> to vector<8x16xf32>
    %74 = vector.broadcast %72 : f32 to vector<8x16xf32>
    %75 = arith.mulf %74, %73 : vector<8x16xf32>
    %76 = arith.addf %71, %75 : vector<8x16xf32>
    %c14 = arith.constant 14 : index
    %77 = memref.load %arg3[%c14] : memref<144xf32, #tpu.memory_space<smem>>
    %78 = vector.extract_strided_slice %3 {offsets = [1, 2], sizes = [8, 16], strides = [1, 1]} : vector<10x18xf32> to vector<8x16xf32>
    %79 = vector.broadcast %77 : f32 to vector<8x16xf32>
    %80 = arith.mulf %79, %78 : vector<8x16xf32>
    %81 = arith.addf %76, %80 : vector<8x16xf32>
    %c15 = arith.constant 15 : index
    %82 = memref.load %arg3[%c15] : memref<144xf32, #tpu.memory_space<smem>>
    %83 = vector.extract_strided_slice %3 {offsets = [2, 0], sizes = [8, 16], strides = [1, 1]} : vector<10x18xf32> to vector<8x16xf32>
    %84 = vector.broadcast %82 : f32 to vector<8x16xf32>
    %85 = arith.mulf %84, %83 : vector<8x16xf32>
    %86 = arith.addf %81, %85 : vector<8x16xf32>
    %c16 = arith.constant 16 : index
    %87 = memref.load %arg3[%c16] : memref<144xf32, #tpu.memory_space<smem>>
    %88 = vector.extract_strided_slice %3 {offsets = [2, 1], sizes = [8, 16], strides = [1, 1]} : vector<10x18xf32> to vector<8x16xf32>
    %89 = vector.broadcast %87 : f32 to vector<8x16xf32>
    %90 = arith.mulf %89, %88 : vector<8x16xf32>
    %91 = arith.addf %86, %90 : vector<8x16xf32>
    %c17 = arith.constant 17 : index
    %92 = memref.load %arg3[%c17] : memref<144xf32, #tpu.memory_space<smem>>
    %93 = vector.extract_strided_slice %3 {offsets = [2, 2], sizes = [8, 16], strides = [1, 1]} : vector<10x18xf32> to vector<8x16xf32>
    %94 = vector.broadcast %92 : f32 to vector<8x16xf32>
    %95 = arith.mulf %94, %93 : vector<8x16xf32>
    %96 = arith.addf %91, %95 : vector<8x16xf32>
    %c18 = arith.constant 18 : index
    %97 = memref.load %arg3[%c18] : memref<144xf32, #tpu.memory_space<smem>>
    %98 = vector.extract_strided_slice %5 {offsets = [0, 0], sizes = [8, 16], strides = [1, 1]} : vector<10x18xf32> to vector<8x16xf32>
    %99 = vector.broadcast %97 : f32 to vector<8x16xf32>
    %100 = arith.mulf %99, %98 : vector<8x16xf32>
    %101 = arith.addf %96, %100 : vector<8x16xf32>
    %c19 = arith.constant 19 : index
    %102 = memref.load %arg3[%c19] : memref<144xf32, #tpu.memory_space<smem>>
    %103 = vector.extract_strided_slice %5 {offsets = [0, 1], sizes = [8, 16], strides = [1, 1]} : vector<10x18xf32> to vector<8x16xf32>
    %104 = vector.broadcast %102 : f32 to vector<8x16xf32>
    %105 = arith.mulf %104, %103 : vector<8x16xf32>
    %106 = arith.addf %101, %105 : vector<8x16xf32>
    %c20 = arith.constant 20 : index
    %107 = memref.load %arg3[%c20] : memref<144xf32, #tpu.memory_space<smem>>
    %108 = vector.extract_strided_slice %5 {offsets = [0, 2], sizes = [8, 16], strides = [1, 1]} : vector<10x18xf32> to vector<8x16xf32>
    %109 = vector.broadcast %107 : f32 to vector<8x16xf32>
    %110 = arith.mulf %109, %108 : vector<8x16xf32>
    %111 = arith.addf %106, %110 : vector<8x16xf32>
    %c21 = arith.constant 21 : index
    %112 = memref.load %arg3[%c21] : memref<144xf32, #tpu.memory_space<smem>>
    %113 = vector.extract_strided_slice %5 {offsets = [1, 0], sizes = [8, 16], strides = [1, 1]} : vector<10x18xf32> to vector<8x16xf32>
    %114 = vector.broadcast %112 : f32 to vector<8x16xf32>
    %115 = arith.mulf %114, %113 : vector<8x16xf32>
    %116 = arith.addf %111, %115 : vector<8x16xf32>
    %c22 = arith.constant 22 : index
    %117 = memref.load %arg3[%c22] : memref<144xf32, #tpu.memory_space<smem>>
    %118 = vector.extract_strided_slice %5 {offsets = [1, 1], sizes = [8, 16], strides = [1, 1]} : vector<10x18xf32> to vector<8x16xf32>
    %119 = vector.broadcast %117 : f32 to vector<8x16xf32>
    %120 = arith.mulf %119, %118 : vector<8x16xf32>
    %121 = arith.addf %116, %120 : vector<8x16xf32>
    %c23 = arith.constant 23 : index
    %122 = memref.load %arg3[%c23] : memref<144xf32, #tpu.memory_space<smem>>
    %123 = vector.extract_strided_slice %5 {offsets = [1, 2], sizes = [8, 16], strides = [1, 1]} : vector<10x18xf32> to vector<8x16xf32>
    %124 = vector.broadcast %122 : f32 to vector<8x16xf32>
    %125 = arith.mulf %124, %123 : vector<8x16xf32>
    %126 = arith.addf %121, %125 : vector<8x16xf32>
    %c24 = arith.constant 24 : index
    %127 = memref.load %arg3[%c24] : memref<144xf32, #tpu.memory_space<smem>>
    %128 = vector.extract_strided_slice %5 {offsets = [2, 0], sizes = [8, 16], strides = [1, 1]} : vector<10x18xf32> to vector<8x16xf32>
    %129 = vector.broadcast %127 : f32 to vector<8x16xf32>
    %130 = arith.mulf %129, %128 : vector<8x16xf32>
    %131 = arith.addf %126, %130 : vector<8x16xf32>
    %c25 = arith.constant 25 : index
    %132 = memref.load %arg3[%c25] : memref<144xf32, #tpu.memory_space<smem>>
    %133 = vector.extract_strided_slice %5 {offsets = [2, 1], sizes = [8, 16], strides = [1, 1]} : vector<10x18xf32> to vector<8x16xf32>
    %134 = vector.broadcast %132 : f32 to vector<8x16xf32>
    %135 = arith.mulf %134, %133 : vector<8x16xf32>
    %136 = arith.addf %131, %135 : vector<8x16xf32>
    %c26 = arith.constant 26 : index
    %137 = memref.load %arg3[%c26] : memref<144xf32, #tpu.memory_space<smem>>
    %138 = vector.extract_strided_slice %5 {offsets = [2, 2], sizes = [8, 16], strides = [1, 1]} : vector<10x18xf32> to vector<8x16xf32>
    %139 = vector.broadcast %137 : f32 to vector<8x16xf32>
    %140 = arith.mulf %139, %138 : vector<8x16xf32>
    %141 = arith.addf %136, %140 : vector<8x16xf32>
    %c27 = arith.constant 27 : index
    %142 = memref.load %arg3[%c27] : memref<144xf32, #tpu.memory_space<smem>>
    %143 = vector.extract_strided_slice %7 {offsets = [0, 0], sizes = [8, 16], strides = [1, 1]} : vector<10x18xf32> to vector<8x16xf32>
    %144 = vector.broadcast %142 : f32 to vector<8x16xf32>
    %145 = arith.mulf %144, %143 : vector<8x16xf32>
    %146 = arith.addf %141, %145 : vector<8x16xf32>
    %c28 = arith.constant 28 : index
    %147 = memref.load %arg3[%c28] : memref<144xf32, #tpu.memory_space<smem>>
    %148 = vector.extract_strided_slice %7 {offsets = [0, 1], sizes = [8, 16], strides = [1, 1]} : vector<10x18xf32> to vector<8x16xf32>
    %149 = vector.broadcast %147 : f32 to vector<8x16xf32>
    %150 = arith.mulf %149, %148 : vector<8x16xf32>
    %151 = arith.addf %146, %150 : vector<8x16xf32>
    %c29 = arith.constant 29 : index
    %152 = memref.load %arg3[%c29] : memref<144xf32, #tpu.memory_space<smem>>
    %153 = vector.extract_strided_slice %7 {offsets = [0, 2], sizes = [8, 16], strides = [1, 1]} : vector<10x18xf32> to vector<8x16xf32>
    %154 = vector.broadcast %152 : f32 to vector<8x16xf32>
    %155 = arith.mulf %154, %153 : vector<8x16xf32>
    %156 = arith.addf %151, %155 : vector<8x16xf32>
    %c30 = arith.constant 30 : index
    %157 = memref.load %arg3[%c30] : memref<144xf32, #tpu.memory_space<smem>>
    %158 = vector.extract_strided_slice %7 {offsets = [1, 0], sizes = [8, 16], strides = [1, 1]} : vector<10x18xf32> to vector<8x16xf32>
    %159 = vector.broadcast %157 : f32 to vector<8x16xf32>
    %160 = arith.mulf %159, %158 : vector<8x16xf32>
    %161 = arith.addf %156, %160 : vector<8x16xf32>
    %c31 = arith.constant 31 : index
    %162 = memref.load %arg3[%c31] : memref<144xf32, #tpu.memory_space<smem>>
    %163 = vector.extract_strided_slice %7 {offsets = [1, 1], sizes = [8, 16], strides = [1, 1]} : vector<10x18xf32> to vector<8x16xf32>
    %164 = vector.broadcast %162 : f32 to vector<8x16xf32>
    %165 = arith.mulf %164, %163 : vector<8x16xf32>
    %166 = arith.addf %161, %165 : vector<8x16xf32>
    %c32 = arith.constant 32 : index
    %167 = memref.load %arg3[%c32] : memref<144xf32, #tpu.memory_space<smem>>
    %168 = vector.extract_strided_slice %7 {offsets = [1, 2], sizes = [8, 16], strides = [1, 1]} : vector<10x18xf32> to vector<8x16xf32>
    %169 = vector.broadcast %167 : f32 to vector<8x16xf32>
    %170 = arith.mulf %169, %168 : vector<8x16xf32>
    %171 = arith.addf %166, %170 : vector<8x16xf32>
    %c33 = arith.constant 33 : index
    %172 = memref.load %arg3[%c33] : memref<144xf32, #tpu.memory_space<smem>>
    %173 = vector.extract_strided_slice %7 {offsets = [2, 0], sizes = [8, 16], strides = [1, 1]} : vector<10x18xf32> to vector<8x16xf32>
    %174 = vector.broadcast %172 : f32 to vector<8x16xf32>
    %175 = arith.mulf %174, %173 : vector<8x16xf32>
    %176 = arith.addf %171, %175 : vector<8x16xf32>
    %c34 = arith.constant 34 : index
    %177 = memref.load %arg3[%c34] : memref<144xf32, #tpu.memory_space<smem>>
    %178 = vector.extract_strided_slice %7 {offsets = [2, 1], sizes = [8, 16], strides = [1, 1]} : vector<10x18xf32> to vector<8x16xf32>
    %179 = vector.broadcast %177 : f32 to vector<8x16xf32>
    %180 = arith.mulf %179, %178 : vector<8x16xf32>
    %181 = arith.addf %176, %180 : vector<8x16xf32>
    %c35 = arith.constant 35 : index
    %182 = memref.load %arg3[%c35] : memref<144xf32, #tpu.memory_space<smem>>
    %183 = vector.extract_strided_slice %7 {offsets = [2, 2], sizes = [8, 16], strides = [1, 1]} : vector<10x18xf32> to vector<8x16xf32>
    %184 = vector.broadcast %182 : f32 to vector<8x16xf32>
    %185 = arith.mulf %184, %183 : vector<8x16xf32>
    %186 = arith.addf %181, %185 : vector<8x16xf32>
    %cst = arith.constant 0.000000e+00 : f32
    %187 = vector.broadcast %cst : f32 to vector<8x16xf32>
    %188 = arith.maximumf %186, %187 : vector<8x16xf32>
    %c0_20 = arith.constant 0 : index
    %c0_21 = arith.constant 0 : index
    %c0_22 = arith.constant 0 : index
    %c0_23 = arith.constant 0 : index
    %c0_24 = arith.constant 0 : index
    %189 = vector.load %arg4[%c0_20, %c0_21, %c0_22, %c0_23, %c0_24] : memref<1x4x1x8x16xf32, #tpu.memory_space<vmem>>, vector<1x1x1x8x16xf32>
    %190 = vector.shape_cast %189 : vector<1x1x1x8x16xf32> to vector<8x16xf32>
    %191 = vector.shape_cast %188 : vector<8x16xf32> to vector<1x1x1x8x16xf32>
    tpu.vector_store %arg4[%c0_20, %c0_21, %c0_22, %c0_23, %c0_24], %191 {strides = array<i32>} : memref<1x4x1x8x16xf32, #tpu.memory_space<vmem>>, vector<1x1x1x8x16xf32>,
    %c36 = arith.constant 36 : index
    %192 = memref.load %arg3[%c36] : memref<144xf32, #tpu.memory_space<smem>>
    %193 = vector.extract_strided_slice %1 {offsets = [0, 0], sizes = [8, 16], strides = [1, 1]} : vector<10x18xf32> to vector<8x16xf32>
    %194 = vector.broadcast %192 : f32 to vector<8x16xf32>
    %195 = arith.mulf %194, %193 : vector<8x16xf32>
    %c37 = arith.constant 37 : index
    %196 = memref.load %arg3[%c37] : memref<144xf32, #tpu.memory_space<smem>>
    %197 = vector.extract_strided_slice %1 {offsets = [0, 1], sizes = [8, 16], strides = [1, 1]} : vector<10x18xf32> to vector<8x16xf32>
    %198 = vector.broadcast %196 : f32 to vector<8x16xf32>
    %199 = arith.mulf %198, %197 : vector<8x16xf32>
    %200 = arith.addf %195, %199 : vector<8x16xf32>
    %c38 = arith.constant 38 : index
    %201 = memref.load %arg3[%c38] : memref<144xf32, #tpu.memory_space<smem>>
    %202 = vector.extract_strided_slice %1 {offsets = [0, 2], sizes = [8, 16], strides = [1, 1]} : vector<10x18xf32> to vector<8x16xf32>
    %203 = vector.broadcast %201 : f32 to vector<8x16xf32>
    %204 = arith.mulf %203, %202 : vector<8x16xf32>
    %205 = arith.addf %200, %204 : vector<8x16xf32>
    %c39 = arith.constant 39 : index
    %206 = memref.load %arg3[%c39] : memref<144xf32, #tpu.memory_space<smem>>
    %207 = vector.extract_strided_slice %1 {offsets = [1, 0], sizes = [8, 16], strides = [1, 1]} : vector<10x18xf32> to vector<8x16xf32>
    %208 = vector.broadcast %206 : f32 to vector<8x16xf32>
    %209 = arith.mulf %208, %207 : vector<8x16xf32>
    %210 = arith.addf %205, %209 : vector<8x16xf32>
    %c40 = arith.constant 40 : index
    %211 = memref.load %arg3[%c40] : memref<144xf32, #tpu.memory_space<smem>>
    %212 = vector.extract_strided_slice %1 {offsets = [1, 1], sizes = [8, 16], strides = [1, 1]} : vector<10x18xf32> to vector<8x16xf32>
    %213 = vector.broadcast %211 : f32 to vector<8x16xf32>
    %214 = arith.mulf %213, %212 : vector<8x16xf32>
    %215 = arith.addf %210, %214 : vector<8x16xf32>
    %c41 = arith.constant 41 : index
    %216 = memref.load %arg3[%c41] : memref<144xf32, #tpu.memory_space<smem>>
    %217 = vector.extract_strided_slice %1 {offsets = [1, 2], sizes = [8, 16], strides = [1, 1]} : vector<10x18xf32> to vector<8x16xf32>
    %218 = vector.broadcast %216 : f32 to vector<8x16xf32>
    %219 = arith.mulf %218, %217 : vector<8x16xf32>
    %220 = arith.addf %215, %219 : vector<8x16xf32>
    %c42 = arith.constant 42 : index
    %221 = memref.load %arg3[%c42] : memref<144xf32, #tpu.memory_space<smem>>
    %222 = vector.extract_strided_slice %1 {offsets = [2, 0], sizes = [8, 16], strides = [1, 1]} : vector<10x18xf32> to vector<8x16xf32>
    %223 = vector.broadcast %221 : f32 to vector<8x16xf32>
    %224 = arith.mulf %223, %222 : vector<8x16xf32>
    %225 = arith.addf %220, %224 : vector<8x16xf32>
    %c43 = arith.constant 43 : index
    %226 = memref.load %arg3[%c43] : memref<144xf32, #tpu.memory_space<smem>>
    %227 = vector.extract_strided_slice %1 {offsets = [2, 1], sizes = [8, 16], strides = [1, 1]} : vector<10x18xf32> to vector<8x16xf32>
    %228 = vector.broadcast %226 : f32 to vector<8x16xf32>
    %229 = arith.mulf %228, %227 : vector<8x16xf32>
    %230 = arith.addf %225, %229 : vector<8x16xf32>
    %c44 = arith.constant 44 : index
    %231 = memref.load %arg3[%c44] : memref<144xf32, #tpu.memory_space<smem>>
    %232 = vector.extract_strided_slice %1 {offsets = [2, 2], sizes = [8, 16], strides = [1, 1]} : vector<10x18xf32> to vector<8x16xf32>
    %233 = vector.broadcast %231 : f32 to vector<8x16xf32>
    %234 = arith.mulf %233, %232 : vector<8x16xf32>
    %235 = arith.addf %230, %234 : vector<8x16xf32>
    %c45 = arith.constant 45 : index
    %236 = memref.load %arg3[%c45] : memref<144xf32, #tpu.memory_space<smem>>
    %237 = vector.extract_strided_slice %3 {offsets = [0, 0], sizes = [8, 16], strides = [1, 1]} : vector<10x18xf32> to vector<8x16xf32>
    %238 = vector.broadcast %236 : f32 to vector<8x16xf32>
    %239 = arith.mulf %238, %237 : vector<8x16xf32>
    %240 = arith.addf %235, %239 : vector<8x16xf32>
    %c46 = arith.constant 46 : index
    %241 = memref.load %arg3[%c46] : memref<144xf32, #tpu.memory_space<smem>>
    %242 = vector.extract_strided_slice %3 {offsets = [0, 1], sizes = [8, 16], strides = [1, 1]} : vector<10x18xf32> to vector<8x16xf32>
    %243 = vector.broadcast %241 : f32 to vector<8x16xf32>
    %244 = arith.mulf %243, %242 : vector<8x16xf32>
    %245 = arith.addf %240, %244 : vector<8x16xf32>
    %c47 = arith.constant 47 : index
    %246 = memref.load %arg3[%c47] : memref<144xf32, #tpu.memory_space<smem>>
    %247 = vector.extract_strided_slice %3 {offsets = [0, 2], sizes = [8, 16], strides = [1, 1]} : vector<10x18xf32> to vector<8x16xf32>
    %248 = vector.broadcast %246 : f32 to vector<8x16xf32>
    %249 = arith.mulf %248, %247 : vector<8x16xf32>
    %250 = arith.addf %245, %249 : vector<8x16xf32>
    %c48 = arith.constant 48 : index
    %251 = memref.load %arg3[%c48] : memref<144xf32, #tpu.memory_space<smem>>
    %252 = vector.extract_strided_slice %3 {offsets = [1, 0], sizes = [8, 16], strides = [1, 1]} : vector<10x18xf32> to vector<8x16xf32>
    %253 = vector.broadcast %251 : f32 to vector<8x16xf32>
    %254 = arith.mulf %253, %252 : vector<8x16xf32>
    %255 = arith.addf %250, %254 : vector<8x16xf32>
    %c49 = arith.constant 49 : index
    %256 = memref.load %arg3[%c49] : memref<144xf32, #tpu.memory_space<smem>>
    %257 = vector.extract_strided_slice %3 {offsets = [1, 1], sizes = [8, 16], strides = [1, 1]} : vector<10x18xf32> to vector<8x16xf32>
    %258 = vector.broadcast %256 : f32 to vector<8x16xf32>
    %259 = arith.mulf %258, %257 : vector<8x16xf32>
    %260 = arith.addf %255, %259 : vector<8x16xf32>
    %c50 = arith.constant 50 : index
    %261 = memref.load %arg3[%c50] : memref<144xf32, #tpu.memory_space<smem>>
    %262 = vector.extract_strided_slice %3 {offsets = [1, 2], sizes = [8, 16], strides = [1, 1]} : vector<10x18xf32> to vector<8x16xf32>
    %263 = vector.broadcast %261 : f32 to vector<8x16xf32>
    %264 = arith.mulf %263, %262 : vector<8x16xf32>
    %265 = arith.addf %260, %264 : vector<8x16xf32>
    %c51 = arith.constant 51 : index
    %266 = memref.load %arg3[%c51] : memref<144xf32, #tpu.memory_space<smem>>
    %267 = vector.extract_strided_slice %3 {offsets = [2, 0], sizes = [8, 16], strides = [1, 1]} : vector<10x18xf32> to vector<8x16xf32>
    %268 = vector.broadcast %266 : f32 to vector<8x16xf32>
    %269 = arith.mulf %268, %267 : vector<8x16xf32>
    %270 = arith.addf %265, %269 : vector<8x16xf32>
    %c52 = arith.constant 52 : index
    %271 = memref.load %arg3[%c52] : memref<144xf32, #tpu.memory_space<smem>>
    %272 = vector.extract_strided_slice %3 {offsets = [2, 1], sizes = [8, 16], strides = [1, 1]} : vector<10x18xf32> to vector<8x16xf32>
    %273 = vector.broadcast %271 : f32 to vector<8x16xf32>
    %274 = arith.mulf %273, %272 : vector<8x16xf32>
    %275 = arith.addf %270, %274 : vector<8x16xf32>
    %c53 = arith.constant 53 : index
    %276 = memref.load %arg3[%c53] : memref<144xf32, #tpu.memory_space<smem>>
    %277 = vector.extract_strided_slice %3 {offsets = [2, 2], sizes = [8, 16], strides = [1, 1]} : vector<10x18xf32> to vector<8x16xf32>
    %278 = vector.broadcast %276 : f32 to vector<8x16xf32>
    %279 = arith.mulf %278, %277 : vector<8x16xf32>
    %280 = arith.addf %275, %279 : vector<8x16xf32>
    %c54 = arith.constant 54 : index
    %281 = memref.load %arg3[%c54] : memref<144xf32, #tpu.memory_space<smem>>
    %282 = vector.extract_strided_slice %5 {offsets = [0, 0], sizes = [8, 16], strides = [1, 1]} : vector<10x18xf32> to vector<8x16xf32>
    %283 = vector.broadcast %281 : f32 to vector<8x16xf32>
    %284 = arith.mulf %283, %282 : vector<8x16xf32>
    %285 = arith.addf %280, %284 : vector<8x16xf32>
    %c55 = arith.constant 55 : index
    %286 = memref.load %arg3[%c55] : memref<144xf32, #tpu.memory_space<smem>>
    %287 = vector.extract_strided_slice %5 {offsets = [0, 1], sizes = [8, 16], strides = [1, 1]} : vector<10x18xf32> to vector<8x16xf32>
    %288 = vector.broadcast %286 : f32 to vector<8x16xf32>
    %289 = arith.mulf %288, %287 : vector<8x16xf32>
    %290 = arith.addf %285, %289 : vector<8x16xf32>
    %c56 = arith.constant 56 : index
    %291 = memref.load %arg3[%c56] : memref<144xf32, #tpu.memory_space<smem>>
    %292 = vector.extract_strided_slice %5 {offsets = [0, 2], sizes = [8, 16], strides = [1, 1]} : vector<10x18xf32> to vector<8x16xf32>
    %293 = vector.broadcast %291 : f32 to vector<8x16xf32>
    %294 = arith.mulf %293, %292 : vector<8x16xf32>
    %295 = arith.addf %290, %294 : vector<8x16xf32>
    %c57 = arith.constant 57 : index
    %296 = memref.load %arg3[%c57] : memref<144xf32, #tpu.memory_space<smem>>
    %297 = vector.extract_strided_slice %5 {offsets = [1, 0], sizes = [8, 16], strides = [1, 1]} : vector<10x18xf32> to vector<8x16xf32>
    %298 = vector.broadcast %296 : f32 to vector<8x16xf32>
    %299 = arith.mulf %298, %297 : vector<8x16xf32>
    %300 = arith.addf %295, %299 : vector<8x16xf32>
    %c58 = arith.constant 58 : index
    %301 = memref.load %arg3[%c58] : memref<144xf32, #tpu.memory_space<smem>>
    %302 = vector.extract_strided_slice %5 {offsets = [1, 1], sizes = [8, 16], strides = [1, 1]} : vector<10x18xf32> to vector<8x16xf32>
    %303 = vector.broadcast %301 : f32 to vector<8x16xf32>
    %304 = arith.mulf %303, %302 : vector<8x16xf32>
    %305 = arith.addf %300, %304 : vector<8x16xf32>
    %c59 = arith.constant 59 : index
    %306 = memref.load %arg3[%c59] : memref<144xf32, #tpu.memory_space<smem>>
    %307 = vector.extract_strided_slice %5 {offsets = [1, 2], sizes = [8, 16], strides = [1, 1]} : vector<10x18xf32> to vector<8x16xf32>
    %308 = vector.broadcast %306 : f32 to vector<8x16xf32>
    %309 = arith.mulf %308, %307 : vector<8x16xf32>
    %310 = arith.addf %305, %309 : vector<8x16xf32>
    %c60 = arith.constant 60 : index
    %311 = memref.load %arg3[%c60] : memref<144xf32, #tpu.memory_space<smem>>
    %312 = vector.extract_strided_slice %5 {offsets = [2, 0], sizes = [8, 16], strides = [1, 1]} : vector<10x18xf32> to vector<8x16xf32>
    %313 = vector.broadcast %311 : f32 to vector<8x16xf32>
    %314 = arith.mulf %313, %312 : vector<8x16xf32>
    %315 = arith.addf %310, %314 : vector<8x16xf32>
    %c61 = arith.constant 61 : index
    %316 = memref.load %arg3[%c61] : memref<144xf32, #tpu.memory_space<smem>>
    %317 = vector.extract_strided_slice %5 {offsets = [2, 1], sizes = [8, 16], strides = [1, 1]} : vector<10x18xf32> to vector<8x16xf32>
    %318 = vector.broadcast %316 : f32 to vector<8x16xf32>
    %319 = arith.mulf %318, %317 : vector<8x16xf32>
    %320 = arith.addf %315, %319 : vector<8x16xf32>
    %c62 = arith.constant 62 : index
    %321 = memref.load %arg3[%c62] : memref<144xf32, #tpu.memory_space<smem>>
    %322 = vector.extract_strided_slice %5 {offsets = [2, 2], sizes = [8, 16], strides = [1, 1]} : vector<10x18xf32> to vector<8x16xf32>
    %323 = vector.broadcast %321 : f32 to vector<8x16xf32>
    %324 = arith.mulf %323, %322 : vector<8x16xf32>
    %325 = arith.addf %320, %324 : vector<8x16xf32>
    %c63 = arith.constant 63 : index
    %326 = memref.load %arg3[%c63] : memref<144xf32, #tpu.memory_space<smem>>
    %327 = vector.extract_strided_slice %7 {offsets = [0, 0], sizes = [8, 16], strides = [1, 1]} : vector<10x18xf32> to vector<8x16xf32>
    %328 = vector.broadcast %326 : f32 to vector<8x16xf32>
    %329 = arith.mulf %328, %327 : vector<8x16xf32>
    %330 = arith.addf %325, %329 : vector<8x16xf32>
    %c64 = arith.constant 64 : index
    %331 = memref.load %arg3[%c64] : memref<144xf32, #tpu.memory_space<smem>>
    %332 = vector.extract_strided_slice %7 {offsets = [0, 1], sizes = [8, 16], strides = [1, 1]} : vector<10x18xf32> to vector<8x16xf32>
    %333 = vector.broadcast %331 : f32 to vector<8x16xf32>
    %334 = arith.mulf %333, %332 : vector<8x16xf32>
    %335 = arith.addf %330, %334 : vector<8x16xf32>
    %c65 = arith.constant 65 : index
    %336 = memref.load %arg3[%c65] : memref<144xf32, #tpu.memory_space<smem>>
    %337 = vector.extract_strided_slice %7 {offsets = [0, 2], sizes = [8, 16], strides = [1, 1]} : vector<10x18xf32> to vector<8x16xf32>
    %338 = vector.broadcast %336 : f32 to vector<8x16xf32>
    %339 = arith.mulf %338, %337 : vector<8x16xf32>
    %340 = arith.addf %335, %339 : vector<8x16xf32>
    %c66 = arith.constant 66 : index
    %341 = memref.load %arg3[%c66] : memref<144xf32, #tpu.memory_space<smem>>
    %342 = vector.extract_strided_slice %7 {offsets = [1, 0], sizes = [8, 16], strides = [1, 1]} : vector<10x18xf32> to vector<8x16xf32>
    %343 = vector.broadcast %341 : f32 to vector<8x16xf32>
    %344 = arith.mulf %343, %342 : vector<8x16xf32>
    %345 = arith.addf %340, %344 : vector<8x16xf32>
    %c67 = arith.constant 67 : index
    %346 = memref.load %arg3[%c67] : memref<144xf32, #tpu.memory_space<smem>>
    %347 = vector.extract_strided_slice %7 {offsets = [1, 1], sizes = [8, 16], strides = [1, 1]} : vector<10x18xf32> to vector<8x16xf32>
    %348 = vector.broadcast %346 : f32 to vector<8x16xf32>
    %349 = arith.mulf %348, %347 : vector<8x16xf32>
    %350 = arith.addf %345, %349 : vector<8x16xf32>
    %c68 = arith.constant 68 : index
    %351 = memref.load %arg3[%c68] : memref<144xf32, #tpu.memory_space<smem>>
    %352 = vector.extract_strided_slice %7 {offsets = [1, 2], sizes = [8, 16], strides = [1, 1]} : vector<10x18xf32> to vector<8x16xf32>
    %353 = vector.broadcast %351 : f32 to vector<8x16xf32>
    %354 = arith.mulf %353, %352 : vector<8x16xf32>
    %355 = arith.addf %350, %354 : vector<8x16xf32>
    %c69 = arith.constant 69 : index
    %356 = memref.load %arg3[%c69] : memref<144xf32, #tpu.memory_space<smem>>
    %357 = vector.extract_strided_slice %7 {offsets = [2, 0], sizes = [8, 16], strides = [1, 1]} : vector<10x18xf32> to vector<8x16xf32>
    %358 = vector.broadcast %356 : f32 to vector<8x16xf32>
    %359 = arith.mulf %358, %357 : vector<8x16xf32>
    %360 = arith.addf %355, %359 : vector<8x16xf32>
    %c70 = arith.constant 70 : index
    %361 = memref.load %arg3[%c70] : memref<144xf32, #tpu.memory_space<smem>>
    %362 = vector.extract_strided_slice %7 {offsets = [2, 1], sizes = [8, 16], strides = [1, 1]} : vector<10x18xf32> to vector<8x16xf32>
    %363 = vector.broadcast %361 : f32 to vector<8x16xf32>
    %364 = arith.mulf %363, %362 : vector<8x16xf32>
    %365 = arith.addf %360, %364 : vector<8x16xf32>
    %c71 = arith.constant 71 : index
    %366 = memref.load %arg3[%c71] : memref<144xf32, #tpu.memory_space<smem>>
    %367 = vector.extract_strided_slice %7 {offsets = [2, 2], sizes = [8, 16], strides = [1, 1]} : vector<10x18xf32> to vector<8x16xf32>
    %368 = vector.broadcast %366 : f32 to vector<8x16xf32>
    %369 = arith.mulf %368, %367 : vector<8x16xf32>
    %370 = arith.addf %365, %369 : vector<8x16xf32>
    %cst_25 = arith.constant 0.000000e+00 : f32
    %371 = vector.broadcast %cst_25 : f32 to vector<8x16xf32>
    %372 = arith.maximumf %370, %371 : vector<8x16xf32>
    %c0_26 = arith.constant 0 : index
    %c1_27 = arith.constant 1 : index
    %c0_28 = arith.constant 0 : index
    %c0_29 = arith.constant 0 : index
    %c0_30 = arith.constant 0 : index
    %373 = vector.load %arg4[%c0_26, %c1_27, %c0_28, %c0_29, %c0_30] : memref<1x4x1x8x16xf32, #tpu.memory_space<vmem>>, vector<1x1x1x8x16xf32>
    %374 = vector.shape_cast %373 : vector<1x1x1x8x16xf32> to vector<8x16xf32>
    %375 = vector.shape_cast %372 : vector<8x16xf32> to vector<1x1x1x8x16xf32>
    tpu.vector_store %arg4[%c0_26, %c1_27, %c0_28, %c0_29, %c0_30], %375 {strides = array<i32>} : memref<1x4x1x8x16xf32, #tpu.memory_space<vmem>>, vector<1x1x1x8x16xf32>,
    %c72 = arith.constant 72 : index
    %376 = memref.load %arg3[%c72] : memref<144xf32, #tpu.memory_space<smem>>
    %377 = vector.extract_strided_slice %1 {offsets = [0, 0], sizes = [8, 16], strides = [1, 1]} : vector<10x18xf32> to vector<8x16xf32>
    %378 = vector.broadcast %376 : f32 to vector<8x16xf32>
    %379 = arith.mulf %378, %377 : vector<8x16xf32>
    %c73 = arith.constant 73 : index
    %380 = memref.load %arg3[%c73] : memref<144xf32, #tpu.memory_space<smem>>
    %381 = vector.extract_strided_slice %1 {offsets = [0, 1], sizes = [8, 16], strides = [1, 1]} : vector<10x18xf32> to vector<8x16xf32>
    %382 = vector.broadcast %380 : f32 to vector<8x16xf32>
    %383 = arith.mulf %382, %381 : vector<8x16xf32>
    %384 = arith.addf %379, %383 : vector<8x16xf32>
    %c74 = arith.constant 74 : index
    %385 = memref.load %arg3[%c74] : memref<144xf32, #tpu.memory_space<smem>>
    %386 = vector.extract_strided_slice %1 {offsets = [0, 2], sizes = [8, 16], strides = [1, 1]} : vector<10x18xf32> to vector<8x16xf32>
    %387 = vector.broadcast %385 : f32 to vector<8x16xf32>
    %388 = arith.mulf %387, %386 : vector<8x16xf32>
    %389 = arith.addf %384, %388 : vector<8x16xf32>
    %c75 = arith.constant 75 : index
    %390 = memref.load %arg3[%c75] : memref<144xf32, #tpu.memory_space<smem>>
    %391 = vector.extract_strided_slice %1 {offsets = [1, 0], sizes = [8, 16], strides = [1, 1]} : vector<10x18xf32> to vector<8x16xf32>
    %392 = vector.broadcast %390 : f32 to vector<8x16xf32>
    %393 = arith.mulf %392, %391 : vector<8x16xf32>
    %394 = arith.addf %389, %393 : vector<8x16xf32>
    %c76 = arith.constant 76 : index
    %395 = memref.load %arg3[%c76] : memref<144xf32, #tpu.memory_space<smem>>
    %396 = vector.extract_strided_slice %1 {offsets = [1, 1], sizes = [8, 16], strides = [1, 1]} : vector<10x18xf32> to vector<8x16xf32>
    %397 = vector.broadcast %395 : f32 to vector<8x16xf32>
    %398 = arith.mulf %397, %396 : vector<8x16xf32>
    %399 = arith.addf %394, %398 : vector<8x16xf32>
    %c77 = arith.constant 77 : index
    %400 = memref.load %arg3[%c77] : memref<144xf32, #tpu.memory_space<smem>>
    %401 = vector.extract_strided_slice %1 {offsets = [1, 2], sizes = [8, 16], strides = [1, 1]} : vector<10x18xf32> to vector<8x16xf32>
    %402 = vector.broadcast %400 : f32 to vector<8x16xf32>
    %403 = arith.mulf %402, %401 : vector<8x16xf32>
    %404 = arith.addf %399, %403 : vector<8x16xf32>
    %c78 = arith.constant 78 : index
    %405 = memref.load %arg3[%c78] : memref<144xf32, #tpu.memory_space<smem>>
    %406 = vector.extract_strided_slice %1 {offsets = [2, 0], sizes = [8, 16], strides = [1, 1]} : vector<10x18xf32> to vector<8x16xf32>
    %407 = vector.broadcast %405 : f32 to vector<8x16xf32>
    %408 = arith.mulf %407, %406 : vector<8x16xf32>
    %409 = arith.addf %404, %408 : vector<8x16xf32>
    %c79 = arith.constant 79 : index
    %410 = memref.load %arg3[%c79] : memref<144xf32, #tpu.memory_space<smem>>
    %411 = vector.extract_strided_slice %1 {offsets = [2, 1], sizes = [8, 16], strides = [1, 1]} : vector<10x18xf32> to vector<8x16xf32>
    %412 = vector.broadcast %410 : f32 to vector<8x16xf32>
    %413 = arith.mulf %412, %411 : vector<8x16xf32>
    %414 = arith.addf %409, %413 : vector<8x16xf32>
    %c80 = arith.constant 80 : index
    %415 = memref.load %arg3[%c80] : memref<144xf32, #tpu.memory_space<smem>>
    %416 = vector.extract_strided_slice %1 {offsets = [2, 2], sizes = [8, 16], strides = [1, 1]} : vector<10x18xf32> to vector<8x16xf32>
    %417 = vector.broadcast %415 : f32 to vector<8x16xf32>
    %418 = arith.mulf %417, %416 : vector<8x16xf32>
    %419 = arith.addf %414, %418 : vector<8x16xf32>
    %c81 = arith.constant 81 : index
    %420 = memref.load %arg3[%c81] : memref<144xf32, #tpu.memory_space<smem>>
    %421 = vector.extract_strided_slice %3 {offsets = [0, 0], sizes = [8, 16], strides = [1, 1]} : vector<10x18xf32> to vector<8x16xf32>
    %422 = vector.broadcast %420 : f32 to vector<8x16xf32>
    %423 = arith.mulf %422, %421 : vector<8x16xf32>
    %424 = arith.addf %419, %423 : vector<8x16xf32>
    %c82 = arith.constant 82 : index
    %425 = memref.load %arg3[%c82] : memref<144xf32, #tpu.memory_space<smem>>
    %426 = vector.extract_strided_slice %3 {offsets = [0, 1], sizes = [8, 16], strides = [1, 1]} : vector<10x18xf32> to vector<8x16xf32>
    %427 = vector.broadcast %425 : f32 to vector<8x16xf32>
    %428 = arith.mulf %427, %426 : vector<8x16xf32>
    %429 = arith.addf %424, %428 : vector<8x16xf32>
    %c83 = arith.constant 83 : index
    %430 = memref.load %arg3[%c83] : memref<144xf32, #tpu.memory_space<smem>>
    %431 = vector.extract_strided_slice %3 {offsets = [0, 2], sizes = [8, 16], strides = [1, 1]} : vector<10x18xf32> to vector<8x16xf32>
    %432 = vector.broadcast %430 : f32 to vector<8x16xf32>
    %433 = arith.mulf %432, %431 : vector<8x16xf32>
    %434 = arith.addf %429, %433 : vector<8x16xf32>
    %c84 = arith.constant 84 : index
    %435 = memref.load %arg3[%c84] : memref<144xf32, #tpu.memory_space<smem>>
    %436 = vector.extract_strided_slice %3 {offsets = [1, 0], sizes = [8, 16], strides = [1, 1]} : vector<10x18xf32> to vector<8x16xf32>
    %437 = vector.broadcast %435 : f32 to vector<8x16xf32>
    %438 = arith.mulf %437, %436 : vector<8x16xf32>
    %439 = arith.addf %434, %438 : vector<8x16xf32>
    %c85 = arith.constant 85 : index
    %440 = memref.load %arg3[%c85] : memref<144xf32, #tpu.memory_space<smem>>
    %441 = vector.extract_strided_slice %3 {offsets = [1, 1], sizes = [8, 16], strides = [1, 1]} : vector<10x18xf32> to vector<8x16xf32>
    %442 = vector.broadcast %440 : f32 to vector<8x16xf32>
    %443 = arith.mulf %442, %441 : vector<8x16xf32>
    %444 = arith.addf %439, %443 : vector<8x16xf32>
    %c86 = arith.constant 86 : index
    %445 = memref.load %arg3[%c86] : memref<144xf32, #tpu.memory_space<smem>>
    %446 = vector.extract_strided_slice %3 {offsets = [1, 2], sizes = [8, 16], strides = [1, 1]} : vector<10x18xf32> to vector<8x16xf32>
    %447 = vector.broadcast %445 : f32 to vector<8x16xf32>
    %448 = arith.mulf %447, %446 : vector<8x16xf32>
    %449 = arith.addf %444, %448 : vector<8x16xf32>
    %c87 = arith.constant 87 : index
    %450 = memref.load %arg3[%c87] : memref<144xf32, #tpu.memory_space<smem>>
    %451 = vector.extract_strided_slice %3 {offsets = [2, 0], sizes = [8, 16], strides = [1, 1]} : vector<10x18xf32> to vector<8x16xf32>
    %452 = vector.broadcast %450 : f32 to vector<8x16xf32>
    %453 = arith.mulf %452, %451 : vector<8x16xf32>
    %454 = arith.addf %449, %453 : vector<8x16xf32>
    %c88 = arith.constant 88 : index
    %455 = memref.load %arg3[%c88] : memref<144xf32, #tpu.memory_space<smem>>
    %456 = vector.extract_strided_slice %3 {offsets = [2, 1], sizes = [8, 16], strides = [1, 1]} : vector<10x18xf32> to vector<8x16xf32>
    %457 = vector.broadcast %455 : f32 to vector<8x16xf32>
    %458 = arith.mulf %457, %456 : vector<8x16xf32>
    %459 = arith.addf %454, %458 : vector<8x16xf32>
    %c89 = arith.constant 89 : index
    %460 = memref.load %arg3[%c89] : memref<144xf32, #tpu.memory_space<smem>>
    %461 = vector.extract_strided_slice %3 {offsets = [2, 2], sizes = [8, 16], strides = [1, 1]} : vector<10x18xf32> to vector<8x16xf32>
    %462 = vector.broadcast %460 : f32 to vector<8x16xf32>
    %463 = arith.mulf %462, %461 : vector<8x16xf32>
    %464 = arith.addf %459, %463 : vector<8x16xf32>
    %c90 = arith.constant 90 : index
    %465 = memref.load %arg3[%c90] : memref<144xf32, #tpu.memory_space<smem>>
    %466 = vector.extract_strided_slice %5 {offsets = [0, 0], sizes = [8, 16], strides = [1, 1]} : vector<10x18xf32> to vector<8x16xf32>
    %467 = vector.broadcast %465 : f32 to vector<8x16xf32>
    %468 = arith.mulf %467, %466 : vector<8x16xf32>
    %469 = arith.addf %464, %468 : vector<8x16xf32>
    %c91 = arith.constant 91 : index
    %470 = memref.load %arg3[%c91] : memref<144xf32, #tpu.memory_space<smem>>
    %471 = vector.extract_strided_slice %5 {offsets = [0, 1], sizes = [8, 16], strides = [1, 1]} : vector<10x18xf32> to vector<8x16xf32>
    %472 = vector.broadcast %470 : f32 to vector<8x16xf32>
    %473 = arith.mulf %472, %471 : vector<8x16xf32>
    %474 = arith.addf %469, %473 : vector<8x16xf32>
    %c92 = arith.constant 92 : index
    %475 = memref.load %arg3[%c92] : memref<144xf32, #tpu.memory_space<smem>>
    %476 = vector.extract_strided_slice %5 {offsets = [0, 2], sizes = [8, 16], strides = [1, 1]} : vector<10x18xf32> to vector<8x16xf32>
    %477 = vector.broadcast %475 : f32 to vector<8x16xf32>
    %478 = arith.mulf %477, %476 : vector<8x16xf32>
    %479 = arith.addf %474, %478 : vector<8x16xf32>
    %c93 = arith.constant 93 : index
    %480 = memref.load %arg3[%c93] : memref<144xf32, #tpu.memory_space<smem>>
    %481 = vector.extract_strided_slice %5 {offsets = [1, 0], sizes = [8, 16], strides = [1, 1]} : vector<10x18xf32> to vector<8x16xf32>
    %482 = vector.broadcast %480 : f32 to vector<8x16xf32>
    %483 = arith.mulf %482, %481 : vector<8x16xf32>
    %484 = arith.addf %479, %483 : vector<8x16xf32>
    %c94 = arith.constant 94 : index
    %485 = memref.load %arg3[%c94] : memref<144xf32, #tpu.memory_space<smem>>
    %486 = vector.extract_strided_slice %5 {offsets = [1, 1], sizes = [8, 16], strides = [1, 1]} : vector<10x18xf32> to vector<8x16xf32>
    %487 = vector.broadcast %485 : f32 to vector<8x16xf32>
    %488 = arith.mulf %487, %486 : vector<8x16xf32>
    %489 = arith.addf %484, %488 : vector<8x16xf32>
    %c95 = arith.constant 95 : index
    %490 = memref.load %arg3[%c95] : memref<144xf32, #tpu.memory_space<smem>>
    %491 = vector.extract_strided_slice %5 {offsets = [1, 2], sizes = [8, 16], strides = [1, 1]} : vector<10x18xf32> to vector<8x16xf32>
    %492 = vector.broadcast %490 : f32 to vector<8x16xf32>
    %493 = arith.mulf %492, %491 : vector<8x16xf32>
    %494 = arith.addf %489, %493 : vector<8x16xf32>
    %c96 = arith.constant 96 : index
    %495 = memref.load %arg3[%c96] : memref<144xf32, #tpu.memory_space<smem>>
    %496 = vector.extract_strided_slice %5 {offsets = [2, 0], sizes = [8, 16], strides = [1, 1]} : vector<10x18xf32> to vector<8x16xf32>
    %497 = vector.broadcast %495 : f32 to vector<8x16xf32>
    %498 = arith.mulf %497, %496 : vector<8x16xf32>
    %499 = arith.addf %494, %498 : vector<8x16xf32>
    %c97 = arith.constant 97 : index
    %500 = memref.load %arg3[%c97] : memref<144xf32, #tpu.memory_space<smem>>
    %501 = vector.extract_strided_slice %5 {offsets = [2, 1], sizes = [8, 16], strides = [1, 1]} : vector<10x18xf32> to vector<8x16xf32>
    %502 = vector.broadcast %500 : f32 to vector<8x16xf32>
    %503 = arith.mulf %502, %501 : vector<8x16xf32>
    %504 = arith.addf %499, %503 : vector<8x16xf32>
    %c98 = arith.constant 98 : index
    %505 = memref.load %arg3[%c98] : memref<144xf32, #tpu.memory_space<smem>>
    %506 = vector.extract_strided_slice %5 {offsets = [2, 2], sizes = [8, 16], strides = [1, 1]} : vector<10x18xf32> to vector<8x16xf32>
    %507 = vector.broadcast %505 : f32 to vector<8x16xf32>
    %508 = arith.mulf %507, %506 : vector<8x16xf32>
    %509 = arith.addf %504, %508 : vector<8x16xf32>
    %c99 = arith.constant 99 : index
    %510 = memref.load %arg3[%c99] : memref<144xf32, #tpu.memory_space<smem>>
    %511 = vector.extract_strided_slice %7 {offsets = [0, 0], sizes = [8, 16], strides = [1, 1]} : vector<10x18xf32> to vector<8x16xf32>
    %512 = vector.broadcast %510 : f32 to vector<8x16xf32>
    %513 = arith.mulf %512, %511 : vector<8x16xf32>
    %514 = arith.addf %509, %513 : vector<8x16xf32>
    %c100 = arith.constant 100 : index
    %515 = memref.load %arg3[%c100] : memref<144xf32, #tpu.memory_space<smem>>
    %516 = vector.extract_strided_slice %7 {offsets = [0, 1], sizes = [8, 16], strides = [1, 1]} : vector<10x18xf32> to vector<8x16xf32>
    %517 = vector.broadcast %515 : f32 to vector<8x16xf32>
    %518 = arith.mulf %517, %516 : vector<8x16xf32>
    %519 = arith.addf %514, %518 : vector<8x16xf32>
    %c101 = arith.constant 101 : index
    %520 = memref.load %arg3[%c101] : memref<144xf32, #tpu.memory_space<smem>>
    %521 = vector.extract_strided_slice %7 {offsets = [0, 2], sizes = [8, 16], strides = [1, 1]} : vector<10x18xf32> to vector<8x16xf32>
    %522 = vector.broadcast %520 : f32 to vector<8x16xf32>
    %523 = arith.mulf %522, %521 : vector<8x16xf32>
    %524 = arith.addf %519, %523 : vector<8x16xf32>
    %c102 = arith.constant 102 : index
    %525 = memref.load %arg3[%c102] : memref<144xf32, #tpu.memory_space<smem>>
    %526 = vector.extract_strided_slice %7 {offsets = [1, 0], sizes = [8, 16], strides = [1, 1]} : vector<10x18xf32> to vector<8x16xf32>
    %527 = vector.broadcast %525 : f32 to vector<8x16xf32>
    %528 = arith.mulf %527, %526 : vector<8x16xf32>
    %529 = arith.addf %524, %528 : vector<8x16xf32>
    %c103 = arith.constant 103 : index
    %530 = memref.load %arg3[%c103] : memref<144xf32, #tpu.memory_space<smem>>
    %531 = vector.extract_strided_slice %7 {offsets = [1, 1], sizes = [8, 16], strides = [1, 1]} : vector<10x18xf32> to vector<8x16xf32>
    %532 = vector.broadcast %530 : f32 to vector<8x16xf32>
    %533 = arith.mulf %532, %531 : vector<8x16xf32>
    %534 = arith.addf %529, %533 : vector<8x16xf32>
    %c104 = arith.constant 104 : index
    %535 = memref.load %arg3[%c104] : memref<144xf32, #tpu.memory_space<smem>>
    %536 = vector.extract_strided_slice %7 {offsets = [1, 2], sizes = [8, 16], strides = [1, 1]} : vector<10x18xf32> to vector<8x16xf32>
    %537 = vector.broadcast %535 : f32 to vector<8x16xf32>
    %538 = arith.mulf %537, %536 : vector<8x16xf32>
    %539 = arith.addf %534, %538 : vector<8x16xf32>
    %c105 = arith.constant 105 : index
    %540 = memref.load %arg3[%c105] : memref<144xf32, #tpu.memory_space<smem>>
    %541 = vector.extract_strided_slice %7 {offsets = [2, 0], sizes = [8, 16], strides = [1, 1]} : vector<10x18xf32> to vector<8x16xf32>
    %542 = vector.broadcast %540 : f32 to vector<8x16xf32>
    %543 = arith.mulf %542, %541 : vector<8x16xf32>
    %544 = arith.addf %539, %543 : vector<8x16xf32>
    %c106 = arith.constant 106 : index
    %545 = memref.load %arg3[%c106] : memref<144xf32, #tpu.memory_space<smem>>
    %546 = vector.extract_strided_slice %7 {offsets = [2, 1], sizes = [8, 16], strides = [1, 1]} : vector<10x18xf32> to vector<8x16xf32>
    %547 = vector.broadcast %545 : f32 to vector<8x16xf32>
    %548 = arith.mulf %547, %546 : vector<8x16xf32>
    %549 = arith.addf %544, %548 : vector<8x16xf32>
    %c107 = arith.constant 107 : index
    %550 = memref.load %arg3[%c107] : memref<144xf32, #tpu.memory_space<smem>>
    %551 = vector.extract_strided_slice %7 {offsets = [2, 2], sizes = [8, 16], strides = [1, 1]} : vector<10x18xf32> to vector<8x16xf32>
    %552 = vector.broadcast %550 : f32 to vector<8x16xf32>
    %553 = arith.mulf %552, %551 : vector<8x16xf32>
    %554 = arith.addf %549, %553 : vector<8x16xf32>
    %cst_31 = arith.constant 0.000000e+00 : f32
    %555 = vector.broadcast %cst_31 : f32 to vector<8x16xf32>
    %556 = arith.maximumf %554, %555 : vector<8x16xf32>
    %c0_32 = arith.constant 0 : index
    %c2_33 = arith.constant 2 : index
    %c0_34 = arith.constant 0 : index
    %c0_35 = arith.constant 0 : index
    %c0_36 = arith.constant 0 : index
    %557 = vector.load %arg4[%c0_32, %c2_33, %c0_34, %c0_35, %c0_36] : memref<1x4x1x8x16xf32, #tpu.memory_space<vmem>>, vector<1x1x1x8x16xf32>
    %558 = vector.shape_cast %557 : vector<1x1x1x8x16xf32> to vector<8x16xf32>
    %559 = vector.shape_cast %556 : vector<8x16xf32> to vector<1x1x1x8x16xf32>
    tpu.vector_store %arg4[%c0_32, %c2_33, %c0_34, %c0_35, %c0_36], %559 {strides = array<i32>} : memref<1x4x1x8x16xf32, #tpu.memory_space<vmem>>, vector<1x1x1x8x16xf32>,
    %c108 = arith.constant 108 : index
    %560 = memref.load %arg3[%c108] : memref<144xf32, #tpu.memory_space<smem>>
    %561 = vector.extract_strided_slice %1 {offsets = [0, 0], sizes = [8, 16], strides = [1, 1]} : vector<10x18xf32> to vector<8x16xf32>
    %562 = vector.broadcast %560 : f32 to vector<8x16xf32>
    %563 = arith.mulf %562, %561 : vector<8x16xf32>
    %c109 = arith.constant 109 : index
    %564 = memref.load %arg3[%c109] : memref<144xf32, #tpu.memory_space<smem>>
    %565 = vector.extract_strided_slice %1 {offsets = [0, 1], sizes = [8, 16], strides = [1, 1]} : vector<10x18xf32> to vector<8x16xf32>
    %566 = vector.broadcast %564 : f32 to vector<8x16xf32>
    %567 = arith.mulf %566, %565 : vector<8x16xf32>
    %568 = arith.addf %563, %567 : vector<8x16xf32>
    %c110 = arith.constant 110 : index
    %569 = memref.load %arg3[%c110] : memref<144xf32, #tpu.memory_space<smem>>
    %570 = vector.extract_strided_slice %1 {offsets = [0, 2], sizes = [8, 16], strides = [1, 1]} : vector<10x18xf32> to vector<8x16xf32>
    %571 = vector.broadcast %569 : f32 to vector<8x16xf32>
    %572 = arith.mulf %571, %570 : vector<8x16xf32>
    %573 = arith.addf %568, %572 : vector<8x16xf32>
    %c111 = arith.constant 111 : index
    %574 = memref.load %arg3[%c111] : memref<144xf32, #tpu.memory_space<smem>>
    %575 = vector.extract_strided_slice %1 {offsets = [1, 0], sizes = [8, 16], strides = [1, 1]} : vector<10x18xf32> to vector<8x16xf32>
    %576 = vector.broadcast %574 : f32 to vector<8x16xf32>
    %577 = arith.mulf %576, %575 : vector<8x16xf32>
    %578 = arith.addf %573, %577 : vector<8x16xf32>
    %c112 = arith.constant 112 : index
    %579 = memref.load %arg3[%c112] : memref<144xf32, #tpu.memory_space<smem>>
    %580 = vector.extract_strided_slice %1 {offsets = [1, 1], sizes = [8, 16], strides = [1, 1]} : vector<10x18xf32> to vector<8x16xf32>
    %581 = vector.broadcast %579 : f32 to vector<8x16xf32>
    %582 = arith.mulf %581, %580 : vector<8x16xf32>
    %583 = arith.addf %578, %582 : vector<8x16xf32>
    %c113 = arith.constant 113 : index
    %584 = memref.load %arg3[%c113] : memref<144xf32, #tpu.memory_space<smem>>
    %585 = vector.extract_strided_slice %1 {offsets = [1, 2], sizes = [8, 16], strides = [1, 1]} : vector<10x18xf32> to vector<8x16xf32>
    %586 = vector.broadcast %584 : f32 to vector<8x16xf32>
    %587 = arith.mulf %586, %585 : vector<8x16xf32>
    %588 = arith.addf %583, %587 : vector<8x16xf32>
    %c114 = arith.constant 114 : index
    %589 = memref.load %arg3[%c114] : memref<144xf32, #tpu.memory_space<smem>>
    %590 = vector.extract_strided_slice %1 {offsets = [2, 0], sizes = [8, 16], strides = [1, 1]} : vector<10x18xf32> to vector<8x16xf32>
    %591 = vector.broadcast %589 : f32 to vector<8x16xf32>
    %592 = arith.mulf %591, %590 : vector<8x16xf32>
    %593 = arith.addf %588, %592 : vector<8x16xf32>
    %c115 = arith.constant 115 : index
    %594 = memref.load %arg3[%c115] : memref<144xf32, #tpu.memory_space<smem>>
    %595 = vector.extract_strided_slice %1 {offsets = [2, 1], sizes = [8, 16], strides = [1, 1]} : vector<10x18xf32> to vector<8x16xf32>
    %596 = vector.broadcast %594 : f32 to vector<8x16xf32>
    %597 = arith.mulf %596, %595 : vector<8x16xf32>
    %598 = arith.addf %593, %597 : vector<8x16xf32>
    %c116 = arith.constant 116 : index
    %599 = memref.load %arg3[%c116] : memref<144xf32, #tpu.memory_space<smem>>
    %600 = vector.extract_strided_slice %1 {offsets = [2, 2], sizes = [8, 16], strides = [1, 1]} : vector<10x18xf32> to vector<8x16xf32>
    %601 = vector.broadcast %599 : f32 to vector<8x16xf32>
    %602 = arith.mulf %601, %600 : vector<8x16xf32>
    %603 = arith.addf %598, %602 : vector<8x16xf32>
    %c117 = arith.constant 117 : index
    %604 = memref.load %arg3[%c117] : memref<144xf32, #tpu.memory_space<smem>>
    %605 = vector.extract_strided_slice %3 {offsets = [0, 0], sizes = [8, 16], strides = [1, 1]} : vector<10x18xf32> to vector<8x16xf32>
    %606 = vector.broadcast %604 : f32 to vector<8x16xf32>
    %607 = arith.mulf %606, %605 : vector<8x16xf32>
    %608 = arith.addf %603, %607 : vector<8x16xf32>
    %c118 = arith.constant 118 : index
    %609 = memref.load %arg3[%c118] : memref<144xf32, #tpu.memory_space<smem>>
    %610 = vector.extract_strided_slice %3 {offsets = [0, 1], sizes = [8, 16], strides = [1, 1]} : vector<10x18xf32> to vector<8x16xf32>
    %611 = vector.broadcast %609 : f32 to vector<8x16xf32>
    %612 = arith.mulf %611, %610 : vector<8x16xf32>
    %613 = arith.addf %608, %612 : vector<8x16xf32>
    %c119 = arith.constant 119 : index
    %614 = memref.load %arg3[%c119] : memref<144xf32, #tpu.memory_space<smem>>
    %615 = vector.extract_strided_slice %3 {offsets = [0, 2], sizes = [8, 16], strides = [1, 1]} : vector<10x18xf32> to vector<8x16xf32>
    %616 = vector.broadcast %614 : f32 to vector<8x16xf32>
    %617 = arith.mulf %616, %615 : vector<8x16xf32>
    %618 = arith.addf %613, %617 : vector<8x16xf32>
    %c120 = arith.constant 120 : index
    %619 = memref.load %arg3[%c120] : memref<144xf32, #tpu.memory_space<smem>>
    %620 = vector.extract_strided_slice %3 {offsets = [1, 0], sizes = [8, 16], strides = [1, 1]} : vector<10x18xf32> to vector<8x16xf32>
    %621 = vector.broadcast %619 : f32 to vector<8x16xf32>
    %622 = arith.mulf %621, %620 : vector<8x16xf32>
    %623 = arith.addf %618, %622 : vector<8x16xf32>
    %c121 = arith.constant 121 : index
    %624 = memref.load %arg3[%c121] : memref<144xf32, #tpu.memory_space<smem>>
    %625 = vector.extract_strided_slice %3 {offsets = [1, 1], sizes = [8, 16], strides = [1, 1]} : vector<10x18xf32> to vector<8x16xf32>
    %626 = vector.broadcast %624 : f32 to vector<8x16xf32>
    %627 = arith.mulf %626, %625 : vector<8x16xf32>
    %628 = arith.addf %623, %627 : vector<8x16xf32>
    %c122 = arith.constant 122 : index
    %629 = memref.load %arg3[%c122] : memref<144xf32, #tpu.memory_space<smem>>
    %630 = vector.extract_strided_slice %3 {offsets = [1, 2], sizes = [8, 16], strides = [1, 1]} : vector<10x18xf32> to vector<8x16xf32>
    %631 = vector.broadcast %629 : f32 to vector<8x16xf32>
    %632 = arith.mulf %631, %630 : vector<8x16xf32>
    %633 = arith.addf %628, %632 : vector<8x16xf32>
    %c123 = arith.constant 123 : index
    %634 = memref.load %arg3[%c123] : memref<144xf32, #tpu.memory_space<smem>>
    %635 = vector.extract_strided_slice %3 {offsets = [2, 0], sizes = [8, 16], strides = [1, 1]} : vector<10x18xf32> to vector<8x16xf32>
    %636 = vector.broadcast %634 : f32 to vector<8x16xf32>
    %637 = arith.mulf %636, %635 : vector<8x16xf32>
    %638 = arith.addf %633, %637 : vector<8x16xf32>
    %c124 = arith.constant 124 : index
    %639 = memref.load %arg3[%c124] : memref<144xf32, #tpu.memory_space<smem>>
    %640 = vector.extract_strided_slice %3 {offsets = [2, 1], sizes = [8, 16], strides = [1, 1]} : vector<10x18xf32> to vector<8x16xf32>
    %641 = vector.broadcast %639 : f32 to vector<8x16xf32>
    %642 = arith.mulf %641, %640 : vector<8x16xf32>
    %643 = arith.addf %638, %642 : vector<8x16xf32>
    %c125 = arith.constant 125 : index
    %644 = memref.load %arg3[%c125] : memref<144xf32, #tpu.memory_space<smem>>
    %645 = vector.extract_strided_slice %3 {offsets = [2, 2], sizes = [8, 16], strides = [1, 1]} : vector<10x18xf32> to vector<8x16xf32>
    %646 = vector.broadcast %644 : f32 to vector<8x16xf32>
    %647 = arith.mulf %646, %645 : vector<8x16xf32>
    %648 = arith.addf %643, %647 : vector<8x16xf32>
    %c126 = arith.constant 126 : index
    %649 = memref.load %arg3[%c126] : memref<144xf32, #tpu.memory_space<smem>>
    %650 = vector.extract_strided_slice %5 {offsets = [0, 0], sizes = [8, 16], strides = [1, 1]} : vector<10x18xf32> to vector<8x16xf32>
    %651 = vector.broadcast %649 : f32 to vector<8x16xf32>
    %652 = arith.mulf %651, %650 : vector<8x16xf32>
    %653 = arith.addf %648, %652 : vector<8x16xf32>
    %c127 = arith.constant 127 : index
    %654 = memref.load %arg3[%c127] : memref<144xf32, #tpu.memory_space<smem>>
    %655 = vector.extract_strided_slice %5 {offsets = [0, 1], sizes = [8, 16], strides = [1, 1]} : vector<10x18xf32> to vector<8x16xf32>
    %656 = vector.broadcast %654 : f32 to vector<8x16xf32>
    %657 = arith.mulf %656, %655 : vector<8x16xf32>
    %658 = arith.addf %653, %657 : vector<8x16xf32>
    %c128 = arith.constant 128 : index
    %659 = memref.load %arg3[%c128] : memref<144xf32, #tpu.memory_space<smem>>
    %660 = vector.extract_strided_slice %5 {offsets = [0, 2], sizes = [8, 16], strides = [1, 1]} : vector<10x18xf32> to vector<8x16xf32>
    %661 = vector.broadcast %659 : f32 to vector<8x16xf32>
    %662 = arith.mulf %661, %660 : vector<8x16xf32>
    %663 = arith.addf %658, %662 : vector<8x16xf32>
    %c129 = arith.constant 129 : index
    %664 = memref.load %arg3[%c129] : memref<144xf32, #tpu.memory_space<smem>>
    %665 = vector.extract_strided_slice %5 {offsets = [1, 0], sizes = [8, 16], strides = [1, 1]} : vector<10x18xf32> to vector<8x16xf32>
    %666 = vector.broadcast %664 : f32 to vector<8x16xf32>
    %667 = arith.mulf %666, %665 : vector<8x16xf32>
    %668 = arith.addf %663, %667 : vector<8x16xf32>
    %c130 = arith.constant 130 : index
    %669 = memref.load %arg3[%c130] : memref<144xf32, #tpu.memory_space<smem>>
    %670 = vector.extract_strided_slice %5 {offsets = [1, 1], sizes = [8, 16], strides = [1, 1]} : vector<10x18xf32> to vector<8x16xf32>
    %671 = vector.broadcast %669 : f32 to vector<8x16xf32>
    %672 = arith.mulf %671, %670 : vector<8x16xf32>
    %673 = arith.addf %668, %672 : vector<8x16xf32>
    %c131 = arith.constant 131 : index
    %674 = memref.load %arg3[%c131] : memref<144xf32, #tpu.memory_space<smem>>
    %675 = vector.extract_strided_slice %5 {offsets = [1, 2], sizes = [8, 16], strides = [1, 1]} : vector<10x18xf32> to vector<8x16xf32>
    %676 = vector.broadcast %674 : f32 to vector<8x16xf32>
    %677 = arith.mulf %676, %675 : vector<8x16xf32>
    %678 = arith.addf %673, %677 : vector<8x16xf32>
    %c132 = arith.constant 132 : index
    %679 = memref.load %arg3[%c132] : memref<144xf32, #tpu.memory_space<smem>>
    %680 = vector.extract_strided_slice %5 {offsets = [2, 0], sizes = [8, 16], strides = [1, 1]} : vector<10x18xf32> to vector<8x16xf32>
    %681 = vector.broadcast %679 : f32 to vector<8x16xf32>
    %682 = arith.mulf %681, %680 : vector<8x16xf32>
    %683 = arith.addf %678, %682 : vector<8x16xf32>
    %c133 = arith.constant 133 : index
    %684 = memref.load %arg3[%c133] : memref<144xf32, #tpu.memory_space<smem>>
    %685 = vector.extract_strided_slice %5 {offsets = [2, 1], sizes = [8, 16], strides = [1, 1]} : vector<10x18xf32> to vector<8x16xf32>
    %686 = vector.broadcast %684 : f32 to vector<8x16xf32>
    %687 = arith.mulf %686, %685 : vector<8x16xf32>
    %688 = arith.addf %683, %687 : vector<8x16xf32>
    %c134 = arith.constant 134 : index
    %689 = memref.load %arg3[%c134] : memref<144xf32, #tpu.memory_space<smem>>
    %690 = vector.extract_strided_slice %5 {offsets = [2, 2], sizes = [8, 16], strides = [1, 1]} : vector<10x18xf32> to vector<8x16xf32>
    %691 = vector.broadcast %689 : f32 to vector<8x16xf32>
    %692 = arith.mulf %691, %690 : vector<8x16xf32>
    %693 = arith.addf %688, %692 : vector<8x16xf32>
    %c135 = arith.constant 135 : index
    %694 = memref.load %arg3[%c135] : memref<144xf32, #tpu.memory_space<smem>>
    %695 = vector.extract_strided_slice %7 {offsets = [0, 0], sizes = [8, 16], strides = [1, 1]} : vector<10x18xf32> to vector<8x16xf32>
    %696 = vector.broadcast %694 : f32 to vector<8x16xf32>
    %697 = arith.mulf %696, %695 : vector<8x16xf32>
    %698 = arith.addf %693, %697 : vector<8x16xf32>
    %c136 = arith.constant 136 : index
    %699 = memref.load %arg3[%c136] : memref<144xf32, #tpu.memory_space<smem>>
    %700 = vector.extract_strided_slice %7 {offsets = [0, 1], sizes = [8, 16], strides = [1, 1]} : vector<10x18xf32> to vector<8x16xf32>
    %701 = vector.broadcast %699 : f32 to vector<8x16xf32>
    %702 = arith.mulf %701, %700 : vector<8x16xf32>
    %703 = arith.addf %698, %702 : vector<8x16xf32>
    %c137 = arith.constant 137 : index
    %704 = memref.load %arg3[%c137] : memref<144xf32, #tpu.memory_space<smem>>
    %705 = vector.extract_strided_slice %7 {offsets = [0, 2], sizes = [8, 16], strides = [1, 1]} : vector<10x18xf32> to vector<8x16xf32>
    %706 = vector.broadcast %704 : f32 to vector<8x16xf32>
    %707 = arith.mulf %706, %705 : vector<8x16xf32>
    %708 = arith.addf %703, %707 : vector<8x16xf32>
    %c138 = arith.constant 138 : index
    %709 = memref.load %arg3[%c138] : memref<144xf32, #tpu.memory_space<smem>>
    %710 = vector.extract_strided_slice %7 {offsets = [1, 0], sizes = [8, 16], strides = [1, 1]} : vector<10x18xf32> to vector<8x16xf32>
    %711 = vector.broadcast %709 : f32 to vector<8x16xf32>
    %712 = arith.mulf %711, %710 : vector<8x16xf32>
    %713 = arith.addf %708, %712 : vector<8x16xf32>
    %c139 = arith.constant 139 : index
    %714 = memref.load %arg3[%c139] : memref<144xf32, #tpu.memory_space<smem>>
    %715 = vector.extract_strided_slice %7 {offsets = [1, 1], sizes = [8, 16], strides = [1, 1]} : vector<10x18xf32> to vector<8x16xf32>
    %716 = vector.broadcast %714 : f32 to vector<8x16xf32>
    %717 = arith.mulf %716, %715 : vector<8x16xf32>
    %718 = arith.addf %713, %717 : vector<8x16xf32>
    %c140 = arith.constant 140 : index
    %719 = memref.load %arg3[%c140] : memref<144xf32, #tpu.memory_space<smem>>
    %720 = vector.extract_strided_slice %7 {offsets = [1, 2], sizes = [8, 16], strides = [1, 1]} : vector<10x18xf32> to vector<8x16xf32>
    %721 = vector.broadcast %719 : f32 to vector<8x16xf32>
    %722 = arith.mulf %721, %720 : vector<8x16xf32>
    %723 = arith.addf %718, %722 : vector<8x16xf32>
    %c141 = arith.constant 141 : index
    %724 = memref.load %arg3[%c141] : memref<144xf32, #tpu.memory_space<smem>>
    %725 = vector.extract_strided_slice %7 {offsets = [2, 0], sizes = [8, 16], strides = [1, 1]} : vector<10x18xf32> to vector<8x16xf32>
    %726 = vector.broadcast %724 : f32 to vector<8x16xf32>
    %727 = arith.mulf %726, %725 : vector<8x16xf32>
    %728 = arith.addf %723, %727 : vector<8x16xf32>
    %c142 = arith.constant 142 : index
    %729 = memref.load %arg3[%c142] : memref<144xf32, #tpu.memory_space<smem>>
    %730 = vector.extract_strided_slice %7 {offsets = [2, 1], sizes = [8, 16], strides = [1, 1]} : vector<10x18xf32> to vector<8x16xf32>
    %731 = vector.broadcast %729 : f32 to vector<8x16xf32>
    %732 = arith.mulf %731, %730 : vector<8x16xf32>
    %733 = arith.addf %728, %732 : vector<8x16xf32>
    %c143 = arith.constant 143 : index
    %734 = memref.load %arg3[%c143] : memref<144xf32, #tpu.memory_space<smem>>
    %735 = vector.extract_strided_slice %7 {offsets = [2, 2], sizes = [8, 16], strides = [1, 1]} : vector<10x18xf32> to vector<8x16xf32>
    %736 = vector.broadcast %734 : f32 to vector<8x16xf32>
    %737 = arith.mulf %736, %735 : vector<8x16xf32>
    %738 = arith.addf %733, %737 : vector<8x16xf32>
    %cst_37 = arith.constant 0.000000e+00 : f32
    %739 = vector.broadcast %cst_37 : f32 to vector<8x16xf32>
    %740 = arith.maximumf %738, %739 : vector<8x16xf32>
    %c0_38 = arith.constant 0 : index
    %c3_39 = arith.constant 3 : index
    %c0_40 = arith.constant 0 : index
    %c0_41 = arith.constant 0 : index
    %c0_42 = arith.constant 0 : index
    %741 = vector.load %arg4[%c0_38, %c3_39, %c0_40, %c0_41, %c0_42] : memref<1x4x1x8x16xf32, #tpu.memory_space<vmem>>, vector<1x1x1x8x16xf32>
    %742 = vector.shape_cast %741 : vector<1x1x1x8x16xf32> to vector<8x16xf32>
    %743 = vector.shape_cast %740 : vector<8x16xf32> to vector<1x1x1x8x16xf32>
    tpu.vector_store %arg4[%c0_38, %c3_39, %c0_40, %c0_41, %c0_42], %743 {strides = array<i32>} : memref<1x4x1x8x16xf32, #tpu.memory_space<vmem>>, vector<1x1x1x8x16xf32>,
    return
  }
  func.func @transform_0(%arg0: i32, %arg1: i32) -> (i32, i32, i32, i32, i32) {
    %c0_i32 = arith.constant 0 : i32
    %c0_i32_0 = arith.constant 0 : i32
    %c0_i32_1 = arith.constant 0 : i32
    %c0_i32_2 = arith.constant 0 : i32
    return %arg0, %c0_i32, %arg1, %c0_i32_0, %c0_i32_1 : i32, i32, i32, i32, i32
  }
  func.func @transform_1(%arg0: i32, %arg1: i32) -> i32 {
    %c0_i32 = arith.constant 0 : i32
    %c0_i32_0 = arith.constant 0 : i32
    return %c0_i32 : i32
  }
  func.func @transform_2(%arg0: i32, %arg1: i32) -> (i32, i32, i32, i32, i32) {
    %c0_i32 = arith.constant 0 : i32
    %c0_i32_0 = arith.constant 0 : i32
    %c0_i32_1 = arith.constant 0 : i32
    %c0_i32_2 = arith.constant 0 : i32
    return %arg0, %c0_i32, %arg1, %c0_i32_0, %c0_i32_1 : i32, i32, i32, i32, i32
  }
}

</mosaic_0001>

<bundles_post_ra>
// kernel: tpu_custom_call.1
= control target key start
LH: loop header
LB: loop body
LE: loop exit
PB: predicated region body
PF: predicated region fallthrough
CT: control target
= control target key end

     0   :  { %s3476_s0 = inlined_call_operand.vmem [shape: f32[2,4,2,10,18], index: 0, kind: input, shape index: {}]   ;;  %s3477_s1 = inlined_call_operand.vmem [shape: f32[144], index: 1, kind: input, shape index: {}]   ;;  %s3478_s2 = inlined_call_operand.hbm [shape: f32[2,4,2,8,16], index: 2, kind: output, shape index: {}]  }
   0x1   :  { %3484 = sst [smem:[#allocation9_spill]] %s3476_s0 }
   0x2   :  { %3485 = sst [smem:[#allocation10_spill]] %s3477_s1 }
   0x3   :  { %7 = vsyncpa [#allocation5], 0 }
   0x4   :  { %8 = vsyncpa [#allocation4], 0 }
   0x5   :  { %10 = vsyncpa [#allocation4 + $0x1], 0  ;;  %s2275_s9 = smov 0   ;;  %s2277_s10 = smov 0  }
   0x6   :  { %s2279_s11 = smov 0   ;;  %s2281_s12 = smov 0  }
   0x7   :  { %s2283_s13 = smov 0   ;;  %s2285_s14 = smov 0  }
   0x8   :  { %s2287_s15 = smov 0   ;;  %s2289_s16 = smov 0  }
   0x9 LB: > { %s1873_s17 = sadd.s32 4294967295, %s2251_s16   ;;  %s1874_s18 = sadd.s32 4294967294, %s2251_s16   ;;  %s2251_s16 = sphi %s2289_s16, %s16_s16   ;;  %s2247_s15 = sphi %s2287_s15, %s3503_s15   ;;  %s2243_s14 = sphi %s2285_s14, %s3502_s14   ;;  %s2239_s13 = sphi %s2283_s13, %s3501_s13   ;;  %s2235_s12 = sphi %s2281_s12, %s3500_s12   ;;  %s2231_s11 = sphi %s2279_s11, %s3499_s11   ;;  %s2227_s10 = sphi %s2277_s10, %s3498_s10   ;;  %s2223_s9 = sphi %s2275_s9, %s3497_s9  }
   0xa   : > { %s25_s19 = sadd.s32 1, %s2243_s14  ;;  %s28_s20 = sadd.s32 1, %s2247_s15 }
   0xb   : > { %p26_p0 = scmp.ge.s32.totalorder %s25_s19, 2  ;;  %s37_s21 = sadd.s32 1, %s2231_s11 }
   0xc   : > { %p44_p1 = scmp.ne.s32.totalorder %s2231_s11, %s2227_s10  ;;  %p45_p2 = scmp.eq.s32.totalorder %s2251_s16, 0 }
   0xd   : > { %s3505_s19 = smov (%p26_p0, %s25_s19), 0  ;;  %s3507_s20 = smov (!%p26_p0, %s28_s20), %s2247_s15 }
   0xe   : > { %s33_s22 = ssub.s32 %s2243_s14, %s3505_s19  ;;  %p2328_p3 = por %p45_p2, %p44_p1 }
   0xf   : > { %p30_p4 = scmp.ge.s32.totalorder %s3507_s20, 2  ;;  %p97_p5 = scmp.eq.s32.totalorder %s1873_s17, 3 }
  0x10   : > { %p102_p6 = scmp.ne.s32.totalorder %s2227_s10, %s2223_s9  ;;  %p103_p7 = scmp.eq.s32.totalorder %s1874_s18, 3 }
  0x11   : > { %s3509_s20 = smov (%p30_p4, %s3507_s20), 0  ;;  %p2336_p8 = por %p97_p5, %p44_p1 }
  0x12   : > { %p2340_p9 = por %p103_p7, %p102_p6  ;;  %s32_s26 = ssub.s32 %s2247_s15, %s3509_s20 }
  0x13   : > { %s3487_s24 = scalar_select %p2336_p8, 1, 0 }
  0x14   : > { %s3488_s25 = scalar_select %p2340_p9, 1, 0 }
  0x15   : > { %p1875_p10 = scmp.ge.s32.totalorder %s2251_s16, 1  ;;  %s34_s27 = sor.u32 %s33_s22, %s32_s26 }
  0x16   : > { %p110_p11 = scmp.lt.s32.totalorder %s2251_s16, 5  ;;  %p35_p12 = scmp.eq.s32.totalorder %s34_s27, 0 }
  0x17   : > { %p2352_p0 = scmp.eq.s32.totalorder %s1873_s17, 0  ;;  %s3491_s1 = sld [smem:[#allocation10_spill]] }
  0x18   : > { %p2348_p13 = pnand %p1875_p10, %p110_p11 }
  0x19   : > { %s2357_s30 = scalar_select %p35_p12, %s2231_s11, %s37_s21  }
  0x1a   : > { %p2049_p1 = pneg %p2348_p13 }
  0x1c   : > { %p2050_p2 = pnand %p2352_p0, %p2049_p1 }
  0x1d   : > { %s123_s5 = sshll.u32 %s3491_s1, 4  ;;  %s124_s5 = int_to_ptr.vmem [resolvable:$true] %s123_s5 }
  0x1e   : > { %s2138_s6 = scalar_lea.vmem %s124_s5, 32  ;;  %p2140_p5 = pneg %p2050_p2 }
  0x1f   : > { %p2139_p4 = scmp.ne.s32.totalorder %s124_s5, %s2138_s6  ;;  %p2146_p10 = scmp.lt.s32.totalorder %s124_s5, %s124_s5 }
  0x20   : > { %p2147_p11 = scmp.lt.s32.totalorder %s2138_s6, %s2138_s6 }
  0x21   : > { %p2141_p6 = pnand %p2140_p5, %p2139_p4 }
  0x22   : > { %p2148_p9 = por %p2147_p11, %p2146_p10 }
  0x23   : > { %p2142_p7 = pneg %p2141_p6 }
  0x25   : > { %p2149_p8 = pnand %p2148_p9, %p2142_p7 }
  0x27   : > { %2152 = shalt.err (!%p2149_p8)
}
  0x28   : > { %s2253_s7 = smov [#allocation3]   ;;  %p1877_p12 = scmp.ge.s32.totalorder %s2251_s16, 4 }
  0x29   : > { %2052 = dma.vmem_to_smem (!%p2050_p2), %s124_s5, 32, %s2253_s7, [#allocation5]  }
  0x2a   : > { %130 = sbr.rel (%p1877_p12) target bundleno = 63 (0x3f), region = 20 }
  0x31   : > { %133 = sbr.rel (!%p2328_p3) target bundleno = 63 (0x3f), region = 24  ;;  %s135_s8 = sand.u32 (%p2328_p3), 1, %s2231_s11  }
  0x32   : > { %s1879_s17 = sshll.u32 (%p2328_p3), %s2243_s14, 1  ;;  %s1878_s18 = sshll.u32 (%p2328_p3), %s135_s8, 6 }
  0x33   : > { %s1880_s21 = sshll.u32 (%p2328_p3), %s2247_s15, 4  ;;  %s3492_s0 = sld [smem:[#allocation9_spill]] (%p2328_p3) }
  0x34   : > { %s140_s22 = sadd.s32 (%p2328_p3), %s1880_s21, %s1879_s17  ;;  %s137_s5 = scalar_lea.vmem (%p2328_p3), [#allocation2], %s1878_s18 }
  0x35   : > { %s1881_s26 = sshll.u32 (%p2328_p3), %s140_s22, 3 }
  0x39   : > { %s142_s4 = scalar_lea.vmem %s3492_s0, %s1881_s26 }
  0x3a   : > { %v184_v0 = vld [vmem:[%s142_s4] sm:$0xff]  ;;  %v186_v1 = vld [vmem:[%s142_s4 + $0x8] sm:$0xff] }
  0x3b   : > { %v188_v2 = vld [vmem:[%s142_s4 + $0x20] sm:$0xff]  ;;  %185 = vst [vmem:[%s137_s5] sm:$0xff] %v184_v0  ;;  %187 = vst [vmem:[%s137_s5 + $0x8] sm:$0xff] %v186_v1  ;;  %v190_v3 = vld [vmem:[%s142_s4 + $0x28] sm:$0xff] }
  0x3c   : > { %189 = vst [vmem:[%s137_s5 + $0x10] sm:$0xff] %v188_v2  ;;  %v192_v4 = vld [vmem:[%s142_s4 + $0x40] sm:$0xff]  ;;  %v194_v5 = vld [vmem:[%s142_s4 + $0x48] sm:$0xff]  ;;  %191 = vst [vmem:[%s137_s5 + $0x18] sm:$0xff] %v190_v3 }
  0x3d   : > { %193 = vst [vmem:[%s137_s5 + $0x20] sm:$0xff] %v192_v4  ;;  %195 = vst [vmem:[%s137_s5 + $0x28] sm:$0xff] %v194_v5  ;;  %v196_v6 = vld [vmem:[%s142_s4 + $0x60] sm:$0xff]  ;;  %v198_v7 = vld [vmem:[%s142_s4 + $0x68] sm:$0xff] }
  0x3e   : > { %197 = vst [vmem:[%s137_s5 + $0x30] sm:$0xff] %v196_v6  ;;  %199 = vst [vmem:[%s137_s5 + $0x38] sm:$0xff] %v198_v7 }
  0x3f PF: > { %208 = sbr.rel (%p2348_p13) target bundleno = 405 (0x195), region = 62  ;;  %s2378_s23 = sand.u32 (!%p2348_p13), 1, %s2227_s10  }
  0x40   : > { %s1883_s6 = sshll.u32 (!%p2348_p13), %s2378_s23, 6 }
  0x41   : > { %s2381_s7 = scalar_lea.vmem (!%p2348_p13), [#allocation2], %s1883_s6 }
  0x46   : > { %2214 = dma.done.wait (%p2352_p0), [#allocation5], 32  }
  0x47   : > { %2216 = vsyncadd (%p2352_p0), [#allocation5], 4294967264 }
  0x48   : > { %221 = sfence }
  0x49   : > { %s1902_s8 = sld [smem:[#allocation3 + $0xb]]  ;;  %s1892_s28 = sld [smem:[#allocation3 + $0x1]]  ;;  %v2390_v8 = vld [vmem:[%s2381_s7 + $0x10] sm:$0xff]  ;;  %v2397_v9 = vld [vmem:[%s2381_s7] sm:$0xff]  ;;  %v2400_v11 = vld [vmem:[%s2381_s7 + $0x8] sm:$0x3] }
  0x4a   : > { %s1895_s17 = sld [smem:[#allocation3 + $0x4]]  ;;  %s1893_s18 = sld [smem:[#allocation3 + $0x2]]  ;;  %vm273_vm0 = vcmask 1046528   ;;  %vm311_vm1 = vcmask 1045504   ;;  %v2426_v33 = vld [vmem:[%s2381_s7 + $0x18] sm:$0x3] }
  0x4b   : > { %s1896_s21 = sld [smem:[#allocation3 + $0x5]]  ;;  %s2387_s22 = sld [smem:[#allocation3 + $0xa]]  ;;  %v2467_v2 = vld [vmem:[%s2381_s7 + $0x20] sm:$0xff]  ;;  %v2471_v4 = vld [vmem:[%s2381_s7 + $0x28] sm:$0x3]  ;;  %vm626_vm2 = vcmask 130048  }
  0x4c   : > { %s2392_s26 = sld [smem:[#allocation3 + $0x8]]  ;;  %s2394_s27 = sld [smem:[#allocation3 + $0x7]] }
  0x4d   : > { %s2402_s29 = sld [smem:[#allocation3 + $0xe]]  ;;  %s2404_s3 = sld [smem:[#allocation3 + $0xd]] }
  0x4e   : > { %s2408_s4 = sld [smem:[#allocation3 + $0x11]]  ;;  %s3480_s5 = smov 126  }
  0x4f   : > { %v356_v10 = vstv %s1902_s8  ;;  %v252_v13 = vstv %s1892_s28  ;;  %s3482_s6 = smov 127   ;;  %s2419_s8 = sld [smem:[#allocation3 + $0x10]] }
  0x50   : > { %v357_v12 = vmul.f32 %v2390_v8, %v356_v10  ;;  %v253_v14 = vmul.f32 %v252_v13, %v2397_v9  ;;  %v280_v15 = vstv %s1895_s17  ;;  %v260_v16 = vstv %s1893_s18  ;;  %s2438_s28 = sld [smem:[#allocation3 + $0x17]]  ;;  %s2443_s17 = sld [smem:[#allocation3 + $0x16]] }
  0x51   : > { %v281_v17 = vmul.f32 %v280_v15, %v2397_v9  ;;  %v282_v18 = vmul.f32 %v280_v15, %v2400_v11  ;;  %v261_v19 = vmul.f32 %v260_v16, %v2397_v9  ;;  %v293_v20 = vstv %s1896_s21  ;;  %s2447_s18 = sld [smem:[#allocation3 + $0x14]]  ;;  %s2449_s21 = sld [smem:[#allocation3 + $0x13]] }
  0x52   : > { %359 = vrot.lane.b32.xlu1 %v357_v12, %s3480_s5  ;;  %255 = vrot.lane.b32.xlu0 %v253_v14, %s3482_s6  ;;  %v294_v21 = vmul.f32 %v293_v20, %v2397_v9  ;;  %v295_v22 = vmul.f32 %v293_v20, %v2400_v11  ;;  %v348_v23 = vstv %s2387_s22  ;;  %v331_v24 = vstv %s2392_s26  ;;  %s2456_s22 = sld [smem:[#allocation3 + $0x1a]]  ;;  %s2460_s26 = sld [smem:[#allocation3 + $0x19]] }
  0x53   : > { %v285_v25 = vrot.slane %v281_v17, 1  ;;  %v286_v26 = vrot.slane %v282_v18, 1  ;;  %v349_v27 = vmul.f32 %v2390_v8, %v348_v23  ;;  %v332_v28 = vmul.f32 %v331_v24, %v2397_v9  ;;  %s3493_s0 = smov 126   ;;  %s3494_s1 = smov 127  }
  0x54   : > { %v298_v29 = vrot.slane %v294_v21, 1  ;;  %v299_v30 = vrot.slane %v295_v22, 1  ;;  %v333_v31 = vmul.f32 %v331_v24, %v2400_v11  ;;  %v318_v32 = vstv %s2394_s27  ;;  %s2486_s27 = sld [smem:[#allocation3 + $0x20]]  ;;  %p3495_p8 = scmp.ne.s32.totalorder %s3487_s24, 0 }
  0x55   : > { %v287_v34 = vsel %vm273_vm0, %v285_v25, %v286_v26  ;;  %v336_v35 = vrot.slane %v332_v28, 2  ;;  %v319_v36 = vmul.f32 %v318_v32, %v2397_v9  ;;  %v320_v37 = vmul.f32 %v318_v32, %v2400_v11 }
  0x56   : > { %288 = vrot.lane.b32.xlu1 %v287_v34, %s3482_s6  ;;  %263 = vrot.lane.b32.xlu0 %v261_v19, %s3480_s5  ;;  %v300_v38 = vsel %vm273_vm0, %v298_v29, %v299_v30  ;;  %v337_v39 = vrot.slane %v333_v31, 2  ;;  %v388_v40 = vstv %s2402_s29  ;;  %v375_v41 = vstv %s2404_s3  ;;  %s2488_s29 = sld [smem:[#allocation3 + $0x1f]]  ;;  %s2493_s3 = sld [smem:[#allocation3 + $0x1d]] }
  0x57   : > { %v323_v42 = vrot.slane %v319_v36, 2  ;;  %v324_v43 = vrot.slane %v320_v37, 2  ;;  %v389_v44 = vmul.f32 %v2390_v8, %v388_v40  ;;  %v390_v45 = vmul.f32 %v2426_v33, %v388_v40  ;;  %v2511_v36 = vld [vmem:[%s2381_s7 + $0x30] sm:$0xff] }
  0x58   : > { %v376_v46 = vmul.f32 %v2390_v8, %v375_v41  ;;  %v377_v47 = vmul.f32 %v2426_v33, %v375_v41  ;;  %v425_v48 = vstv %s2408_s4  ;;  %v338_v49 = vsel %vm311_vm1, %v336_v35, %v337_v39  ;;  %s2495_s4 = sld [smem:[#allocation3 + $0x1c]] }
  0x59   : > { %v325_v50 = vsel %vm311_vm1, %v323_v42, %v324_v43  ;;  %v393_v51 = vrot.slane %v389_v44, 1  ;;  %v394_v52 = vrot.slane %v390_v45, 1  ;;  %v426_v53 = vmul.f32 %v2390_v8, %v425_v48 }
  0x5a   : > { %301 = vrot.lane.b32.xlu1 %v300_v38, %s3480_s5  ;;  %351 = vrot.lane.b32.xlu0 %v349_v27, %s3482_s6  ;;  %v427_v54 = vmul.f32 %v2426_v33, %v425_v48  ;;  %v412_v55 = vstv %s2419_s8  ;;  %v380_v56 = vrot.slane %v376_v46, 1  ;;  %v381_v57 = vrot.slane %v377_v47, 1  ;;  %s2502_s8 = sld [smem:[#allocation3 + $0x23]]  ;;  %v2515_v38 = vld [vmem:[%s2381_s7 + $0x38] sm:$0x3] }
  0x5b   : > { %v413_v58 = vmul.f32 %v2390_v8, %v412_v55  ;;  %v414_v59 = vmul.f32 %v2426_v33, %v412_v55  ;;  %v430_v60 = vrot.slane %v426_v53, 2  ;;  %v395_v0 = vsel %vm273_vm0, %v393_v51, %v394_v52 }
  0x5c   : > { %v431_v61 = vrot.slane %v427_v54, 2  ;;  %v382_v1 = vsel %vm273_vm0, %v380_v56, %v381_v57  ;;  %v482_v3 = vstv %s2438_s28  ;;  %v469_v5 = vstv %s2443_s17  ;;  %s2504_s28 = sld [smem:[#allocation3 + $0x22]]  ;;  %s2530_s17 = sld [smem:[#allocation3 + $0x29]] }
  0x5d   : > { %v417_v62 = vrot.slane %v413_v58, 2  ;;  %v418_v63 = vrot.slane %v414_v59, 2  ;;  %v450_v6 = vstv %s2447_s18  ;;  %v442_v7 = vstv %s2449_s21  ;;  %s2532_s18 = sld [smem:[#allocation3 + $0x28]]  ;;  %s2536_s21 = sld [smem:[#allocation3 + $0x26]] }
  0x5e   : > { %339 = vrot.lane.b32.xlu1 %v338_v49, %s3480_s5  ;;  %326 = vrot.lane.b32.xlu0 %v325_v50, %s3482_s6  ;;  %v432_v10 = vsel %vm311_vm1, %v430_v60, %v431_v61  ;;  %v483_v13 = vmul.f32 %v2467_v2, %v482_v3  ;;  %v519_v14 = vstv %s2456_s22  ;;  %v484_v15 = vmul.f32 %v2471_v4, %v482_v3  ;;  %s1928_s22 = sld [smem:[#allocation3 + $0x25]] }
  0x5f   : > { %v419_v12 = vsel %vm311_vm1, %v417_v62, %v418_v63  ;;  %v470_v16 = vmul.f32 %v2467_v2, %v469_v5  ;;  %v471_v17 = vmul.f32 %v2471_v4, %v469_v5  ;;  %v506_v18 = vstv %s2460_s26  ;;  %s2544_s26 = sld [smem:[#allocation3 + $0x2c]] }
  0x60   : > { %v451_v19 = vmul.f32 %v2467_v2, %v450_v6  ;;  %v443_v20 = vmul.f32 %v2467_v2, %v442_v7  ;;  %v520_v21 = vmul.f32 %v2467_v2, %v519_v14  ;;  %v521_v22 = vmul.f32 %v2471_v4, %v519_v14 }
  0x61   : > { %v507_v23 = vmul.f32 %v2467_v2, %v506_v18  ;;  %v508_v24 = vmul.f32 %v2471_v4, %v506_v18  ;;  %v487_v25 = vrot.slane %v483_v13, 1  ;;  %v488_v26 = vrot.slane %v484_v15, 1 }
  0x62   : > { %396 = vrot.lane.b32.xlu1 %v395_v0, %s3480_s5  ;;  %383 = vrot.lane.b32.xlu0 %v382_v1, %s3482_s6  ;;  %v474_v27 = vrot.slane %v470_v16, 1  ;;  %v475_v28 = vrot.slane %v471_v17, 1  ;;  %v524_v29 = vrot.slane %v520_v21, 2  ;;  %v525_v30 = vrot.slane %v521_v22, 2 }
  0x63   : > { %v511_v31 = vrot.slane %v507_v23, 2  ;;  %v512_v32 = vrot.slane %v508_v24, 2  ;;  %v489_v34 = vsel %vm273_vm0, %v487_v25, %v488_v26  ;;  %v576_v37 = vstv %s2486_s27  ;;  %s2546_s27 = sld [smem:[#allocation3 + $0x2b]] }
  0x64   : > { %v476_v35 = vsel %vm273_vm0, %v474_v27, %v475_v28  ;;  %v563_v39 = vstv %s2488_s29  ;;  %v544_v40 = vstv %s2493_s3  ;;  %v536_v41 = vstv %s2495_s4  ;;  %s1965_s29 = sld [smem:[#allocation3 + $0x49]]  ;;  %s1937_s3 = sld [smem:[#allocation3 + $0x2e]] }
  0x65   : > { %v526_v42 = vsel %vm311_vm1, %v524_v29, %v525_v30  ;;  %v513_v43 = vsel %vm311_vm1, %v511_v31, %v512_v32  ;;  %v577_v44 = vmul.f32 %v2511_v36, %v576_v37  ;;  %v613_v45 = vstv %s2502_s8  ;;  %s2573_s4 = sld [smem:[#allocation3 + $0x4c]]  ;;  %s2575_s8 = sld [smem:[#allocation3 + $0x4a]] }
  0x66   : > { %433 = vrot.lane.b32.xlu1 %v432_v10, %s3480_s5  ;;  %420 = vrot.lane.b32.xlu0 %v419_v12, %s3482_s6  ;;  %v578_v46 = vmul.f32 %v2515_v38, %v576_v37  ;;  %v564_v47 = vmul.f32 %v2511_v36, %v563_v39  ;;  %v565_v48 = vmul.f32 %v2515_v38, %v563_v39  ;;  %v600_v49 = vstv %s2504_s28  ;;  %s2002_s28 = sld [smem:[#allocation3 + $0x6d]] }
  0x67   : > { %v545_v50 = vmul.f32 %v2511_v36, %v544_v40  ;;  %v537_v51 = vmul.f32 %v2511_v36, %v536_v41  ;;  %v581_v52 = vrot.slane %v577_v44, 1  ;;  %v614_v53 = vmul.f32 %v2511_v36, %v613_v45 }
  0x68   : > { %v615_v54 = vmul.f32 %v2515_v38, %v613_v45  ;;  %v601_v55 = vmul.f32 %v2511_v36, %v600_v49  ;;  %v582_v56 = vrot.slane %v578_v46, 1  ;;  %v568_v57 = vrot.slane %v564_v47, 1 }
  0x69   : > { %v569_v58 = vrot.slane %v565_v48, 1  ;;  %v602_v59 = vmul.f32 %v2515_v38, %v600_v49  ;;  %v618_v60 = vrot.slane %v614_v53, 2  ;;  %v672_v3 = vstv %s2530_s17  ;;  %s2580_s17 = sld [smem:[#allocation3 + $0x4d]] }
  0x6a   : > { %453 = vrot.lane.b32.xlu1 %v451_v19, %s3480_s5  ;;  %445 = vrot.lane.b32.xlu0 %v443_v20, %s3482_s6  ;;  %v619_v61 = vrot.slane %v615_v54, 2  ;;  %v605_v62 = vrot.slane %v601_v55, 2  ;;  %v583_v63 = vsel %vm273_vm0, %v581_v52, %v582_v56  ;;  %v659_v5 = vstv %s2532_s18  ;;  %s2583_s18 = sld [smem:[#allocation3 + $0x70]] }
  0x6b   : > { %v570_v0 = vsel %vm273_vm0, %v568_v57, %v569_v58  ;;  %v606_v1 = vrot.slane %v602_v59, 2  ;;  %v640_v6 = vstv %s2536_s21  ;;  %v632_v10 = vstv %s1928_s22  ;;  %s2587_s21 = sld [smem:[#allocation3 + $0x6e]]  ;;  %s2589_s22 = sld [smem:[#allocation3 + $0x4f]] }
  0x6c   : > { %v620_v7 = vsel %vm311_vm1, %v618_v60, %v619_v61  ;;  %v673_v12 = vmul.f32 %v672_v3, %v2397_v9  ;;  %v674_v13 = vmul.f32 %v672_v3, %v2400_v11  ;;  %v660_v15 = vmul.f32 %v659_v5, %v2397_v9 }
  0x6d   : > { %v607_v14 = vsel %vm311_vm1, %v605_v62, %v606_v1  ;;  %v661_v16 = vmul.f32 %v659_v5, %v2400_v11  ;;  %v709_v17 = vstv %s2544_s26  ;;  %v696_v18 = vstv %s2546_s27  ;;  %s2594_s26 = sld [smem:[#allocation3 + $0x71]]  ;;  %s2603_s27 = sld [smem:[#allocation3 + $0x50]] }
  0x6e   : > { %490 = vrot.lane.b32.xlu1 %v489_v34, %s3480_s5  ;;  %477 = vrot.lane.b32.xlu0 %v476_v35, %s3482_s6  ;;  %v641_v19 = vmul.f32 %v640_v6, %v2397_v9  ;;  %v633_v20 = vmul.f32 %v632_v10, %v2397_v9  ;;  %v677_v21 = vrot.slane %v673_v12, 1  ;;  %v678_v22 = vrot.slane %v674_v13, 1 }
  0x6f   : > { %v710_v23 = vmul.f32 %v709_v17, %v2397_v9  ;;  %v711_v24 = vmul.f32 %v709_v17, %v2400_v11  ;;  %v664_v25 = vrot.slane %v660_v15, 1  ;;  %v665_v26 = vrot.slane %v661_v16, 1 }
  0x70   : > { %v697_v27 = vmul.f32 %v696_v18, %v2397_v9  ;;  %v698_v28 = vmul.f32 %v696_v18, %v2400_v11  ;;  %v679_v29 = vsel %vm273_vm0, %v677_v21, %v678_v22  ;;  %v1010_v37 = vstv %s1965_s29  ;;  %s2607_s29 = sld [smem:[#allocation3 + $0x73]] }
  0x71   : > { %v714_v30 = vrot.slane %v710_v23, 2  ;;  %v666_v31 = vsel %vm273_vm0, %v664_v25, %v665_v26  ;;  %v715_v32 = vrot.slane %v711_v24, 2  ;;  %v726_v41 = vstv %s1937_s3  ;;  %s2620_s3 = sld [smem:[#allocation3 + $0x74]] }
  0x72   : > { %527 = vrot.lane.b32.xlu1 %v526_v42, %s3480_s5  ;;  %514 = vrot.lane.b32.xlu0 %v513_v43, %s3482_s6  ;;  %v701_v34 = vrot.slane %v697_v27, 2  ;;  %v702_v35 = vrot.slane %v698_v28, 2  ;;  %v1037_v42 = vstv %s2573_s4  ;;  %v1011_v43 = vmul.f32 %v1010_v37, %v2397_v9  ;;  %s2636_s4 = sld [smem:[#allocation3 + $0x52]] }
  0x73   : > { %v716_v39 = vsel %vm311_vm1, %v714_v30, %v715_v32  ;;  %v1018_v44 = vstv %s2575_s8  ;;  %v727_v45 = vmul.f32 %v2390_v8, %v726_v41  ;;  %v1388_v46 = vstv %s2002_s28  ;;  %s1938_s8 = sld [smem:[#allocation3 + $0x2f]]  ;;  %s2647_s28 = sld [smem:[#allocation3 + $0x55]] }
  0x74   : > { %v703_v40 = vsel %vm311_vm1, %v701_v34, %v702_v35  ;;  %v1038_v47 = vmul.f32 %v1037_v42, %v2397_v9  ;;  %v1050_v48 = vstv %s2580_s17  ;;  %v1039_v49 = vmul.f32 %v1037_v42, %v2400_v11  ;;  %s2011_s17 = sld [smem:[#allocation3 + $0x76]] }
  0x75   : > { %v1389_v52 = vmul.f32 %v1388_v46, %v2397_v9  ;;  %v1051_v53 = vmul.f32 %v1050_v48, %v2397_v9  ;;  %v1396_v55 = vstv %s2587_s21  ;;  %v1052_v56 = vmul.f32 %v1050_v48, %v2400_v11  ;;  %s2651_s21 = sld [smem:[#allocation3 + $0x77]] }
  0x76   : > { %547 = vrot.lane.b32.xlu1 %v545_v50, %s3480_s5  ;;  %539 = vrot.lane.b32.xlu0 %v537_v51, %s3482_s6  ;;  %v1415_v50 = vstv %s2583_s18  ;;  %v1019_v51 = vmul.f32 %v1018_v44, %v2397_v9  ;;  %v1042_v54 = vrot.slane %v1038_v47, 1  ;;  %v1074_v57 = vstv %s2589_s22  ;;  %s1940_s18 = sld [smem:[#allocation3 + $0x31]]  ;;  %s2656_s22 = sld [smem:[#allocation3 + $0x32]] }
  0x77   : > { %v1043_v58 = vrot.slane %v1039_v49, 1  ;;  %v1416_v59 = vmul.f32 %v1415_v50, %v2397_v9  ;;  %v1417_v60 = vmul.f32 %v1415_v50, %v2400_v11  ;;  %v1428_v61 = vstv %s2594_s26  ;;  %s2660_s26 = sld [smem:[#allocation3 + $0x53]] }
  0x78   : > { %v1397_v62 = vmul.f32 %v1396_v55, %v2397_v9  ;;  %v1076_v1 = vmul.f32 %v1074_v57, %v2400_v11  ;;  %v1429_v3 = vmul.f32 %v1428_v61, %v2397_v9  ;;  %v1430_v5 = vmul.f32 %v1428_v61, %v2400_v11 }
  0x79   : > { %v1087_v6 = vstv %s2603_s27  ;;  %v1056_v10 = vrot.slane %v1052_v56, 1  ;;  %v1420_v12 = vrot.slane %v1416_v59, 1  ;;  %v1421_v13 = vrot.slane %v1417_v60, 1  ;;  %s2662_s27 = sld [smem:[#allocation3 + $0x79]] }
  0x7a   : > { %584 = vrot.lane.b32.xlu1 %v583_v63, %s3480_s5  ;;  %571 = vrot.lane.b32.xlu0 %v570_v0, %s3482_s6  ;;  %v1055_v63 = vrot.slane %v1051_v53, 1  ;;  %v1075_v0 = vmul.f32 %v1074_v57, %v2397_v9  ;;  %v1088_v16 = vmul.f32 %v1087_v6, %v2397_v9  ;;  %v1080_v17 = vrot.slane %v1076_v1, 2 }
  0x7b   : > { %v1433_v18 = vrot.slane %v1429_v3, 1  ;;  %v1422_v22 = vsel %vm273_vm0, %v1420_v12, %v1421_v13  ;;  %v1465_v25 = vstv %s2620_s3  ;;  %v1104_v35 = vstv %s2636_s4  ;;  %s2671_s3 = sld [smem:[#allocation3 + $0x56]]  ;;  %s2683_s4 = sld [smem:[#allocation3 + $0x58]] }
  0x7c   : > { %v1079_v15 = vrot.slane %v1075_v0, 2  ;;  %v1057_v21 = vsel %vm273_vm0, %v1055_v63, %v1056_v10  ;;  %v1092_v28 = vrot.slane %v1088_v16, 2  ;;  %v1466_v32 = vmul.f32 %v1465_v25, %v2397_v9 }
  0x7d   : > { %v1467_v34 = vmul.f32 %v1465_v25, %v2400_v11  ;;  %v1105_v42 = vmul.f32 %v2390_v8, %v1104_v35  ;;  %v1131_v44 = vstv %s2647_s28  ;;  %v1482_v46 = vstv %s2011_s17  ;;  %s2698_s28 = sld [smem:[#allocation3 + $0x35]]  ;;  %s2701_s17 = sld [smem:[#allocation3 + $0x7c]] }
  0x7e   : > { %621 = vrot.lane.b32.xlu1 %v620_v7, %s3480_s5  ;;  %608 = vrot.lane.b32.xlu0 %v607_v14, %s3482_s6  ;;  %v1044_v7 = vsel %vm273_vm0, %v1042_v54, %v1043_v58  ;;  %v1452_v14 = vstv %s2607_s29  ;;  %v1081_v26 = vsel %vm311_vm1, %v1079_v15, %v1080_v17  ;;  %s2668_s29 = sld [smem:[#allocation3 + $0x7a]]  ;;  %v753_v47 = vstv %s1940_s18  ;;  %s2713_s18 = sld [smem:[#allocation3 + $0x7d]] }
  0x7f   : > { %v1453_v23 = vmul.f32 %v1452_v14, %v2397_v9  ;;  %v1454_v24 = vmul.f32 %v1452_v14, %v2400_v11  ;;  %v1471_v41 = vrot.slane %v1467_v34, 2  ;;  %v1490_v49 = vstv %s2651_s21  ;;  %s2715_s21 = sld [smem:[#allocation3 + $0x59]] }
  0x80   : > { %v1132_v50 = vmul.f32 %v2390_v8, %v1131_v44  ;;  %v754_v53 = vmul.f32 %v2390_v8, %v753_v47  ;;  %v755_v54 = vmul.f32 %v2426_v33, %v753_v47  ;;  %v766_v55 = vstv %s2656_s22  ;;  %s2721_s22 = sld [smem:[#allocation3 + $0x3]] }
  0x81   : > { %v1457_v30 = vrot.slane %v1453_v23, 2  ;;  %v1112_v56 = vstv %s2660_s26  ;;  %v1491_v57 = vmul.f32 %v2390_v8, %v1490_v49  ;;  %v1509_v58 = vstv %s2662_s27  ;;  %s2734_s26 = sld [smem:[#allocation3]]  ;;  %s2741_s27 = sld [smem:[#allocation3 + $0x5b]] }
  0x82   : > { %643 = vrot.lane.b32.xlu1 %v641_v19, %s3480_s5  ;;  %635 = vrot.lane.b32.xlu0 %v633_v20, %s3482_s6  ;;  %v1434_v19 = vrot.slane %v1430_v5, 1  ;;  %v1089_v20 = vmul.f32 %v1087_v6, %v2400_v11  ;;  %v1136_v59 = vrot.slane %v1132_v50, 1  ;;  %v767_v61 = vmul.f32 %v2390_v8, %v766_v55 }
  0x83   : > { %v1113_v63 = vmul.f32 %v2390_v8, %v1112_v56  ;;  %v758_v0 = vrot.slane %v754_v53, 1  ;;  %v759_v1 = vrot.slane %v755_v54, 1  ;;  %v1510_v5 = vmul.f32 %v2390_v8, %v1509_v58 }
  0x84   : > { %v1435_v27 = vsel %vm273_vm0, %v1433_v18, %v1434_v19  ;;  %v1522_v3 = vstv %s2668_s29  ;;  %v1511_v6 = vmul.f32 %v2426_v33, %v1509_v58  ;;  %v771_v12 = vrot.slane %v767_v61, 1  ;;  %s2743_s29 = sld [smem:[#allocation3 + $0x37]] }
  0x85   : > { %v1523_v14 = vmul.f32 %v2390_v8, %v1522_v3  ;;  %v760_v15 = vsel %vm273_vm0, %v758_v0, %v759_v1  ;;  %v1524_v16 = vmul.f32 %v2426_v33, %v1522_v3  ;;  %v1168_v17 = vstv %s2683_s4  ;;  %s2750_s4 = sld [smem:[#allocation3 + $0x6]] }
  0x86   : > { %680 = vrot.lane.b32.xlu1 %v679_v29, %s3480_s5  ;;  %667 = vrot.lane.b32.xlu0 %v666_v31, %s3482_s6  ;;  %v1093_v29 = vrot.slane %v1089_v20, 2  ;;  %v1458_v31 = vrot.slane %v1454_v24, 2  ;;  %v1514_v19 = vrot.slane %v1510_v5, 1  ;;  %v1515_v20 = vrot.slane %v1511_v6, 1 }
  0x87   : > { %v1169_v23 = vmul.f32 %v2390_v8, %v1168_v17  ;;  %v1170_v24 = vmul.f32 %v2426_v33, %v1168_v17  ;;  %v803_v34 = vstv %s2698_s28  ;;  %v1546_v35 = vstv %s2701_s17  ;;  %s2758_s28 = sld [smem:[#allocation3 + $0xc]]  ;;  %s2762_s17 = sld [smem:[#allocation3 + $0x5e]] }
  0x88   : > { %v1094_v37 = vsel %vm311_vm1, %v1092_v28, %v1093_v29  ;;  %v1527_v28 = vrot.slane %v1523_v14, 1  ;;  %v1528_v29 = vrot.slane %v1524_v16, 1  ;;  %v1548_v47 = vmul.f32 %v2426_v33, %v1546_v35 }
  0x89   : > { %v1181_v49 = vstv %s2715_s21  ;;  %s2768_s21 = sld [smem:[#allocation3 + $0x9]] }
  0x8a   : > { %717 = vrot.lane.b32.xlu1 %v716_v39, %s3480_s5  ;;  %704 = vrot.lane.b32.xlu0 %v703_v40, %s3482_s6  ;;  %v1459_v39 = vsel %vm311_vm1, %v1457_v30, %v1458_v31  ;;  %v1470_v40 = vrot.slane %v1466_v32, 2  ;;  %v1516_v30 = vsel %vm273_vm0, %v1514_v19, %v1515_v20  ;;  %v1552_v58 = vrot.slane %v1548_v47, 2 }
  0x8b   : > { %v820_v14 = vstv %s2743_s29  ;;  %v306_v16 = vstv %s2750_s4  ;;  %s2809_s29 = sld [smem:[#allocation3 + $0x83]]  ;;  %s2831_s4 = sld [smem:[#allocation3 + $0x61]] }
  0x8d   : > { %v364_v20 = vstv %s2758_s28  ;;  %s2847_s28 = sld [smem:[#allocation3 + $0x3e]] }
  0x8e   : > { %1013 = vrot.lane.b32.xlu1 %v1011_v43, %s3482_s6  ;;  %729 = vrot.lane.b32.xlu0 %v727_v45, %s3482_s6  ;;  %v734_v43 = vstv %s1938_s8  ;;  %v1472_v45 = vsel %vm311_vm1, %v1470_v40, %v1471_v41  ;;  %s2685_s8 = sld [smem:[#allocation3 + $0x34]] }
  0x8f   : > { %v735_v48 = vmul.f32 %v2390_v8, %v734_v43  ;;  %v804_v43 = vmul.f32 %v2390_v8, %v803_v34 }
  0x91   : > { %v808_v53 = vrot.slane %v804_v43, 2 }
  0x92   : > { %1021 = vrot.lane.b32.xlu1 %v1019_v51, %s3480_s5  ;;  %1391 = vrot.lane.b32.xlu0 %v1389_v52, %s3482_s6  ;;  %v1133_v51 = vmul.f32 %v2426_v33, %v1131_v44  ;;  %v1483_v52 = vmul.f32 %v2390_v8, %v1482_v46  ;;  %v805_v44 = vmul.f32 %v2426_v33, %v803_v34  ;;  %v344_v34 = vstv %s2768_s21  ;;  %s2874_s21 = sld [smem:[#allocation3 + $0x86]] }
  0x93   : > { %v1547_v46 = vmul.f32 %v2390_v8, %v1546_v35  ;;  %v365_v35 = vmul.f32 %v2390_v8, %v364_v20 }
  0x94   : > { %v1137_v60 = vrot.slane %v1133_v51, 1  ;;  %v790_v18 = vstv %s2685_s8  ;;  %v809_v54 = vrot.slane %v805_v44, 2  ;;  %s2756_s8 = sld [smem:[#allocation3 + $0x7f]] }
  0x95   : > { %v791_v25 = vmul.f32 %v2390_v8, %v790_v18 }
  0x96   : > { %1045 = vrot.lane.b32.xlu1 %v1044_v7, %s3482_s6  ;;  %1399 = vrot.lane.b32.xlu0 %v1397_v62, %s3480_s5  ;;  %v768_v62 = vmul.f32 %v2426_v33, %v766_v55  ;;  %v1144_v7 = vstv %s2671_s3  ;;  %v1138_v10 = vsel %vm273_vm0, %v1136_v59, %v1137_v60  ;;  %s2748_s3 = sld [smem:[#allocation3 + $0x38]]  ;;  %v1182_v59 = vmul.f32 %v2390_v8, %v1181_v49 }
  0x97   : > { %v795_v40 = vrot.slane %v791_v25, 2  ;;  %v1183_v60 = vmul.f32 %v2426_v33, %v1181_v49  ;;  %v810_v3 = vsel %vm311_vm1, %v808_v53, %v809_v54  ;;  %v1225_v25 = vstv %s2762_s17  ;;  %s2859_s17 = sld [smem:[#allocation3 + $0x85]] }
  0x98   : > { %v772_v13 = vrot.slane %v768_v62, 1  ;;  %v1186_v6 = vrot.slane %v1182_v59, 2  ;;  %v369_v54 = vrot.slane %v365_v35, 1 }
  0x9a   : > { %1058 = vrot.lane.b32.xlu1 %v1057_v21, %s3480_s5  ;;  %1423 = vrot.lane.b32.xlu0 %v1422_v22, %s3482_s6  ;;  %v1145_v21 = vmul.f32 %v2390_v8, %v1144_v7  ;;  %v1146_v22 = vmul.f32 %v2426_v33, %v1144_v7  ;;  %v1187_v7 = vrot.slane %v1183_v60, 2  ;;  %v1576_v19 = vstv %s2756_s8  ;;  %s2835_s8 = sld [smem:[#allocation3 + $0x3d]] }
  0x9c   : > { %v1149_v31 = vrot.slane %v1145_v21, 1  ;;  %v1150_v32 = vrot.slane %v1146_v22, 1  ;;  %v1188_v22 = vsel %vm311_vm1, %v1186_v6, %v1187_v7  ;;  %v1616_v7 = vstv %s2809_s29  ;;  %s2922_s29 = sld [smem:[#allocation3 + $0x64]] }
  0x9e   : > { %1082 = vrot.lane.b32.xlu1 %v1081_v26, %s3482_s6  ;;  %1436 = vrot.lane.b32.xlu0 %v1435_v27, %s3480_s5  ;;  %v792_v26 = vmul.f32 %v2426_v33, %v790_v18  ;;  %v773_v27 = vsel %vm273_vm0, %v771_v12, %v772_v13  ;;  %v1198_v13 = vstv %s2741_s27  ;;  %s2799_s27 = sld [smem:[#allocation3 + $0x82]] }
  0xa0   : > { %v796_v41 = vrot.slane %v792_v26, 2 }
  0xa2   : > { %1095 = vrot.lane.b32.xlu1 %v1094_v37, %s3480_s5  ;;  %1460 = vrot.lane.b32.xlu0 %v1459_v39, %s3482_s6  ;;  %v1173_v37 = vrot.slane %v1169_v23, 2  ;;  %v1174_v39 = vrot.slane %v1170_v24, 2  ;;  %v797_v51 = vsel %vm311_vm1, %v795_v40, %v796_v41  ;;  %v1199_v23 = vmul.f32 %v2467_v2, %v1198_v13 }
  0xa3   : > { %v821_v24 = vmul.f32 %v2467_v2, %v820_v14 }
  0xa4   : > { %v1175_v50 = vsel %vm311_vm1, %v1173_v37, %v1174_v39  ;;  %v366_v37 = vmul.f32 %v2426_v33, %v364_v20 }
  0xa6   : > { %1107 = vrot.lane.b32.xlu1 %v1105_v42, %s3482_s6  ;;  %1473 = vrot.lane.b32.xlu0 %v1472_v45, %s3480_s5  ;;  %v1529_v42 = vsel %vm273_vm0, %v1527_v28, %v1528_v29  ;;  %v1151_v45 = vsel %vm273_vm0, %v1149_v31, %v1150_v32  ;;  %v307_v28 = vmul.f32 %v306_v16, %v2397_v9 }
  0xa7   : > { %v308_v29 = vmul.f32 %v306_v16, %v2400_v11  ;;  %v1577_v32 = vmul.f32 %v2467_v2, %v1576_v19 }
  0xa9   : > { %v313_v47 = vrot.slane %v308_v29, 2 }
  0xaa   : > { %737 = vrot.lane.b32.xlu1 %v735_v48, %s3480_s5  ;;  %1485 = vrot.lane.b32.xlu0 %v1483_v52, %s3482_s6  ;;  %v1559_v48 = vstv %s2713_s18  ;;  %v268_v52 = vstv %s2721_s22  ;;  %s2766_s18 = sld [smem:[#allocation3 + $0x3a]]  ;;  %s2773_s22 = sld [smem:[#allocation3 + $0xf]] }
  0xab   : > { %v1560_v55 = vmul.f32 %v2390_v8, %v1559_v48  ;;  %v1561_v56 = vmul.f32 %v2426_v33, %v1559_v48  ;;  %v269_v61 = vmul.f32 %v268_v52, %v2397_v9  ;;  %v270_v62 = vmul.f32 %v268_v52, %v2400_v11 }
  0xac   : > { %v1227_v11 = vmul.f32 %v2471_v4, %v1225_v25  ;;  %v2821_v48 = vmul.f32 %v2390_v8, %v344_v34 }
  0xad   : > { %v1564_v0 = vrot.slane %v1560_v55, 2  ;;  %v1565_v1 = vrot.slane %v1561_v56, 2  ;;  %v275_v12 = vrot.slane %v270_v62, 1  ;;  %v370_v55 = vrot.slane %v366_v37, 1 }
  0xae   : > { %1493 = vrot.lane.b32.xlu1 %v1491_v57, %s3480_s5  ;;  %1115 = vrot.lane.b32.xlu0 %v1113_v63, %s3480_s5  ;;  %v1551_v57 = vrot.slane %v1547_v46, 2  ;;  %v249_v63 = vstv %s2734_s26  ;;  %s2781_s26 = sld [smem:[#allocation3 + $0x5c]]  ;;  %v312_v46 = vrot.slane %v307_v28, 2  ;;  %v1262_v28 = vstv %s2831_s4  ;;  %s2942_s4 = sld [smem:[#allocation3 + $0x27]] }
  0xaf   : > { %v250_v17 = vmul.f32 %v249_v63, %v2397_v9  ;;  %v1566_v18 = vsel %vm311_vm1, %v1564_v0, %v1565_v1  ;;  %v1226_v9 = vmul.f32 %v2467_v2, %v1225_v25 }
  0xb0   : > { %v1553_v5 = vsel %vm311_vm1, %v1551_v57, %v1552_v58  ;;  %v401_v39 = vstv %s2773_s22  ;;  %v1231_v57 = vrot.slane %v1227_v11, 1  ;;  %s2888_s22 = sld [smem:[#allocation3 + $0x62]] }
  0xb1   : > { %v403_v52 = vmul.f32 %v2426_v33, %v401_v39  ;;  %v1230_v56 = vrot.slane %v1226_v9, 1  ;;  %v1603_v33 = vstv %s2799_s27  ;;  %s2913_s27 = sld [smem:[#allocation3 + $0x1b]] }
  0xb2   : > { %1139 = vrot.lane.b32.xlu1 %v1138_v10, %s3482_s6  ;;  %761 = vrot.lane.b32.xlu0 %v760_v15, %s3482_s6  ;;  %v274_v10 = vrot.slane %v269_v61, 1  ;;  %v828_v15 = vstv %s2748_s3  ;;  %s2824_s3 = sld [smem:[#allocation3 + $0x5f]]  ;;  %v1605_v13 = vmul.f32 %v2471_v4, %v1603_v33 }
  0xb3   : > { %v829_v31 = vmul.f32 %v2467_v2, %v828_v15  ;;  %v407_v6 = vrot.slane %v403_v52, 2  ;;  %v2855_v15 = vsel %vm273_vm0, %v369_v54, %v370_v55  ;;  %v1232_v16 = vsel %vm273_vm0, %v1230_v56, %v1231_v57 }
  0xb4   : > { %v1206_v49 = vstv %s2781_s26  ;;  %v1640_v56 = vstv %s2859_s17  ;;  %s2902_s26 = sld [smem:[#allocation3 + $0x1e]]  ;;  %s2964_s17 = sld [smem:[#allocation3 + $0x2a]] }
  0xb5   : > { %v1207_v63 = vmul.f32 %v2467_v2, %v1206_v49 }
  0xb6   : > { %774 = vrot.lane.b32.xlu1 %v773_v27, %s3480_s5  ;;  %1517 = vrot.lane.b32.xlu0 %v1516_v30, %s3482_s6  ;;  %v276_v27 = vsel %vm273_vm0, %v274_v10, %v275_v12  ;;  %v847_v30 = vstv %s2766_s18  ;;  %v314_v10 = vsel %vm311_vm1, %v312_v46, %v313_v47  ;;  %v1604_v12 = vmul.f32 %v2467_v2, %v1603_v33  ;;  %s2863_s18 = sld [smem:[#allocation3 + $0x18]] }
  0xb7   : > { %v849_v43 = vmul.f32 %v2471_v4, %v847_v30  ;;  %v897_v47 = vstv %s2847_s28  ;;  %s2956_s28 = sld [smem:[#allocation3 + $0x43]] }
  0xb8   : > { %v1608_v29 = vrot.slane %v1604_v12, 1 }
  0xb9   : > { %v853_v59 = vrot.slane %v849_v43, 1  ;;  %v1263_v43 = vmul.f32 %v2467_v2, %v1262_v28 }
  0xba   : > { %1530 = vrot.lane.b32.xlu1 %v1529_v42, %s3480_s5  ;;  %1152 = vrot.lane.b32.xlu0 %v1151_v45, %s3480_s5  ;;  %s2777_s5 = sld [smem:[#allocation3 + $0x80]]  ;;  %v848_v42 = vmul.f32 %v2467_v2, %v847_v30  ;;  %v1609_v30 = vrot.slane %v1605_v13, 1 }
  0xbc   : > { %v1610_v49 = vsel %vm273_vm0, %v1608_v29, %v1609_v30  ;;  %v495_v33 = vstv %s2863_s18  ;;  %s2968_s18 = sld [smem:[#allocation3 + $0x88]] }
  0xbe   : > { %1176 = vrot.lane.b32.xlu1 %v1175_v50, %s3482_s6  ;;  %798 = vrot.lane.b32.xlu0 %v797_v51, %s3482_s6  ;;  %s2785_s6 = sld [smem:[#allocation3 + $0x3b]]  ;;  %v402_v51 = vmul.f32 %v2390_v8, %v401_v39  ;;  %v852_v8 = vrot.slane %v848_v42, 1 }
  0xc0   : > { %v1584_v41 = vstv %s2777_s5  ;;  %s2829_s5 = sld [smem:[#allocation3 + $0x12]] }
  0xc1   : > { %v1585_v62 = vmul.f32 %v2467_v2, %v1584_v41 }
  0xc2   : > { %811 = vrot.lane.b32.xlu1 %v810_v3, %s3493_s0  ;;  %1554 = vrot.lane.b32.xlu0 %v1553_v5, %s3494_s1  ;;  %v406_v5 = vrot.slane %v402_v51, 2 }
  0xc4   : > { %v2793_v21 = vpop.permute.xlu1 %359  ;;  %v256_v26 = vpop.permute.xlu0 %255  ;;  %v860_v53 = vstv %s2785_s6  ;;  %s2838_s6 = sld [smem:[#allocation3 + $0x15]] }
  0xc5   : > { %v258_v40 = vadd.f32 %v256_v26, %v250_v17  ;;  %v861_v0 = vmul.f32 %v2467_v2, %v860_v53  ;;  %v862_v1 = vmul.f32 %v2471_v4, %v860_v53  ;;  %v854_v17 = vsel %vm273_vm0, %v852_v8, %v853_v59 }
  0xc6   : > { %1567 = vrot.lane.b32.xlu1 %v1566_v18, %s3493_s0  ;;  %1189 = vrot.lane.b32.xlu0 %v1188_v22, %s3493_s0  ;;  %v2866_v26 = vsel %vm311_vm1, %v406_v5, %v407_v6  ;;  %v1267_v59 = vrot.slane %v1263_v43, 2  ;;  %v1642_v5 = vmul.f32 %v2471_v4, %v1640_v56  ;;  %v1653_v6 = vstv %s2874_s21  ;;  %s2980_s21 = sld [smem:[#allocation3 + $0x24]] }
  0xc7   : > { %v865_v20 = vrot.slane %v861_v0, 1  ;;  %v866_v22 = vrot.slane %v862_v1, 1  ;;  %v899_v0 = vmul.f32 %v2471_v4, %v897_v47 }
  0xc8   : > { %v289_v44 = vpop.permute.xlu1 %288  ;;  %v264_v45 = vpop.permute.xlu0 %263 }
  0xc9   : > { %v266_v50 = vadd.f32 %v264_v45, %v258_v40  ;;  %v867_v40 = vsel %vm273_vm0, %v865_v20, %v866_v22  ;;  %v1264_v45 = vmul.f32 %v2471_v4, %v1262_v28  ;;  %v903_v20 = vrot.slane %v899_v0, 2 }
  0xca   : > { %1201 = vrot.lane.b32.xlu1 %v1199_v23, %s3494_s1  ;;  %823 = vrot.lane.b32.xlu0 %v821_v24, %s3494_s1  ;;  %v1617_v23 = vmul.f32 %v2467_v2, %v1616_v7  ;;  %v1238_v24 = vstv %s2824_s3  ;;  %v458_v9 = vstv %s2838_s6  ;;  %s2928_s3 = sld [smem:[#allocation3 + $0x40]]  ;;  %v1654_v22 = vmul.f32 %v2467_v2, %v1653_v6  ;;  %s2954_s6 = sld [smem:[#allocation3 + $0x41]] }
  0xcb   : > { %v278_v58 = vadd.f32 %v276_v27, %v266_v50  ;;  %v438_v27 = vstv %s2829_s5  ;;  %v1239_v35 = vmul.f32 %v2467_v2, %v1238_v24  ;;  %v1240_v37 = vmul.f32 %v2471_v4, %v1238_v24  ;;  %s2937_s5 = sld [smem:[#allocation3 + $0x21]] }
  0xcc   : > { %v302_v60 = vpop.permute.xlu1 %301  ;;  %v2840_v61 = vpop.permute.xlu0 %351  ;;  %v2885_v41 = vmul.f32 %v2467_v2, %v438_v27  ;;  %v1621_v42 = vrot.slane %v1617_v23, 1  ;;  %v2897_v51 = vmul.f32 %v2467_v2, %v458_v9  ;;  %v2909_v8 = vmul.f32 %v2471_v4, %v458_v9 }
  0xcd   : > { %v291_v3 = vadd.f32 %v289_v44, %v278_v58  ;;  %v1243_v54 = vrot.slane %v1239_v35, 1  ;;  %v1244_v55 = vrot.slane %v1240_v37, 1  ;;  %v1655_v23 = vmul.f32 %v2471_v4, %v1653_v6  ;;  %v3030_v6 = vld [vmem:[%s2381_s7 + $0x38] sm:$0x3] }
  0xce   : > { %831 = vrot.lane.b32.xlu1 %v829_v31, %s3493_s0  ;;  %1579 = vrot.lane.b32.xlu0 %v1577_v32, %s3494_s1  ;;  %v1618_v31 = vmul.f32 %v2471_v4, %v1616_v7  ;;  %v884_v32 = vstv %s2835_s8  ;;  %v463_v12 = vrot.slane %v2897_v51, 1  ;;  %v1646_v28 = vrot.slane %v1642_v5, 2  ;;  %s2948_s8 = sld [smem:[#allocation3 + $0x67]] }
  0xcf   : > { %v304_v14 = vadd.f32 %v302_v60, %v291_v3  ;;  %v885_v46 = vmul.f32 %v2467_v2, %v884_v32  ;;  %v886_v52 = vmul.f32 %v2471_v4, %v884_v32  ;;  %v898_v60 = vmul.f32 %v2467_v2, %v897_v47 }
  0xd0   : > { %v340_v18 = vpop.permute.xlu1 %339  ;;  %v327_v19 = vpop.permute.xlu0 %326  ;;  %v1622_v50 = vrot.slane %v1618_v31, 1  ;;  %v1641_v3 = vmul.f32 %v2467_v2, %v1640_v56  ;;  %v552_v31 = vstv %s2902_s26  ;;  %s3000_s26 = sld [smem:[#allocation3 + $0x65]] }
  0xd1   : > { %v316_v25 = vadd.f32 %v314_v10, %v304_v14  ;;  %v890_v1 = vrot.slane %v886_v52, 2  ;;  %v1245_v10 = vsel %vm273_vm0, %v1243_v54, %v1244_v55  ;;  %v589_v55 = vstv %s2937_s5  ;;  %s3060_s5 = sld [smem:[#allocation3 + $0x68]] }
  0xd2   : > { %1587 = vrot.lane.b32.xlu1 %v1585_v62, %s3493_s0  ;;  %1209 = vrot.lane.b32.xlu0 %v1207_v63, %s3493_s0  ;;  %v1268_v62 = vrot.slane %v1264_v45, 2  ;;  %v889_v63 = vrot.slane %v885_v46, 2  ;;  %v1645_v27 = vrot.slane %v1641_v3, 2  ;;  %v2977_v45 = vmul.f32 %v2515_v38, %v552_v31 }
  0xd3   : > { %v329_v34 = vadd.f32 %v327_v19, %v316_v25  ;;  %v1275_v19 = vstv %s2888_s22  ;;  %s2998_s22 = sld [smem:[#allocation3 + $0x89]] }
  0xd4   : > { %v2879_v11 = vpop.permute.xlu1 %396  ;;  %v2881_v39 = vpop.permute.xlu0 %383  ;;  %v1269_v24 = vsel %vm311_vm1, %v1267_v59, %v1268_v62  ;;  %v891_v25 = vsel %vm311_vm1, %v889_v63, %v890_v1  ;;  %v1276_v29 = vmul.f32 %v2467_v2, %v1275_v19  ;;  %v1277_v30 = vmul.f32 %v2471_v4, %v1275_v19 }
  0xd5   : > { %v342_v44 = vadd.f32 %v340_v18, %v329_v34  ;;  %v902_v18 = vrot.slane %v898_v60, 2  ;;  %v464_v34 = vrot.slane %v2909_v8, 1  ;;  %v1647_v43 = vsel %vm311_vm1, %v1645_v27, %v1646_v28  ;;  %v3015_v60 = vld [vmem:[%s2381_s7 + $0x30] sm:$0xff] }
  0xd6   : > { %1233 = vrot.lane.b32.xlu1 %v1232_v16, %s3494_s1  ;;  %855 = vrot.lane.b32.xlu0 %v854_v17, %s3494_s1  ;;  %v496_v16 = vmul.f32 %v2467_v2, %v495_v33  ;;  %v497_v17 = vmul.f32 %v2471_v4, %v495_v33  ;;  %v1280_v47 = vrot.slane %v1276_v29, 2  ;;  %v648_v59 = vstv %s2942_s4  ;;  %s3072_s4 = sld [smem:[#allocation3 + $0x6a]] }
  0xd7   : > { %v346_v53 = vadd.f32 %v2821_v48, %v342_v44  ;;  %v904_v4 = vsel %vm311_vm1, %v902_v18, %v903_v20  ;;  %v2974_v44 = vmul.f32 %v2511_v36, %v552_v31  ;;  %v2985_v51 = vsel %vm273_vm0, %v463_v12, %v464_v34  ;;  %v3044_v18 = vld [vmem:[%s2381_s7 + $0x8] sm:$0x3] }
  0xd8   : > { %v2904_v57 = vpop.permute.xlu1 %433  ;;  %v2906_v58 = vpop.permute.xlu0 %420  ;;  %v500_v37 = vrot.slane %v496_v16, 2  ;;  %v501_v9 = vrot.slane %v497_v17, 2  ;;  %v3022_v0 = vmul.f32 %v3015_v60, %v589_v55  ;;  %v941_v1 = vstv %s2956_s28  ;;  %s3101_s28 = sld [smem:[#allocation3 + $0x47]] }
  0xd9   : > { %v354_v48 = vadd.f32 %v2840_v61, %v346_v53  ;;  %v1623_v61 = vsel %vm273_vm0, %v1621_v42, %v1622_v50  ;;  %v1659_v42 = vrot.slane %v1655_v23, 2  ;;  %v914_v50 = vstv %s2928_s3  ;;  %s3058_s3 = sld [smem:[#allocation3 + $0x8c]] }
  0xda   : > { %868 = vrot.lane.b32.xlu1 %v867_v40, %s3493_s0  ;;  %1611 = vrot.lane.b32.xlu0 %v1610_v49, %s3494_s1  ;;  %v532_v40 = vstv %s2913_s27  ;;  %v1281_v49 = vrot.slane %v1277_v30, 2  ;;  %v2990_v53 = vsel %vm311_vm1, %v500_v37, %v501_v9  ;;  %s3006_s27 = sld [smem:[#allocation3 + $0x44]]  ;;  %v557_v33 = vrot.slane %v2974_v44, 1 }
  0xdb   : > { %v362_v7 = vadd.f32 %v2793_v21, %v354_v48  ;;  %v2995_v54 = vmul.f32 %v2511_v36, %v532_v40  ;;  %v1319_v48 = vstv %s2948_s8  ;;  %v685_v12 = vstv %s2964_s17  ;;  %s3074_s8 = sld [smem:[#allocation3 + $0x46]] }
  0xdc   : > { %v2930_v13 = vpop.permute.xlu1 %453  ;;  %v2932_v14 = vpop.permute.xlu0 %445  ;;  %v1282_v63 = vsel %vm311_vm1, %v1280_v47, %v1281_v49  ;;  %v1670_v17 = vstv %s2968_s18  ;;  %v650_v19 = vmul.f32 %v3044_v18, %v648_v59  ;;  %v629_v20 = vstv %s2980_s21  ;;  %s3109_s17 = sld [smem:[#allocation3 + $0x8e]]  ;;  %s3123_s18 = sld [smem:[#allocation3 + $0x8f]] }
  0xdd   : > { %v373_v21 = vadd.f32 %v2855_v15, %v362_v7  ;;  %v3033_v7 = vmul.f32 %v3030_v6, %v589_v55  ;;  %v942_v23 = vmul.f32 %v3015_v60, %v941_v1  ;;  %v687_v28 = vmul.f32 %v3044_v18, %v685_v12  ;;  %s3129_s21 = sld [smem:[#allocation3 + $0x6b]] }
  0xde   : > { %1624 = vrot.lane.b32.xlu1 %v1623_v61, %s3493_s0  ;;  %1246 = vrot.lane.b32.xlu0 %v1245_v10, %s3493_s0  ;;  %v922_v61 = vstv %s2954_s6  ;;  %v3037_v10 = vld [vmem:[%s2381_s7] sm:$0xff]  ;;  %v1671_v30 = vmul.f32 %v3015_v60, %v1670_v17  ;;  %v654_v9 = vrot.slane %v650_v19, 1  ;;  %s3082_s6 = sld [smem:[#allocation3 + $0x2d]] }
  0xdf   : > { %v386_v15 = vadd.f32 %v2881_v39, %v373_v21  ;;  %v1658_v39 = vrot.slane %v1654_v22, 2  ;;  %v1320_v21 = vmul.f32 %v3015_v60, %v1319_v48  ;;  %v1321_v22 = vmul.f32 %v3030_v6, %v1319_v48 }
  0xe0   : > { %v2958_v32 = vpop.permute.xlu1 %490  ;;  %v2961_v35 = vpop.permute.xlu0 %477  ;;  %v686_v27 = vmul.f32 %v3037_v10, %v685_v12  ;;  %v1678_v31 = vstv %s2998_s22  ;;  %v1300_v34 = vstv %s3000_s26  ;;  %v954_v40 = vstv %s3006_s27  ;;  %s3162_s22 = sld [smem:[#allocation3 + $0x4b]]  ;;  %s3164_s26 = sld [smem:[#allocation3 + $0x48]] }
  0xe1   : > { %v399_v2 = vadd.f32 %v2879_v11, %v386_v15  ;;  %v1292_v11 = vstv %s2922_s29  ;;  %v1660_v56 = vsel %vm311_vm1, %v1658_v39, %v1659_v42  ;;  %s3008_s29 = sld [smem:[#allocation3 + $0x8b]]  ;;  %v1325_v39 = vrot.slane %v1321_v22, 1  ;;  %s1885_s27 = sshll.u32 %s2378_s23, 5 }
  0xe2   : > { %1270 = vrot.lane.b32.xlu1 %v1269_v24, %s3494_s1  ;;  %892 = vrot.lane.b32.xlu0 %v891_v25, %s3494_s1  ;;  %v1293_v8 = vmul.f32 %v2511_v36, %v1292_v11  ;;  %v915_v36 = vmul.f32 %v3015_v60, %v914_v50  ;;  %v923_v25 = vmul.f32 %v3015_v60, %v922_v61  ;;  %v946_v42 = vrot.slane %v942_v23, 1 }
  0xe3   : > { %v410_v46 = vadd.f32 %v2866_v26, %v399_v2  ;;  %v691_v11 = vrot.slane %v687_v28, 2  ;;  %v955_v49 = vmul.f32 %v3015_v60, %v954_v40  ;;  %v956_v50 = vmul.f32 %v3030_v6, %v954_v40 }
  0xe4   : > { %v2987_v52 = vpop.permute.xlu1 %527  ;;  %v2992_v38 = vpop.permute.xlu0 %514  ;;  %v978_v22 = vstv %s3074_s8  ;;  %v722_v28 = vstv %s3082_s6  ;;  %s1976_s8 = sld [smem:[#allocation3 + $0x54]]  ;;  %s1979_s6 = sld [smem:[#allocation3 + $0x57]] }
  0xe5   : > { %v423_v26 = vadd.f32 %v2906_v58, %v410_v46  ;;  %v558_v58 = vrot.slane %v2977_v45, 1  ;;  %v960_v12 = vrot.slane %v956_v50, 1  ;;  %v1734_v50 = vstv %s3109_s17  ;;  %s2010_s17 = sld [smem:[#allocation3 + $0x75]] }
  0xe6   : > { %905 = vrot.lane.b32.xlu1 %v904_v4, %s3493_s0  ;;  %1648 = vrot.lane.b32.xlu0 %v1647_v43, %s3494_s1  ;;  %v1324_v4 = vrot.slane %v1320_v21, 1 }
  0xe7   : > { %v436_v62 = vadd.f32 %v2904_v57, %v423_v26  ;;  %v649_v57 = vmul.f32 %v3037_v10, %v648_v59  ;;  %v1697_v2 = vstv %s3008_s29  ;;  %v3080_v45 = vsel %vm273_vm0, %v557_v33, %v558_v58  ;;  %s1970_s29 = sld [smem:[#allocation3 + $0x4e]] }
  0xe8   : > { %v3025_v3 = vpop.permute.xlu1 %547  ;;  %v3027_v5 = vpop.permute.xlu0 %539  ;;  %v1698_v55 = vmul.f32 %v3015_v60, %v1697_v2  ;;  %v1301_v59 = vmul.f32 %v3015_v60, %v1300_v34  ;;  %v1326_v58 = vsel %vm273_vm0, %v1324_v4, %v1325_v39 }
  0xe9   : > { %v440_v16 = vadd.f32 %v2885_v41, %v436_v62  ;;  %v943_v41 = vmul.f32 %v3030_v6, %v941_v1  ;;  %v653_v37 = vrot.slane %v649_v57, 1  ;;  %v1710_v62 = vstv %s3058_s3  ;;  %s2004_s3 = sld [smem:[#allocation3 + $0x6f]] }
  0xea   : > { %1661 = vrot.lane.b32.xlu1 %v1660_v56, %s3493_s0  ;;  %1283 = vrot.lane.b32.xlu0 %v1282_v63, %s3493_s0  ;;  %v630_v56 = vmul.f32 %v3037_v10, %v629_v20  ;;  %v1332_v63 = vstv %s3060_s5  ;;  %v959_v57 = vrot.slane %v955_v49, 1  ;;  %v1356_v20 = vstv %s3072_s4  ;;  %s2001_s5 = sld [smem:[#allocation3 + $0x6c]]  ;;  %s1973_s4 = sld [smem:[#allocation3 + $0x51]] }
  0xeb   : > { %v448_v24 = vadd.f32 %v2932_v14, %v440_v16  ;;  %v947_v43 = vrot.slane %v943_v41, 1  ;;  %v655_v33 = vsel %vm273_vm0, %v653_v37, %v654_v9  ;;  %v1702_v16 = vrot.slane %v1698_v55, 1 }
  0xec   : > { %v3062_v15 = vpop.permute.xlu1 %584  ;;  %v3064_v29 = vpop.permute.xlu0 %571  ;;  %v1711_v23 = vmul.f32 %v3015_v60, %v1710_v62  ;;  %v1712_v41 = vmul.f32 %v3030_v6, %v1710_v62  ;;  %v1357_v34 = vmul.f32 %v3015_v60, %v1356_v20  ;;  %v1358_v37 = vmul.f32 %v3030_v6, %v1356_v20 }
  0xed   : > { %v456_v14 = vadd.f32 %v2930_v13, %v448_v24  ;;  %v690_v13 = vrot.slane %v686_v27, 2  ;;  %v1333_v24 = vmul.f32 %v3015_v60, %v1332_v63  ;;  %v980_v9 = vmul.f32 %v3030_v6, %v978_v22 }
  0xee   : > { %1295 = vrot.lane.b32.xlu1 %v1293_v8, %s3494_s1  ;;  %917 = vrot.lane.b32.xlu0 %v915_v36, %s3494_s1  ;;  %v1679_v8 = vmul.f32 %v3015_v60, %v1678_v31  ;;  %v948_v36 = vsel %vm273_vm0, %v946_v42, %v947_v43  ;;  %v1715_v39 = vrot.slane %v1711_v23, 1  ;;  %v1716_v42 = vrot.slane %v1712_v41, 1 }
  0xef   : > { %v467_v44 = vadd.f32 %v2985_v51, %v456_v14  ;;  %v1699_v51 = vmul.f32 %v3030_v6, %v1697_v2  ;;  %v3105_v48 = vsel %vm311_vm1, %v690_v13, %v691_v11  ;;  %v979_v14 = vmul.f32 %v3015_v60, %v978_v22 }
  0xf0   : > { %v3084_v46 = vpop.permute.xlu1 %621  ;;  %v3086_v47 = vpop.permute.xlu0 %608  ;;  %v961_v2 = vsel %vm273_vm0, %v959_v57, %v960_v12  ;;  %v1337_v43 = vrot.slane %v1333_v24, 1  ;;  %v1735_v62 = vmul.f32 %v3015_v60, %v1734_v50  ;;  %v1747_v57 = vstv %s3123_s18  ;;  %s2013_s18 = sld [smem:[#allocation3 + $0x78]] }
  0xf1   : > { %v480_v26 = vadd.f32 %v2961_v35, %v467_v44  ;;  %v1703_v17 = vrot.slane %v1699_v51, 1  ;;  %v991_v44 = vstv %s3101_s28  ;;  %v1361_v51 = vrot.slane %v1357_v34, 2  ;;  %s1939_s28 = sld [smem:[#allocation3 + $0x30]] }
  0xf2   : > { %925 = vrot.lane.b32.xlu1 %v923_v25, %s3493_s0  ;;  %1673 = vrot.lane.b32.xlu0 %v1671_v30, %s3494_s1  ;;  %v1369_v20 = vstv %s3129_s21  ;;  %v1739_v41 = vrot.slane %v1735_v62, 2  ;;  %s3246_s21 = sld [smem:[#allocation3 + $0x33]] }
  0xf3   : > { %v493_v35 = vadd.f32 %v2958_v32, %v480_v26  ;;  %v594_v32 = vrot.slane %v3022_v0, 2  ;;  %v1704_v4 = vsel %vm273_vm0, %v1702_v16, %v1703_v17  ;;  %v1362_v26 = vrot.slane %v1358_v37, 2 }
  0xf4   : > { %v644_v1 = vpop.permute.xlu1 %643  ;;  %v636_v61 = vpop.permute.xlu0 %635 }
  0xf5   : > { %v504_v19 = vadd.f32 %v2990_v53, %v493_v35  ;;  %v638_v21 = vadd.f32 %v636_v61, %v630_v56  ;;  %v1334_v53 = vmul.f32 %v3030_v6, %v1332_v63  ;;  %v983_v56 = vrot.slane %v979_v14, 2 }
  0xf6   : > { %1681 = vrot.lane.b32.xlu1 %v1679_v8, %s3493_s0  ;;  %1303 = vrot.lane.b32.xlu0 %v1301_v59, %s3493_s0  ;;  %v984_v8 = vrot.slane %v980_v9, 2  ;;  %v1717_v35 = vsel %vm273_vm0, %v1715_v39, %v1716_v42  ;;  %v1736_v63 = vmul.f32 %v3030_v6, %v1734_v50 }
  0xf7   : > { %v517_v25 = vadd.f32 %v2992_v38, %v504_v19  ;;  %v646_v27 = vadd.f32 %v644_v1, %v638_v21  ;;  %v1338_v49 = vrot.slane %v1334_v53, 1  ;;  %v1363_v19 = vsel %vm311_vm1, %v1361_v51, %v1362_v26 }
  0xf8   : > { %v681_v30 = vpop.permute.xlu1 %680  ;;  %v668_v31 = vpop.permute.xlu0 %667  ;;  %v985_v21 = vsel %vm311_vm1, %v983_v56, %v984_v8  ;;  %v1740_v24 = vrot.slane %v1736_v63, 2  ;;  %v1370_v53 = vmul.f32 %v3015_v60, %v1369_v20 }
  0xf9   : > { %v530_v38 = vadd.f32 %v2987_v52, %v517_v25  ;;  %v657_v40 = vadd.f32 %v655_v33, %v646_v27  ;;  %v1339_v61 = vsel %vm273_vm0, %v1337_v43, %v1338_v49  ;;  %v1748_v25 = vmul.f32 %v3015_v60, %v1747_v57 }
  0xfa   : > { %1327 = vrot.lane.b32.xlu1 %v1326_v58, %s3494_s1  ;;  %949 = vrot.lane.b32.xlu0 %v948_v36, %s3494_s1  ;;  %v992_v58 = vmul.f32 %v3015_v60, %v991_v44  ;;  %v993_v36 = vmul.f32 %v3030_v6, %v991_v44  ;;  %v1749_v27 = vmul.f32 %v3030_v6, %v1747_v57  ;;  %v1026_v44 = vstv %s3162_s22  ;;  %s3259_s22 = sld [smem:[#allocation3 + $0x7b]] }
  0xfb   : > { %v534_v13 = vadd.f32 %v2995_v54, %v530_v38  ;;  %v670_v11 = vadd.f32 %v668_v31, %v657_v40  ;;  %v595_v54 = vrot.slane %v3033_v7, 2  ;;  %v3155_v7 = vld [vmem:[%s2381_s7 + $0x10] sm:$0xff]  ;;  %v1741_v38 = vsel %vm311_vm1, %v1739_v41, %v1740_v24 }
  0xfc   : > { %v718_v55 = vpop.permute.xlu1 %717  ;;  %v705_v52 = vpop.permute.xlu0 %704  ;;  %v723_v16 = vmul.f32 %v3155_v7, %v722_v28  ;;  %v997_v23 = vrot.slane %v993_v36, 2  ;;  %v1752_v0 = vrot.slane %v1748_v25, 2  ;;  %v1753_v40 = vrot.slane %v1749_v27, 2 }
  0xfd   : > { %v542_v59 = vadd.f32 %v3027_v5, %v534_v13  ;;  %v683_v33 = vadd.f32 %v681_v30, %v670_v11  ;;  %v1371_v30 = vmul.f32 %v3030_v6, %v1369_v20  ;;  %v596_v31 = vsel %vm311_vm1, %v594_v32, %v595_v54 }
  0xfe   : > { %962 = vrot.lane.b32.xlu1 %v961_v2, %s3493_s0  ;;  %1705 = vrot.lane.b32.xlu0 %v1704_v4, %s3494_s1  ;;  %v1374_v4 = vrot.slane %v1370_v53, 2  ;;  %v1007_v13 = vstv %s3164_s26  ;;  %v1754_v49 = vsel %vm311_vm1, %v1752_v0, %v1753_v40  ;;  %v1063_v54 = vstv %s1970_s29  ;;  %s3265_s26 = sld [smem:[#allocation3 + $0x5a]]  ;;  %s3287_s29 = sld [smem:[#allocation3 + $0x36]] }
  0xff   : > { %v550_v5 = vadd.f32 %v3025_v3, %v542_v59  ;;  %v694_v1 = vadd.f32 %v3105_v48, %v683_v33  ;;  %v996_v48 = vrot.slane %v992_v58, 2  ;;  %v1375_v39 = vrot.slane %v1371_v30, 2 }
 0x100   : > { %v3152_v12 = vpop.permute.xlu1 %1013  ;;  %v730_v17 = vpop.permute.xlu0 %729  ;;  %v1008_v56 = vmul.f32 %v3037_v10, %v1007_v13 }
 0x101   : > { %v561_v22 = vadd.f32 %v3080_v45, %v550_v5  ;;  %v707_v3 = vadd.f32 %v705_v52, %v694_v1  ;;  %v1376_v50 = vsel %vm311_vm1, %v1374_v4, %v1375_v39  ;;  %v1028_v52 = vmul.f32 %v3044_v18, %v1026_v44 }
 0x102   : > { %1718 = vrot.lane.b32.xlu1 %v1717_v35, %s3493_s0  ;;  %1340 = vrot.lane.b32.xlu0 %v1339_v61, %s3493_s0  ;;  %v1016_v58 = vadd.f32 %v3152_v12, %v1008_v56  ;;  %v1064_v5 = vmul.f32 %v3037_v10, %v1063_v54  ;;  %v1065_v1 = vmul.f32 %v3044_v18, %v1063_v54 }
 0x103   : > { %v574_v28 = vadd.f32 %v3064_v29, %v561_v22  ;;  %v720_v45 = vadd.f32 %v718_v55, %v707_v3  ;;  %v998_v29 = vsel %vm311_vm1, %v996_v48, %v997_v23  ;;  %v1027_v55 = vmul.f32 %v3037_v10, %v1026_v44 }
 0x104   : > { %v1022_v34 = vpop.permute.xlu1 %1021  ;;  %v3176_v37 = vpop.permute.xlu0 %1391  ;;  %v1032_v8 = vrot.slane %v1028_v52, 1  ;;  %v1068_v12 = vrot.slane %v1064_v5, 2  ;;  %v742_v5 = vstv %s1939_s28  ;;  %s3358_s28 = sld [smem:[#allocation3 + $0x3f]] }
 0x105   : > { %v587_v14 = vadd.f32 %v3062_v15, %v574_v28  ;;  %v724_v9 = vadd.f32 %v723_v16, %v720_v45  ;;  %v1024_v36 = vadd.f32 %v1022_v34, %v1016_v58 }
 0x106   : > { %1364 = vrot.lane.b32.xlu1 %v1363_v19, %s3494_s1  ;;  %986 = vrot.lane.b32.xlu0 %v985_v21, %s3494_s1  ;;  %v1385_v19 = vstv %s2001_s5  ;;  %v1069_v21 = vrot.slane %v1065_v1, 2  ;;  %v1478_v1 = vstv %s2010_s17  ;;  %s3298_s5 = sld [smem:[#allocation3 + $0x7e]] }
 0x107   : > { %v598_v32 = vadd.f32 %v596_v31, %v587_v14  ;;  %v3183_v2 = vadd.f32 %v730_v17, %v724_v9  ;;  %v1404_v17 = vstv %s2004_s3  ;;  %v1386_v41 = vmul.f32 %v3037_v10, %v1385_v19  ;;  %s3292_s3 = sld [smem:[#allocation3 + $0x39]]  ;;  %s3361_s17 = sld [smem:[#allocation3 + $0x66]] }
 0x108   : > { %v1046_v42 = vpop.permute.xlu1 %1045  ;;  %v1400_v15 = vpop.permute.xlu0 %1399  ;;  %v1405_v22 = vmul.f32 %v3037_v10, %v1404_v17  ;;  %v1406_v3 = vmul.f32 %v3044_v18, %v1404_v17  ;;  %v1070_v25 = vsel %vm311_vm1, %v1068_v12, %v1069_v21  ;;  %v743_v21 = vmul.f32 %v3155_v7, %v742_v5 }
 0x109   : > { %v611_v43 = vadd.f32 %v3086_v47, %v598_v32  ;;  %v1394_v30 = vadd.f32 %v3176_v37, %v1386_v41  ;;  %v1120_v37 = vstv %s1976_s8  ;;  %v1479_v41 = vmul.f32 %v3155_v7, %v1478_v1  ;;  %s3322_s8 = sld [smem:[#allocation3 + $0x3c]] }
 0x10a   : > { %999 = vrot.lane.b32.xlu1 %v998_v29, %s3493_s0  ;;  %1742 = vrot.lane.b32.xlu0 %v1741_v38, %s3494_s1  ;;  %s3201_s1 = scalar_lea.vmem [#allocation6], %s1885_s27  ;;  %v1409_v27 = vrot.slane %v1405_v22, 1  ;;  %v1410_v28 = vrot.slane %v1406_v3, 1  ;;  %v1100_v29 = vstv %s1973_s4  ;;  %v1498_v22 = vstv %s2013_s18  ;;  %s3273_s27 = sld [smem:[#allocation3 + $0x5d]] }
 0x10b   : > { %v624_v11 = vadd.f32 %v3084_v46, %v611_v43  ;;  %v1031_v46 = vrot.slane %v1027_v55, 1  ;;  %v1402_v34 = vadd.f32 %v1400_v15, %v1394_v30  ;;  %v1101_v43 = vmul.f32 %v3155_v7, %v1100_v29  ;;  %s3307_s4 = sld [smem:[#allocation3 + $0x60]]  ;;  %s3363_s18 = sld [smem:[#allocation3 + $0x42]] }
 0x10c   : > { %v1059_v51 = vpop.permute.xlu1 %1058  ;;  %v3196_v47 = vpop.permute.xlu0 %1423  ;;  %v1411_v9 = vsel %vm273_vm0, %v1409_v27, %v1410_v28 }
 0x10d   : > { %v625_v26 = vmax.f32 %v624_v11, 0.0  ;;  %v1033_v35 = vsel %vm273_vm0, %v1031_v46, %v1032_v8  ;;  %v1413_v39 = vadd.f32 %v1411_v9, %v1402_v34  ;;  %v779_v9 = vstv %s3246_s21  ;;  %s3365_s21 = sld [smem:[#allocation3 + $0x87]] }
 0x10e   : > { %1755 = vrot.lane.b32.xlu1 %v1754_v49, %s3493_s0  ;;  %1377 = vrot.lane.b32.xlu0 %v1376_v50, %s3493_s0  ;;  %v1035_v61 = vadd.f32 %v1033_v35, %v1024_v36  ;;  %s2007_s0 = sld [smem:[#allocation3 + $0x72]]  ;;  %v1121_v49 = vmul.f32 %v3155_v7, %v1120_v37  ;;  %v3236_v50 = vld [vmem:[%s2381_s7 + $0x18] sm:$0x3] }
 0x10f   : > { %627 = vst.msk [vmem:[%s3201_s1] sm:$0xff] %vm626_vm2, %v625_v26  ;;  %v1500_v30 = vmul.f32 %v3236_v50, %v1498_v22 }
 0x110   : > { %v1083_v59 = vpop.permute.xlu1 %1082  ;;  %v1437_v33 = vpop.permute.xlu0 %1436  ;;  %v1048_v20 = vadd.f32 %v1046_v42, %v1035_v61  ;;  %v1125_v46 = vrot.slane %v1121_v49, 1  ;;  %v1535_v49 = vstv %s3259_s22  ;;  %s3367_s22 = sld [smem:[#allocation3 + $0x8a]] }
 0x112   : > { %v1061_v24 = vadd.f32 %v1059_v51, %v1048_v20  ;;  %v744_v20 = vmul.f32 %v3236_v50, %v742_v5 }
 0x114   : > { %v1096_v62 = vpop.permute.xlu1 %1095  ;;  %v3207_v63 = vpop.permute.xlu0 %1460  ;;  %v1072_v31 = vadd.f32 %v1070_v25, %v1061_v24  ;;  %v1441_v14 = vstv %s2007_s0  ;;  %v748_v34 = vrot.slane %v744_v20, 1  ;;  %s3304_s0 = sld [smem:[#allocation3 + $0x81]] }
 0x115   : > { %v1442_v32 = vmul.f32 %v3037_v10, %v1441_v14  ;;  %v1443_v4 = vmul.f32 %v3044_v18, %v1441_v14  ;;  %v1122_v10 = vmul.f32 %v3236_v50, %v1120_v37  ;;  %v1426_v18 = vadd.f32 %v3196_v47, %v1413_v39 }
 0x116   : > { %v1085_v40 = vadd.f32 %v1083_v59, %v1072_v31  ;;  %v747_v31 = vrot.slane %v743_v21, 1  ;;  %v1504_v39 = vrot.slane %v1500_v30, 1  ;;  %v781_v37 = vmul.f32 %v3236_v50, %v779_v9 }
 0x117   : > { %v1446_v13 = vrot.slane %v1442_v32, 2  ;;  %v1447_v11 = vrot.slane %v1443_v4, 2  ;;  %v1439_v26 = vadd.f32 %v1437_v33, %v1426_v18  ;;  %v1126_v8 = vrot.slane %v1122_v10, 1 }
 0x118   : > { %v1108_v57 = vpop.permute.xlu1 %1107  ;;  %v3211_v16 = vpop.permute.xlu0 %1473  ;;  %v1098_v42 = vadd.f32 %v1096_v62, %v1085_v40  ;;  %v1157_v62 = vstv %s1979_s6  ;;  %s3351_s6 = sld [smem:[#allocation3 + $0x63]] }
 0x119   : > { %v1448_v56 = vsel %vm311_vm1, %v1446_v13, %v1447_v11  ;;  %v1127_v47 = vsel %vm273_vm0, %v1125_v46, %v1126_v8  ;;  %v1158_v33 = vmul.f32 %v3155_v7, %v1157_v62  ;;  %v1159_v61 = vmul.f32 %v3236_v50, %v1157_v62 }
 0x11a   : > { %v1102_v55 = vadd.f32 %v1101_v43, %v1098_v42  ;;  %v1450_v54 = vadd.f32 %v1448_v56, %v1439_v26  ;;  %v749_v42 = vsel %vm273_vm0, %v747_v31, %v748_v34  ;;  %v780_v43 = vmul.f32 %v3155_v7, %v779_v9 }
 0x11b   : > { %v1162_v24 = vrot.slane %v1158_v33, 2  ;;  %v1163_v25 = vrot.slane %v1159_v61, 2  ;;  %v785_v56 = vrot.slane %v781_v37, 2  ;;  %v1537_v46 = vmul.f32 %v3236_v50, %v1535_v49 }
 0x11c   : > { %v3215_v48 = vpop.permute.xlu1 %737  ;;  %v3217_v23 = vpop.permute.xlu0 %1485  ;;  %v1110_v59 = vadd.f32 %v1108_v57, %v1102_v55  ;;  %v1463_v57 = vadd.f32 %v3207_v63, %v1450_v54  ;;  %v1499_v63 = vmul.f32 %v3155_v7, %v1498_v22  ;;  %v784_v26 = vrot.slane %v780_v43, 2  ;;  %v3295_v54 = vld [vmem:[%s2381_s7 + $0x20] sm:$0xff] }
 0x11d   : > { %v1164_v29 = vsel %vm311_vm1, %v1162_v24, %v1163_v25  ;;  %v1214_v50 = vstv %s3273_s27  ;;  %v1541_v1 = vrot.slane %v1537_v46, 2  ;;  %v836_v25 = vstv %s3292_s3  ;;  %s3380_s27 = sld [smem:[#allocation3 + $0x69]]  ;;  %s2039_s3 = sshll.u32 %s2239_s13, 3 }
 0x11e   : > { %v1476_v3 = vadd.f32 %v3211_v16, %v1463_v57  ;;  %v1503_v4 = vrot.slane %v1499_v63, 1  ;;  %v1215_v61 = vmul.f32 %v3295_v54, %v1214_v50  ;;  %v3312_v57 = vld [vmem:[%s2381_s7 + $0x28] sm:$0x3]  ;;  %v1592_v9 = vstv %s3304_s0  ;;  %s3334_s7 = sld [smem:[#allocation3 + $0x84]]  ;;  %s1777_s0 = sshll.u32 %s3201_s1, 4  ;;  %s3411_s0 = int_to_ptr.vmem [resolvable:$true] %s1777_s0 }
 0x120   : > { %v3221_v45 = vpop.permute.xlu1 %1493  ;;  %v1116_v53 = vpop.permute.xlu0 %1115  ;;  %v1480_v16 = vadd.f32 %v1479_v41, %v1476_v3  ;;  %v1505_v55 = vsel %vm273_vm0, %v1503_v4, %v1504_v39  ;;  %v816_v41 = vstv %s3287_s29  ;;  %v1219_v63 = vrot.slane %v1215_v61, 1  ;;  %s3388_s29 = sld [smem:[#allocation3 + $0x8d]] }
 0x121   : > { %v1118_v35 = vadd.f32 %v1116_v53, %v1110_v59 }
 0x122   : > { %v1488_v13 = vadd.f32 %v3217_v23, %v1480_v16  ;;  %v1536_v23 = vmul.f32 %v3155_v7, %v1535_v49 }
 0x123   : > { %v1129_v12 = vadd.f32 %v1127_v47, %v1118_v35 }
 0x124   : > { %v1140_v38 = vpop.permute.xlu1 %1139  ;;  %v3225_v0 = vpop.permute.xlu0 %761 }
 0x125   : > { %v1142_v53 = vadd.f32 %v1140_v38, %v1129_v12  ;;  %v740_v38 = vadd.f32 %v3215_v48, %v3183_v2  ;;  %v1496_v2 = vadd.f32 %v3221_v45, %v1488_v13 }
 0x127   : > { %v751_v48 = vadd.f32 %v749_v42, %v740_v38  ;;  %v1507_v7 = vadd.f32 %v1505_v55, %v1496_v2  ;;  %v1251_v38 = vstv %s3307_s4 }
 0x128   : > { %v3230_v44 = vpop.permute.xlu1 %774  ;;  %v3232_v15 = vpop.permute.xlu0 %1517  ;;  %v1252_v2 = vmul.f32 %v3295_v54, %v1251_v38 }
 0x129   : > { %v764_v8 = vadd.f32 %v3225_v0, %v751_v48  ;;  %v786_v0 = vsel %vm311_vm1, %v784_v26, %v785_v56  ;;  %v1520_v33 = vadd.f32 %v3232_v15, %v1507_v7  ;;  %v873_v56 = vstv %s3322_s8 }
 0x12b   : > { %v777_v47 = vadd.f32 %v3230_v44, %v764_v8  ;;  %v1216_v44 = vmul.f32 %v3312_v57, %v1214_v50  ;;  %v875_v50 = vmul.f32 %v3312_v57, %v873_v56 }
 0x12c   : > { %v3240_v52 = vpop.permute.xlu1 %1530  ;;  %v1153_v51 = vpop.permute.xlu0 %1152 }
 0x12d   : > { %v1155_v14 = vadd.f32 %v1153_v51, %v1142_v53  ;;  %v1194_v51 = vstv %s3265_s26  ;;  %v1533_v20 = vadd.f32 %v3240_v52, %v1520_v33  ;;  %v788_v22 = vadd.f32 %v786_v0, %v777_v47  ;;  %s3377_s26 = sld [smem:[#allocation3 + $0x45]] }
 0x12e   : > { %v1195_v45 = vmul.f32 %v3295_v54, %v1194_v51  ;;  %v1572_v53 = vstv %s3298_s5  ;;  %v1220_v30 = vrot.slane %v1216_v44, 1  ;;  %s1774_s5 = sadd.s32 %s2235_s12, %s2039_s3 }
 0x12f   : > { %v1166_v11 = vadd.f32 %v1164_v29, %v1155_v14  ;;  %v837_v29 = vmul.f32 %v3295_v54, %v836_v25  ;;  %v1573_v42 = vmul.f32 %v3295_v54, %v1572_v53  ;;  %s2040_s4 = sshll.u32 %s1774_s5, 7 }
 0x130   : > { %v1177_v58 = vpop.permute.xlu1 %1176  ;;  %v3243_v36 = vpop.permute.xlu0 %798  ;;  %v1221_v43 = vsel %vm273_vm0, %v1219_v63, %v1220_v30  ;;  %v1288_v30 = vstv %s3351_s6  ;;  %s3418_s8 = scalar_lea.hbm %s3478_s2, %s2040_s4  ;;  %s2153_s6 = scalar_lea.vmem %s3411_s0, 512 }
 0x131   : > { %v1179_v59 = vadd.f32 %v1177_v58, %v1166_v11  ;;  %v1540_v58 = vrot.slane %v1536_v23, 2  ;;  %v801_v15 = vadd.f32 %v3243_v36, %v788_v22  ;;  %v838_v36 = vmul.f32 %v3312_v57, %v836_v25  ;;  %p2154_p3 = scmp.ne.s32.totalorder %s3411_s0, %s2153_s6 }
 0x132   : > { %v841_v48 = vrot.slane %v837_v29, 1 }
 0x133   : > { %v1542_v24 = vsel %vm311_vm1, %v1540_v58, %v1541_v1  ;;  %v842_v55 = vrot.slane %v838_v36, 1  ;;  %v1629_v58 = vstv %s3334_s7  ;;  %v1289_v36 = vmul.f32 %v3015_v60, %v1288_v30  ;;  %s1763_s7 = scalar_lea.sflag [#allocation4], %s2378_s23  ;;  %p2155_p9 = pnand %p2154_p3, %p3495_p8 }
 0x134   : > { %v3250_v17 = vpop.permute.xlu1 %811  ;;  %v3252_v19 = vpop.permute.xlu0 %1554  ;;  %v1544_v16 = vadd.f32 %v1542_v24, %v1533_v20  ;;  %v1630_v24 = vmul.f32 %v3295_v54, %v1629_v58 }
 0x135   : > { %v814_v52 = vadd.f32 %v3250_v17, %v801_v15  ;;  %v1593_v17 = vmul.f32 %v3295_v54, %v1592_v9  ;;  %v843_v7 = vsel %vm273_vm0, %v841_v48, %v842_v55  ;;  %p2156_p13 = pneg %p2155_p9 }
 0x136   : > { %v1557_v4 = vadd.f32 %v3252_v19, %v1544_v16  ;;  %v1253_v19 = vmul.f32 %v3312_v57, %v1251_v38  ;;  %v910_v38 = vstv %s3358_s28  ;;  %s2256_s28 = smov [#allocation6]  }
 0x137   : > { %v1597_v23 = vrot.slane %v1593_v17, 1  ;;  %v1666_v17 = vstv %s3365_s21 }
 0x138   : > { %v3261_v27 = vpop.permute.xlu1 %1567  ;;  %v1190_v28 = vpop.permute.xlu0 %1189  ;;  %v1257_v47 = vrot.slane %v1253_v19, 2 }
 0x139   : > { %v1192_v5 = vadd.f32 %v1190_v28, %v1179_v59  ;;  %v817_v28 = vmul.f32 %v3295_v54, %v816_v41  ;;  %v1570_v11 = vadd.f32 %v3261_v27, %v1557_v4  ;;  %v1256_v27 = vrot.slane %v1252_v2, 2 }
 0x13a   : > { %v879_v41 = vrot.slane %v875_v50, 2 }
 0x13b   : > { %v1196_v3 = vadd.f32 %v1195_v45, %v1192_v5  ;;  %v818_v49 = vadd.f32 %v817_v28, %v814_v52  ;;  %v874_v5 = vmul.f32 %v3295_v54, %v873_v56  ;;  %v1258_v22 = vsel %vm311_vm1, %v1256_v27, %v1257_v47 }
 0x13c   : > { %v1202_v40 = vpop.permute.xlu1 %1201  ;;  %v3269_v32 = vpop.permute.xlu0 %823 }
 0x13d   : > { %v1204_v14 = vadd.f32 %v1202_v40, %v1196_v3  ;;  %v1594_v40 = vmul.f32 %v3312_v57, %v1592_v9  ;;  %v826_v51 = vadd.f32 %v3269_v32, %v818_v49  ;;  %v878_v3 = vrot.slane %v874_v5, 2 }
 0x13e   : > { %v1686_v49 = vstv %s3367_s22 }
 0x13f   : > { %v1598_v46 = vrot.slane %v1594_v40, 1  ;;  %v880_v54 = vsel %vm311_vm1, %v878_v3, %v879_v41 }
 0x140   : > { %v3280_v10 = vpop.permute.xlu1 %831  ;;  %v3282_v18 = vpop.permute.xlu0 %1579 }
 0x141   : > { %v834_v45 = vadd.f32 %v3280_v10, %v826_v51  ;;  %v1599_v1 = vsel %vm273_vm0, %v1597_v23, %v1598_v46  ;;  %v1687_v46 = vmul.f32 %v3015_v60, %v1686_v49 }
 0x143   : > { %v845_v44 = vadd.f32 %v843_v7, %v834_v45  ;;  %v1667_v45 = vmul.f32 %v3015_v60, %v1666_v17 }
 0x144   : > { %v3300_v35 = vpop.permute.xlu1 %1587  ;;  %v1210_v62 = vpop.permute.xlu0 %1209 }
 0x145   : > { %v1212_v39 = vadd.f32 %v1210_v62, %v1204_v14  ;;  %v1574_v62 = vadd.f32 %v1573_v42, %v1570_v11  ;;  %v1308_v42 = vstv %s3361_s17  ;;  %v911_v11 = vmul.f32 %v3015_v60, %v910_v38  ;;  %s2157_s17 = sshll.u32 %s2256_s28, 4  ;;  %s2158_s17 = int_to_ptr.vmem [resolvable:$false] %s2157_s17 }
 0x146   : > { %v1309_v2 = vmul.f32 %v3015_v60, %v1308_v42  ;;  %v1310_v19 = vmul.f32 %v3030_v6, %v1308_v42  ;;  %p2160_p0 = scmp.lt.s32.totalorder %s3411_s0, %s2158_s17 }
 0x147   : > { %v1223_v26 = vadd.f32 %v1221_v43, %v1212_v39  ;;  %v1582_v32 = vadd.f32 %v3282_v18, %v1574_v62  ;;  %v1631_v18 = vmul.f32 %v3312_v57, %v1629_v58  ;;  %v1634_v57 = vrot.slane %v1630_v24, 2 }
 0x148   : > { %v1234_v12 = vpop.permute.xlu1 %1233  ;;  %v3315_v21 = vpop.permute.xlu0 %855  ;;  %v930_v43 = vstv %s3363_s18  ;;  %v1688_v62 = vmul.f32 %v3030_v6, %v1686_v49  ;;  %v1313_v27 = vrot.slane %v1309_v2, 1  ;;  %v1314_v47 = vrot.slane %v1310_v19, 1  ;;  %s2159_s18 = scalar_lea.vmem %s2158_s17, 1024 }
 0x149   : > { %v1236_v0 = vadd.f32 %v1234_v12, %v1223_v26  ;;  %v1590_v10 = vadd.f32 %v3300_v35, %v1582_v32  ;;  %v858_v12 = vadd.f32 %v3315_v21, %v845_v44  ;;  %v1635_v21 = vrot.slane %v1631_v18, 2  ;;  %p2161_p1 = scmp.lt.s32.totalorder %s2159_s18, %s2153_s6 }
 0x14a   : > { %v931_v48 = vmul.f32 %v3015_v60, %v930_v43  ;;  %v932_v55 = vmul.f32 %v3030_v6, %v930_v43  ;;  %v1315_v3 = vsel %vm273_vm0, %v1313_v27, %v1314_v47 }
 0x14b   : > { %v1601_v28 = vadd.f32 %v1599_v1, %v1590_v10  ;;  %v1636_v29 = vsel %vm311_vm1, %v1634_v57, %v1635_v21  ;;  %p2162_p2 = por %p2161_p1, %p2160_p0 }
 0x14c   : > { %v869_v31 = vpop.permute.xlu1 %868  ;;  %v3326_v34 = vpop.permute.xlu0 %1611  ;;  %v935_v7 = vrot.slane %v931_v48, 1  ;;  %v936_v5 = vrot.slane %v932_v55, 1 }
 0x14d   : > { %v871_v25 = vadd.f32 %v869_v31, %v858_v12  ;;  %v1614_v63 = vadd.f32 %v3326_v34, %v1601_v28  ;;  %p2163_p4 = pnand %p2162_p2, %p2156_p13 }
 0x14e   : > { %v937_v41 = vsel %vm273_vm0, %v935_v7, %v936_v5 }
 0x14f   : > { %v882_v31 = vadd.f32 %v880_v54, %v871_v25 }
 0x150   : > { %v1625_v37 = vpop.permute.xlu1 %1624  ;;  %v1247_v13 = vpop.permute.xlu0 %1246 }
 0x151   : > { %v1249_v20 = vadd.f32 %v1247_v13, %v1236_v0  ;;  %v1627_v14 = vadd.f32 %v1625_v37, %v1614_v63  ;;  %v967_v0 = vstv %s3377_s26 }
 0x152   : > { %v968_v24 = vmul.f32 %v3015_v60, %v967_v0  ;;  %v969_v18 = vmul.f32 %v3030_v6, %v967_v0 }
 0x153   : > { %v1260_v53 = vadd.f32 %v1258_v22, %v1249_v20  ;;  %v1638_v13 = vadd.f32 %v1636_v29, %v1627_v14  ;;  %v1692_v22 = vrot.slane %v1688_v62, 1 }
 0x154   : > { %v1271_v8 = vpop.permute.xlu1 %1270  ;;  %v893_v59 = vpop.permute.xlu0 %892  ;;  %v972_v30 = vrot.slane %v968_v24, 2 }
 0x155   : > { %v1273_v9 = vadd.f32 %v1271_v8, %v1260_v53  ;;  %v895_v4 = vadd.f32 %v893_v59, %v882_v31 }
 0x158   : > { %v906_v33 = vpop.permute.xlu1 %905  ;;  %v1649_v61 = vpop.permute.xlu0 %1648 }
 0x159   : > { %v908_v37 = vadd.f32 %v906_v33, %v895_v4  ;;  %v1651_v51 = vadd.f32 %v1649_v61, %v1638_v13  ;;  %v1691_v33 = vrot.slane %v1687_v46, 1  ;;  %v1345_v61 = vstv %s3380_s27 }
 0x15a   : > { %v1346_v28 = vmul.f32 %v3015_v60, %v1345_v61  ;;  %v1347_v53 = vmul.f32 %v3030_v6, %v1345_v61 }
 0x15b   : > { %v912_v59 = vadd.f32 %v911_v11, %v908_v37  ;;  %v1693_v63 = vsel %vm273_vm0, %v1691_v33, %v1692_v22 }
 0x15c   : > { %v1662_v35 = vpop.permute.xlu1 %1661  ;;  %v1284_v15 = vpop.permute.xlu0 %1283  ;;  %v1351_v38 = vrot.slane %v1347_v53, 2 }
 0x15d   : > { %v1286_v39 = vadd.f32 %v1284_v15, %v1273_v9  ;;  %v1664_v8 = vadd.f32 %v1662_v35, %v1651_v51  ;;  %v1723_v35 = vstv %s3388_s29 }
 0x15e   : > { %v1725_v14 = vmul.f32 %v3030_v6, %v1723_v35 }
 0x15f   : > { %v1290_v26 = vadd.f32 %v1289_v36, %v1286_v39  ;;  %v1668_v44 = vadd.f32 %v1667_v45, %v1664_v8  ;;  %v1350_v36 = vrot.slane %v1346_v28, 2 }
 0x160   : > { %v1296_v52 = vpop.permute.xlu1 %1295  ;;  %v918_v16 = vpop.permute.xlu0 %917  ;;  %v1729_v17 = vrot.slane %v1725_v14, 2 }
 0x161   : > { %v1298_v50 = vadd.f32 %v1296_v52, %v1290_v26  ;;  %v920_v32 = vadd.f32 %v918_v16, %v912_v59  ;;  %v973_v52 = vrot.slane %v969_v18, 2  ;;  %v1724_v16 = vmul.f32 %v3015_v60, %v1723_v35 }
 0x162   : > { %v1352_v60 = vsel %vm311_vm1, %v1350_v36, %v1351_v38 }
 0x163   : > { %v974_v43 = vsel %vm311_vm1, %v972_v30, %v973_v52 }
 0x164   : > { %v926_v34 = vpop.permute.xlu1 %925  ;;  %v1674_v40 = vpop.permute.xlu0 %1673 }
 0x165   : > { %v928_v10 = vadd.f32 %v926_v34, %v920_v32  ;;  %v1676_v12 = vadd.f32 %v1674_v40, %v1668_v44  ;;  %v1728_v34 = vrot.slane %v1724_v16, 2 }
 0x167   : > { %v939_v21 = vadd.f32 %v937_v41, %v928_v10  ;;  %v1730_v2 = vsel %vm311_vm1, %v1728_v34, %v1729_v17 }
 0x168   : > { %v1682_v56 = vpop.permute.xlu1 %1681  ;;  %v1304_v23 = vpop.permute.xlu0 %1303 }
 0x169   : > { %v1306_v20 = vadd.f32 %v1304_v23, %v1298_v50  ;;  %v1684_v54 = vadd.f32 %v1682_v56, %v1676_v12 }
 0x16b   : > { %v1317_v57 = vadd.f32 %v1315_v3, %v1306_v20  ;;  %v1695_v42 = vadd.f32 %v1693_v63, %v1684_v54 }
 0x16c   : > { %v1328_v58 = vpop.permute.xlu1 %1327  ;;  %v950_v1 = vpop.permute.xlu0 %949 }
 0x16d   : > { %v952_v9 = vadd.f32 %v950_v1, %v939_v21  ;;  %v1330_v4 = vadd.f32 %v1328_v58, %v1317_v57 }
 0x170   : > { %v963_v15 = vpop.permute.xlu1 %962  ;;  %v1706_v25 = vpop.permute.xlu0 %1705 }
 0x171   : > { %v965_v39 = vadd.f32 %v963_v15, %v952_v9  ;;  %v1708_v40 = vadd.f32 %v1706_v25, %v1695_v42 }
 0x173   : > { %v976_v49 = vadd.f32 %v974_v43, %v965_v39 }
 0x174   : > { %v1719_v31 = vpop.permute.xlu1 %1718  ;;  %v1341_v29 = vpop.permute.xlu0 %1340 }
 0x175   : > { %v1343_v37 = vadd.f32 %v1341_v29, %v1330_v4  ;;  %v1721_v11 = vadd.f32 %v1719_v31, %v1708_v40 }
 0x177   : > { %v1354_v19 = vadd.f32 %v1352_v60, %v1343_v37  ;;  %v1732_v56 = vadd.f32 %v1730_v2, %v1721_v11 }
 0x178   : > { %v1365_v6 = vpop.permute.xlu1 %1364  ;;  %v987_v13 = vpop.permute.xlu0 %986 }
 0x179   : > { %v989_v48 = vadd.f32 %v987_v13, %v976_v49  ;;  %v1367_v23 = vadd.f32 %v1365_v6, %v1354_v19 }
 0x17c   : > { %v1000_v55 = vpop.permute.xlu1 %999  ;;  %v1743_v51 = vpop.permute.xlu0 %1742 }
 0x17d   : > { %v1002_v26 = vadd.f32 %v1000_v55, %v989_v48  ;;  %v1745_v8 = vadd.f32 %v1743_v51, %v1732_v56 }
 0x17f   : > { %v1003_v46 = vmax.f32 %v1002_v26, 0.0 }
 0x180   : > { %v1756_v59 = vpop.permute.xlu1 %1755  ;;  %v1378_v45 = vpop.permute.xlu0 %1377 }
 0x181   : > { %1963 = vst.msk [vmem:[%s3201_s1 + $0x8] sm:$0xff] %vm626_vm2, %v1003_v46  ;;  %v1758_v62 = vadd.f32 %v1756_v59, %v1745_v8  ;;  %v1380_v27 = vadd.f32 %v1378_v45, %v1367_v23 }
 0x183   : > { %v1759_v47 = vmax.f32 %v1758_v62, 0.0  ;;  %v1381_v7 = vmax.f32 %v1380_v27, 0.0 }
 0x185   : > { %2037 = vst.msk [vmem:[%s3201_s1 + $0x18] sm:$0xff] %vm626_vm2, %v1759_v47  ;;  %2000 = vst.msk [vmem:[%s3201_s1 + $0x10] sm:$0xff] %vm626_vm2, %v1381_v7 }
 0x186   : > { %2166 = shalt.err (!%p2163_p4)
}
 0x187   : > { %s2167_s1 = scalar_lea.hbm %s3418_s8, 512  ;;  %s2171_s26 = scalar_lea.hbm %s3478_s2, 2048 }
 0x188   : > { %p2168_p5 = scmp.ne.s32.totalorder %s3418_s8, %s2167_s1  ;;  %p2172_p10 = scmp.lt.u32.totalorder %s3418_s8, %s3478_s2 }
 0x189   : > { %p2173_p11 = scmp.lt.u32.totalorder %s2171_s26, %s2167_s1  ;;  %p2175_p3 = scmp.lt.u32.totalorder %s2167_s1, %s3418_s8 }
 0x18a   : > { %p2169_p6 = pnand %p2168_p5, %p3495_p8 }
 0x18b   : > { %p2174_p12 = por %p2173_p11, %p2172_p10 }
 0x18c   : > { %p2170_p7 = pneg %p2169_p6 }
 0x18d   : > { %p2176_p9 = por %p2175_p3, %p2174_p12 }
 0x18f   : > { %p2177_p13 = pnand %p2176_p9, %p2170_p7 }
 0x191   : > { %2180 = shalt.err (!%p2177_p13)
}
 0x192   : > { %s2257_s3 = smov 128   ;;  %s2258_s5 = smov 256  }
 0x193   : > { %s2259_s4 = smov 8  }
 0x194   : > { %2047 = dma.vmem_to_hbm [thread:$0]  (%p3495_p8), %s3411_s0, 512, %s3418_s8, %s1763_s7, %s2257_s3, %s2258_s5, %s2259_s4  }
 0x195 PF: > { %p2059_p0 = scmp.ge.s32.totalorder %s2251_s16, 2  ;;  %s1792_s12 = sand.u32 1, %s2223_s9  }
 0x196   : > { %p3496_p1 = scmp.ne.s32.totalorder %s3488_s25, 0  ;;  %s1793_s13 = scalar_lea.sflag [#allocation4], %s1792_s12 }
 0x198   : > { %p2054_p2 = pnand %p2059_p0, %p3496_p1 }
 0x19a   : > { %2218 = dma.done.wait (!%p2054_p2), %s1793_s13, 512  }
 0x19b   : > { %2220 = vsyncadd (!%p2054_p2), %s1793_s13, 4294966784  ;;  %s16_s16 = sadd.s32 1, %s2251_s16   ;;  %s3497_s9 = smov %s2227_s10 }
 0x19c   : > { %p13_p4 = scmp.ge.s32.totalorder %s16_s16, 6   ;;  %s3498_s10 = smov %s2231_s11 }
 0x19d   : > { %s3499_s11 = smov %s2357_s30  ;;  %s3500_s12 = smov %s2243_s14 }
 0x19e   : > { %s3501_s13 = smov %s2247_s15  ;;  %s3502_s14 = smov %s3505_s19 }
 0x19f   : > { %s3503_s15 = smov %s3509_s20  ;;  %15 = sbr.rel (!%p13_p4) target bundleno = 9 (0x9), region = 117 }
 0x1a6   :  { %1798 = vsyncpa [#allocation4], 1 }
 0x1a7   :  { %1800 = vsyncpa [#allocation4 + $0x1], 1 }
 0x1a8   :  { %1801 = vsyncpa [#allocation5], 1 }
 0x1a9   :  { %1803 = vsyncpa [#allocation5 + $0x1], 1 }

</bundles_post_ra>
